<compile_context>
chip_gen: v7x
topology: tpu7x:2x2x1
jax: 0.10.0
libtpu: 0.0.40
codegen_flags: <defaults>
</compile_context>

<pallas_src>
import functools

import jax
import jax.numpy as jnp
import numpy as np
from jax import lax
from jax.experimental import pallas as pl
from jax.experimental.pallas import tpu as pltpu


def _round_up(x, m):
    return ((x + m - 1) // m) * m


def _vmem_capacity_bytes():
    try:
        return int(pltpu.get_tpu_info().vmem_capacity_bytes)
    except Exception:
        return 64 * 1024 * 1024  # conservative (v7x physical per-TC VMEM)


def _aspp_kernel(x_ref, w_ref, b_ref, m_ref, o_ref, acc_ref, *, Kp, HWp, tap_specs):
    # x_ref  : (1, cb, L)  bf16  H-padded, spatially-flattened input slab
    # w_ref  : (M, cb)     bf16  stacked tap filters (M = n_taps * Kp)
    # b_ref  : (Kp, 1)     f32   per-class bias summed over branches
    # m_ref  : (V, 1, HWp) f32   0/1 column-validity masks per W-shift
    # o_ref  : (1, Kp, HWp)      output block (revisited across the C axis)
    # acc_ref: (Kp, HWp)   f32   VMEM accumulator scratch
    c_idx = pl.program_id(1)

    @pl.when(c_idx == 0)
    def _init():
        acc_ref[...] = jnp.zeros_like(acc_ref)

    # One wide stacked-tap matmul for this channel block: (M, cb) @ (cb, L).
    z = jnp.dot(w_ref[...], x_ref[0], preferred_element_type=jnp.float32)

    total = None
    for row0, start, mslot in tap_specs:
        tap = z[row0:row0 + Kp, start:start + HWp]          # (Kp, HWp) f32
        if mslot >= 0:
            tap = tap * m_ref[mslot]                         # (1, HWp) broadcast
        total = tap if total is None else total + tap
    acc_ref[...] += total

    @pl.when(c_idx == pl.num_programs(1) - 1)
    def _finalize():
        o_ref[0] = (acc_ref[...] + b_ref[...]).astype(o_ref.dtype)


def atrous_pyramid_forward(x_nchw, weights, biases, dilation_series, padding_series):
    """x: (N,C,H,W); weights: (B,K,C,3,3) PyTorch OIHW stacked over branches; biases: (B,K)."""
    N, C, H, W = x_nchw.shape
    B, K = biases.shape
    dilations = tuple(int(d) for d in dilation_series)
    paddings = tuple(int(p) for p in padding_series)
    # Standard DeepLab ASPP usage: padding == dilation per branch (same-size outputs).
    assert all(p == d for p, d in zip(paddings, dilations)), \
        "kernel assumes padding == dilation per branch"

    Kp = _round_up(K, 8)                  # sublane-aligned per-tap row block
    HW = H * W
    HWp = _round_up(HW, 128)              # lane-dense accumulator / output columns
    max_pad = max(paddings)
    guard = -(-(max_pad + (HWp - HW)) // W)   # keeps every tap slice inside the slab
    ph = max_pad + guard                  # H padding (top and bottom)
    Hp = H + 2 * ph
    L = Hp * W
    n_taps = B * 9
    M = n_taps * Kp

    # --- static tap table: (row block in W_all, flat offset in slab, mask slot) ---
    dws = sorted({kx * d - p for d, p in zip(dilations, paddings) for kx in range(3)} - {0})
    slot = {dw: i for i, dw in enumerate(dws)}
    tap_specs = []
    t = 0
    for bi, (d, p) in enumerate(zip(dilations, paddings)):
        for ky in range(3):
            for kx in range(3):
                dw = kx * d - p
                start = (ph + ky * d - p) * W + dw
                tap_specs.append((t * Kp, start, slot.get(dw, -1)))
                t += 1
    tap_specs = tuple(tap_specs)

    # --- column-validity masks (emulate zero padding along W without padding W) ---
    col = np.arange(HWp, dtype=np.int64) % W
    if dws:
        masks_np = np.stack(
            [((col + dw >= 0) & (col + dw < W)).astype(np.float32) for dw in dws])
    else:
        masks_np = np.ones((1, HWp), np.float32)
    V = masks_np.shape[0]
    masks = jnp.asarray(masks_np.reshape(V, 1, HWp))

    # --- weight / bias packing ---------------------------------------------------
    # TODO(synk): hoist this to parameter-prep time (it is call-invariant).
    w_t = jnp.transpose(weights, (0, 3, 4, 1, 2)).reshape(B * 9, K, C)   # (taps,K,C)
    if Kp > K:
        w_t = jnp.pad(w_t, ((0, 0), (0, Kp - K), (0, 0)))
    w_all = w_t.reshape(M, C).astype(jnp.bfloat16)
    b_sum = jnp.sum(biases.astype(jnp.float32), axis=0)
    b_sum = jnp.pad(b_sum, (0, Kp - K)).reshape(Kp, 1)

    # --- input: bf16, H-only zero pad, flatten spatial ----------------------------
    # TODO(synk): fuse this pad into the producer / in-kernel halo zero-fill.
    xb = x_nchw.astype(jnp.bfloat16)
    xp = jnp.pad(xb, ((0, 0), (0, 0), (ph, ph), (0, 0))).reshape(N, C, L)

    # --- channel-block selection against the VMEM budget --------------------------
    out_elem = jnp.dtype(x_nchw.dtype).itemsize
    capacity = _vmem_capacity_bytes()
    budget = int(capacity * 0.85)
    cands = [c for c in (1024, 512, 256, 128) if C % c == 0] or [C]
    cb = cands[-1]
    est = 0
    for c_try in cands:
        est = (2 * c_try * L * 2          # x block, double-buffered, bf16
               + 2 * M * c_try * 2        # w block, double-buffered, bf16
               + M * L * 4                # Z (stacked-tap matmul result), f32
               + Kp * HWp * 4             # accumulator
               + 2 * Kp * HWp * out_elem  # output block, double-buffered
               + V * HWp * 4              # masks
               + 4 * 1024 * 1024)         # headroom (temporaries / spills)
        if est <= budget:
            cb = c_try
            break
    n_cb = C // cb
    vmem_limit = int(min(capacity, max(32 * 1024 * 1024, est + 8 * 1024 * 1024)))

    kernel = functools.partial(_aspp_kernel, Kp=Kp, HWp=HWp, tap_specs=tap_specs)

    cost = pl.CostEstimate(
        flops=2 * N * M * L * C,
        transcendentals=0,
        bytes_accessed=N * C * L * 2 + M * C * 2 + N * Kp * HWp * out_elem)

    out_flat = pl.pallas_call(
        kernel,
        out_shape=jax.ShapeDtypeStruct((N, Kp, HWp), x_nchw.dtype),
        grid_spec=pltpu.PrefetchScalarGridSpec(
            num_scalar_prefetch=0,
            grid=(N, n_cb),                                    # C reduction last
            in_specs=[
                pl.BlockSpec((1, cb, L), lambda n, c: (n, c, 0)),
                pl.BlockSpec((M, cb), lambda n, c: (0, c)),
                pl.BlockSpec((Kp, 1), lambda n, c: (0, 0)),
                pl.BlockSpec((V, 1, HWp), lambda n, c: (0, 0, 0)),
            ],
            out_specs=pl.BlockSpec((1, Kp, HWp), lambda n, c: (n, 0, 0)),
            scratch_shapes=[pltpu.VMEM((Kp, HWp), jnp.float32)],
        ),
        compiler_params=pltpu.CompilerParams(
            dimension_semantics=("parallel", "arbitrary"),
            vmem_limit_bytes=vmem_limit),
        cost_estimate=cost,
    )(xp, w_all, b_sum, masks)

    # Crop the padded class rows and padded spatial columns; reshape is free.
    return out_flat[:, :K, :HW].reshape(N, K, H, W)


def _reference_forward(x_nchw, weights, biases, dilation_series, padding_series):
    """Plain-JAX f32 reference mirroring the PyTorch forward (sum of dilated convs)."""
    out = None
    for bi, (d, p) in enumerate(zip(dilation_series, padding_series)):
        y = lax.conv_general_dilated(
            x_nchw, weights[bi], window_strides=(1, 1),
            padding=[(p, p), (p, p)], rhs_dilation=(d, d),
            dimension_numbers=("NCHW", "OIHW", "NCHW"),
            precision=lax.Precision.HIGHEST)
        y = y + biases[bi].reshape(1, -1, 1, 1)
        out = y if out is None else out + y
    return out


if __name__ == "__main__":
    # Small synthetic config consistent with the module's __init__:
    #  - in_f = 384 (divisible by 128 only) exercises the C-reduction grid axis,
    #  - n_classes = 10 exercises the Kp (sublane) padding + crop,
    #  - H = W = 17 exercises the HWp (lane) padding + crop and the halo guard math.
    dilation_series = (2, 3, 5)
    padding_series = (2, 3, 5)
    in_f = 384
    n_classes = 10
    N, H, W = 2, 17, 17
    B = len(dilation_series)

    key = jax.random.PRNGKey(0)
    k_x, k_w, k_b = jax.random.split(key, 3)
    x = jax.random.normal(k_x, (N, in_f, H, W), dtype=jnp.float32)
    # weight.data.normal_(0, 0.01) as in the module; bias small deterministic values.
    weights = 0.01 * jax.random.normal(k_w, (B, n_classes, in_f, 3, 3), dtype=jnp.float32)
    biases = 0.05 * jax.random.normal(k_b, (B, n_classes), dtype=jnp.float32)

    out = jax.block_until_ready(
        atrous_pyramid_forward(x, weights, biases, dilation_series, padding_series))
    ref = jax.block_until_ready(
        _reference_forward(x, weights, biases, dilation_series, padding_series))

    assert out.shape == (N, n_classes, H, W), out.shape
    # Kernel runs the matmuls with bf16 inputs (f32 accumulation); reference is full f32.
    np.testing.assert_allclose(np.asarray(out), np.asarray(ref), rtol=5e-2, atol=5e-2)

    print("KERNEL_OK")
</pallas_src>

<mosaic_0001>
module attributes {stable_mosaic.version = 11 : i64} {
  func.func @_aspp_kernel(%arg0: i32, %arg1: i32, %arg2: memref<1x128x663xbf16, #tpu.memory_space<vmem>>, %arg3: memref<432x128xbf16, #tpu.memory_space<vmem>>, %arg4: memref<16x1xf32, #tpu.memory_space<vmem>>, %arg5: memref<6x1x384xf32, #tpu.memory_space<vmem>>, %arg6: memref<1x16x384xf32, #tpu.memory_space<vmem>>, %arg7: memref<16x384xf32, #tpu.memory_space<vmem>>) attributes {dimension_semantics = [#tpu.dimension_semantics<parallel>, #tpu.dimension_semantics<arbitrary>], iteration_bounds = array<i64: 2, 3>, scalar_prefetch = 0 : i64, scratch_operands = 1 : i64, tpu.core_type = #tpu.core_type<tc>, window_params = [{transform_indices = @transform_0, window_bounds = array<i64: 1, 128, 663>}, {transform_indices = @transform_1, window_bounds = array<i64: 432, 128>}, {pipeline_mode = #tpu.pipeline_mode<synchronous>, transform_indices = @transform_2, window_bounds = array<i64: 16, 1>}, {pipeline_mode = #tpu.pipeline_mode<synchronous>, transform_indices = @transform_3, window_bounds = array<i64: 6, 1, 384>}, {transform_indices = @transform_4, window_bounds = array<i64: 1, 16, 384>}]} {
    %c0_i32 = arith.constant 0 : i32
    %0 = arith.cmpi eq, %arg1, %c0_i32 : i32
    %1 = arith.extui %0 : i1 to i32
    %c0_i32_0 = arith.constant 0 : i32
    %2 = arith.cmpi ne, %1, %c0_i32_0 : i32
    scf.if %2 {
      %cst_59 = arith.constant 0.000000e+00 : f32
      %138 = vector.broadcast %cst_59 : f32 to vector<16x384xf32>
      %c0_60 = arith.constant 0 : index
      %c0_61 = arith.constant 0 : index
      %139 = vector.load %arg7[%c0_60, %c0_61] : memref<16x384xf32, #tpu.memory_space<vmem>>, vector<16x384xf32>
      tpu.vector_store %arg7[%c0_60, %c0_61], %138 {strides = array<i32>} : memref<16x384xf32, #tpu.memory_space<vmem>>, vector<16x384xf32>,
    } else {
    }
    %c0 = arith.constant 0 : index
    %c0_1 = arith.constant 0 : index
    %3 = vector.load %arg3[%c0, %c0_1] : memref<432x128xbf16, #tpu.memory_space<vmem>>, vector<432x128xbf16>
    %c0_2 = arith.constant 0 : index
    %c0_3 = arith.constant 0 : index
    %c0_4 = arith.constant 0 : index
    %4 = vector.load %arg2[%c0_2, %c0_3, %c0_4] : memref<1x128x663xbf16, #tpu.memory_space<vmem>>, vector<1x128x663xbf16>
    %5 = vector.shape_cast %4 : vector<1x128x663xbf16> to vector<128x663xbf16>
    %cst = arith.constant dense<0.000000e+00> : vector<432x663xf32>
    %6 = tpu.matmul %3, %5, %cst {dimension_numbers = #tpu.dot_dimension_numbers<[1], [0], [0], [1], [0, 0, 1, 1], [], []>} : vector<432x128xbf16>, vector<128x663xbf16>, vector<432x663xf32> -> vector<432x663xf32>
    %7 = vector.extract_strided_slice %6 {offsets = [0, 151], sizes = [16, 384], strides = [1, 1]} : vector<432x663xf32> to vector<16x384xf32>
    %c2 = arith.constant 2 : index
    %c0_5 = arith.constant 0 : index
    %c0_6 = arith.constant 0 : index
    %8 = vector.load %arg5[%c2, %c0_5, %c0_6] : memref<6x1x384xf32, #tpu.memory_space<vmem>>, vector<1x1x384xf32>
    %9 = vector.shape_cast %8 : vector<1x1x384xf32> to vector<1x384xf32>
    %10 = vector.broadcast %9 : vector<1x384xf32> to vector<16x384xf32>
    %11 = arith.mulf %7, %10 : vector<16x384xf32>
    %12 = vector.extract_strided_slice %6 {offsets = [16, 153], sizes = [16, 384], strides = [1, 1]} : vector<432x663xf32> to vector<16x384xf32>
    %13 = arith.addf %11, %12 : vector<16x384xf32>
    %14 = vector.extract_strided_slice %6 {offsets = [32, 155], sizes = [16, 384], strides = [1, 1]} : vector<432x663xf32> to vector<16x384xf32>
    %c3 = arith.constant 3 : index
    %c0_7 = arith.constant 0 : index
    %c0_8 = arith.constant 0 : index
    %15 = vector.load %arg5[%c3, %c0_7, %c0_8] : memref<6x1x384xf32, #tpu.memory_space<vmem>>, vector<1x1x384xf32>
    %16 = vector.shape_cast %15 : vector<1x1x384xf32> to vector<1x384xf32>
    %17 = vector.broadcast %16 : vector<1x384xf32> to vector<16x384xf32>
    %18 = arith.mulf %14, %17 : vector<16x384xf32>
    %19 = arith.addf %13, %18 : vector<16x384xf32>
    %20 = vector.extract_strided_slice %6 {offsets = [48, 185], sizes = [16, 384], strides = [1, 1]} : vector<432x663xf32> to vector<16x384xf32>
    %c2_9 = arith.constant 2 : index
    %c0_10 = arith.constant 0 : index
    %c0_11 = arith.constant 0 : index
    %21 = vector.load %arg5[%c2_9, %c0_10, %c0_11] : memref<6x1x384xf32, #tpu.memory_space<vmem>>, vector<1x1x384xf32>
    %22 = vector.shape_cast %21 : vector<1x1x384xf32> to vector<1x384xf32>
    %23 = vector.broadcast %22 : vector<1x384xf32> to vector<16x384xf32>
    %24 = arith.mulf %20, %23 : vector<16x384xf32>
    %25 = arith.addf %19, %24 : vector<16x384xf32>
    %26 = vector.extract_strided_slice %6 {offsets = [64, 187], sizes = [16, 384], strides = [1, 1]} : vector<432x663xf32> to vector<16x384xf32>
    %27 = arith.addf %25, %26 : vector<16x384xf32>
    %28 = vector.extract_strided_slice %6 {offsets = [80, 189], sizes = [16, 384], strides = [1, 1]} : vector<432x663xf32> to vector<16x384xf32>
    %c3_12 = arith.constant 3 : index
    %c0_13 = arith.constant 0 : index
    %c0_14 = arith.constant 0 : index
    %29 = vector.load %arg5[%c3_12, %c0_13, %c0_14] : memref<6x1x384xf32, #tpu.memory_space<vmem>>, vector<1x1x384xf32>
    %30 = vector.shape_cast %29 : vector<1x1x384xf32> to vector<1x384xf32>
    %31 = vector.broadcast %30 : vector<1x384xf32> to vector<16x384xf32>
    %32 = arith.mulf %28, %31 : vector<16x384xf32>
    %33 = arith.addf %27, %32 : vector<16x384xf32>
    %34 = vector.extract_strided_slice %6 {offsets = [96, 219], sizes = [16, 384], strides = [1, 1]} : vector<432x663xf32> to vector<16x384xf32>
    %c2_15 = arith.constant 2 : index
    %c0_16 = arith.constant 0 : index
    %c0_17 = arith.constant 0 : index
    %35 = vector.load %arg5[%c2_15, %c0_16, %c0_17] : memref<6x1x384xf32, #tpu.memory_space<vmem>>, vector<1x1x384xf32>
    %36 = vector.shape_cast %35 : vector<1x1x384xf32> to vector<1x384xf32>
    %37 = vector.broadcast %36 : vector<1x384xf32> to vector<16x384xf32>
    %38 = arith.mulf %34, %37 : vector<16x384xf32>
    %39 = arith.addf %33, %38 : vector<16x384xf32>
    %40 = vector.extract_strided_slice %6 {offsets = [112, 221], sizes = [16, 384], strides = [1, 1]} : vector<432x663xf32> to vector<16x384xf32>
    %41 = arith.addf %39, %40 : vector<16x384xf32>
    %42 = vector.extract_strided_slice %6 {offsets = [128, 223], sizes = [16, 384], strides = [1, 1]} : vector<432x663xf32> to vector<16x384xf32>
    %c3_18 = arith.constant 3 : index
    %c0_19 = arith.constant 0 : index
    %c0_20 = arith.constant 0 : index
    %43 = vector.load %arg5[%c3_18, %c0_19, %c0_20] : memref<6x1x384xf32, #tpu.memory_space<vmem>>, vector<1x1x384xf32>
    %44 = vector.shape_cast %43 : vector<1x1x384xf32> to vector<1x384xf32>
    %45 = vector.broadcast %44 : vector<1x384xf32> to vector<16x384xf32>
    %46 = arith.mulf %42, %45 : vector<16x384xf32>
    %47 = arith.addf %41, %46 : vector<16x384xf32>
    %48 = vector.extract_strided_slice %6 {offsets = [144, 133], sizes = [16, 384], strides = [1, 1]} : vector<432x663xf32> to vector<16x384xf32>
    %c1 = arith.constant 1 : index
    %c0_21 = arith.constant 0 : index
    %c0_22 = arith.constant 0 : index
    %49 = vector.load %arg5[%c1, %c0_21, %c0_22] : memref<6x1x384xf32, #tpu.memory_space<vmem>>, vector<1x1x384xf32>
    %50 = vector.shape_cast %49 : vector<1x1x384xf32> to vector<1x384xf32>
    %51 = vector.broadcast %50 : vector<1x384xf32> to vector<16x384xf32>
    %52 = arith.mulf %48, %51 : vector<16x384xf32>
    %53 = arith.addf %47, %52 : vector<16x384xf32>
    %54 = vector.extract_strided_slice %6 {offsets = [160, 136], sizes = [16, 384], strides = [1, 1]} : vector<432x663xf32> to vector<16x384xf32>
    %55 = arith.addf %53, %54 : vector<16x384xf32>
    %56 = vector.extract_strided_slice %6 {offsets = [176, 139], sizes = [16, 384], strides = [1, 1]} : vector<432x663xf32> to vector<16x384xf32>
    %c4 = arith.constant 4 : index
    %c0_23 = arith.constant 0 : index
    %c0_24 = arith.constant 0 : index
    %57 = vector.load %arg5[%c4, %c0_23, %c0_24] : memref<6x1x384xf32, #tpu.memory_space<vmem>>, vector<1x1x384xf32>
    %58 = vector.shape_cast %57 : vector<1x1x384xf32> to vector<1x384xf32>
    %59 = vector.broadcast %58 : vector<1x384xf32> to vector<16x384xf32>
    %60 = arith.mulf %56, %59 : vector<16x384xf32>
    %61 = arith.addf %55, %60 : vector<16x384xf32>
    %62 = vector.extract_strided_slice %6 {offsets = [192, 184], sizes = [16, 384], strides = [1, 1]} : vector<432x663xf32> to vector<16x384xf32>
    %c1_25 = arith.constant 1 : index
    %c0_26 = arith.constant 0 : index
    %c0_27 = arith.constant 0 : index
    %63 = vector.load %arg5[%c1_25, %c0_26, %c0_27] : memref<6x1x384xf32, #tpu.memory_space<vmem>>, vector<1x1x384xf32>
    %64 = vector.shape_cast %63 : vector<1x1x384xf32> to vector<1x384xf32>
    %65 = vector.broadcast %64 : vector<1x384xf32> to vector<16x384xf32>
    %66 = arith.mulf %62, %65 : vector<16x384xf32>
    %67 = arith.addf %61, %66 : vector<16x384xf32>
    %68 = vector.extract_strided_slice %6 {offsets = [208, 187], sizes = [16, 384], strides = [1, 1]} : vector<432x663xf32> to vector<16x384xf32>
    %69 = arith.addf %67, %68 : vector<16x384xf32>
    %70 = vector.extract_strided_slice %6 {offsets = [224, 190], sizes = [16, 384], strides = [1, 1]} : vector<432x663xf32> to vector<16x384xf32>
    %c4_28 = arith.constant 4 : index
    %c0_29 = arith.constant 0 : index
    %c0_30 = arith.constant 0 : index
    %71 = vector.load %arg5[%c4_28, %c0_29, %c0_30] : memref<6x1x384xf32, #tpu.memory_space<vmem>>, vector<1x1x384xf32>
    %72 = vector.shape_cast %71 : vector<1x1x384xf32> to vector<1x384xf32>
    %73 = vector.broadcast %72 : vector<1x384xf32> to vector<16x384xf32>
    %74 = arith.mulf %70, %73 : vector<16x384xf32>
    %75 = arith.addf %69, %74 : vector<16x384xf32>
    %76 = vector.extract_strided_slice %6 {offsets = [240, 235], sizes = [16, 384], strides = [1, 1]} : vector<432x663xf32> to vector<16x384xf32>
    %c1_31 = arith.constant 1 : index
    %c0_32 = arith.constant 0 : index
    %c0_33 = arith.constant 0 : index
    %77 = vector.load %arg5[%c1_31, %c0_32, %c0_33] : memref<6x1x384xf32, #tpu.memory_space<vmem>>, vector<1x1x384xf32>
    %78 = vector.shape_cast %77 : vector<1x1x384xf32> to vector<1x384xf32>
    %79 = vector.broadcast %78 : vector<1x384xf32> to vector<16x384xf32>
    %80 = arith.mulf %76, %79 : vector<16x384xf32>
    %81 = arith.addf %75, %80 : vector<16x384xf32>
    %82 = vector.extract_strided_slice %6 {offsets = [256, 238], sizes = [16, 384], strides = [1, 1]} : vector<432x663xf32> to vector<16x384xf32>
    %83 = arith.addf %81, %82 : vector<16x384xf32>
    %84 = vector.extract_strided_slice %6 {offsets = [272, 241], sizes = [16, 384], strides = [1, 1]} : vector<432x663xf32> to vector<16x384xf32>
    %c4_34 = arith.constant 4 : index
    %c0_35 = arith.constant 0 : index
    %c0_36 = arith.constant 0 : index
    %85 = vector.load %arg5[%c4_34, %c0_35, %c0_36] : memref<6x1x384xf32, #tpu.memory_space<vmem>>, vector<1x1x384xf32>
    %86 = vector.shape_cast %85 : vector<1x1x384xf32> to vector<1x384xf32>
    %87 = vector.broadcast %86 : vector<1x384xf32> to vector<16x384xf32>
    %88 = arith.mulf %84, %87 : vector<16x384xf32>
    %89 = arith.addf %83, %88 : vector<16x384xf32>
    %90 = vector.extract_strided_slice %6 {offsets = [288, 97], sizes = [16, 384], strides = [1, 1]} : vector<432x663xf32> to vector<16x384xf32>
    %c0_37 = arith.constant 0 : index
    %c0_38 = arith.constant 0 : index
    %c0_39 = arith.constant 0 : index
    %91 = vector.load %arg5[%c0_37, %c0_38, %c0_39] : memref<6x1x384xf32, #tpu.memory_space<vmem>>, vector<1x1x384xf32>
    %92 = vector.shape_cast %91 : vector<1x1x384xf32> to vector<1x384xf32>
    %93 = vector.broadcast %92 : vector<1x384xf32> to vector<16x384xf32>
    %94 = arith.mulf %90, %93 : vector<16x384xf32>
    %95 = arith.addf %89, %94 : vector<16x384xf32>
    %96 = vector.extract_strided_slice %6 {offsets = [304, 102], sizes = [16, 384], strides = [1, 1]} : vector<432x663xf32> to vector<16x384xf32>
    %97 = arith.addf %95, %96 : vector<16x384xf32>
    %98 = vector.extract_strided_slice %6 {offsets = [320, 107], sizes = [16, 384], strides = [1, 1]} : vector<432x663xf32> to vector<16x384xf32>
    %c5 = arith.constant 5 : index
    %c0_40 = arith.constant 0 : index
    %c0_41 = arith.constant 0 : index
    %99 = vector.load %arg5[%c5, %c0_40, %c0_41] : memref<6x1x384xf32, #tpu.memory_space<vmem>>, vector<1x1x384xf32>
    %100 = vector.shape_cast %99 : vector<1x1x384xf32> to vector<1x384xf32>
    %101 = vector.broadcast %100 : vector<1x384xf32> to vector<16x384xf32>
    %102 = arith.mulf %98, %101 : vector<16x384xf32>
    %103 = arith.addf %97, %102 : vector<16x384xf32>
    %104 = vector.extract_strided_slice %6 {offsets = [336, 182], sizes = [16, 384], strides = [1, 1]} : vector<432x663xf32> to vector<16x384xf32>
    %c0_42 = arith.constant 0 : index
    %c0_43 = arith.constant 0 : index
    %c0_44 = arith.constant 0 : index
    %105 = vector.load %arg5[%c0_42, %c0_43, %c0_44] : memref<6x1x384xf32, #tpu.memory_space<vmem>>, vector<1x1x384xf32>
    %106 = vector.shape_cast %105 : vector<1x1x384xf32> to vector<1x384xf32>
    %107 = vector.broadcast %106 : vector<1x384xf32> to vector<16x384xf32>
    %108 = arith.mulf %104, %107 : vector<16x384xf32>
    %109 = arith.addf %103, %108 : vector<16x384xf32>
    %110 = vector.extract_strided_slice %6 {offsets = [352, 187], sizes = [16, 384], strides = [1, 1]} : vector<432x663xf32> to vector<16x384xf32>
    %111 = arith.addf %109, %110 : vector<16x384xf32>
    %112 = vector.extract_strided_slice %6 {offsets = [368, 192], sizes = [16, 384], strides = [1, 1]} : vector<432x663xf32> to vector<16x384xf32>
    %c5_45 = arith.constant 5 : index
    %c0_46 = arith.constant 0 : index
    %c0_47 = arith.constant 0 : index
    %113 = vector.load %arg5[%c5_45, %c0_46, %c0_47] : memref<6x1x384xf32, #tpu.memory_space<vmem>>, vector<1x1x384xf32>
    %114 = vector.shape_cast %113 : vector<1x1x384xf32> to vector<1x384xf32>
    %115 = vector.broadcast %114 : vector<1x384xf32> to vector<16x384xf32>
    %116 = arith.mulf %112, %115 : vector<16x384xf32>
    %117 = arith.addf %111, %116 : vector<16x384xf32>
    %118 = vector.extract_strided_slice %6 {offsets = [384, 267], sizes = [16, 384], strides = [1, 1]} : vector<432x663xf32> to vector<16x384xf32>
    %c0_48 = arith.constant 0 : index
    %c0_49 = arith.constant 0 : index
    %c0_50 = arith.constant 0 : index
    %119 = vector.load %arg5[%c0_48, %c0_49, %c0_50] : memref<6x1x384xf32, #tpu.memory_space<vmem>>, vector<1x1x384xf32>
    %120 = vector.shape_cast %119 : vector<1x1x384xf32> to vector<1x384xf32>
    %121 = vector.broadcast %120 : vector<1x384xf32> to vector<16x384xf32>
    %122 = arith.mulf %118, %121 : vector<16x384xf32>
    %123 = arith.addf %117, %122 : vector<16x384xf32>
    %124 = vector.extract_strided_slice %6 {offsets = [400, 272], sizes = [16, 384], strides = [1, 1]} : vector<432x663xf32> to vector<16x384xf32>
    %125 = arith.addf %123, %124 : vector<16x384xf32>
    %126 = vector.extract_strided_slice %6 {offsets = [416, 277], sizes = [16, 384], strides = [1, 1]} : vector<432x663xf32> to vector<16x384xf32>
    %c5_51 = arith.constant 5 : index
    %c0_52 = arith.constant 0 : index
    %c0_53 = arith.constant 0 : index
    %127 = vector.load %arg5[%c5_51, %c0_52, %c0_53] : memref<6x1x384xf32, #tpu.memory_space<vmem>>, vector<1x1x384xf32>
    %128 = vector.shape_cast %127 : vector<1x1x384xf32> to vector<1x384xf32>
    %129 = vector.broadcast %128 : vector<1x384xf32> to vector<16x384xf32>
    %130 = arith.mulf %126, %129 : vector<16x384xf32>
    %131 = arith.addf %125, %130 : vector<16x384xf32>
    %c0_54 = arith.constant 0 : index
    %c0_55 = arith.constant 0 : index
    %132 = vector.load %arg7[%c0_54, %c0_55] : memref<16x384xf32, #tpu.memory_space<vmem>>, vector<16x384xf32>
    %133 = arith.addf %132, %131 : vector<16x384xf32>
    %c0_56 = arith.constant 0 : index
    %c0_57 = arith.constant 0 : index
    %134 = vector.load %arg7[%c0_56, %c0_57] : memref<16x384xf32, #tpu.memory_space<vmem>>, vector<16x384xf32>
    tpu.vector_store %arg7[%c0_56, %c0_57], %133 {strides = array<i32>} : memref<16x384xf32, #tpu.memory_space<vmem>>, vector<16x384xf32>,
    %c2_i32 = arith.constant 2 : i32
    %135 = arith.cmpi eq, %arg1, %c2_i32 : i32
    %136 = arith.extui %135 : i1 to i32
    %c0_i32_58 = arith.constant 0 : i32
    %137 = arith.cmpi ne, %136, %c0_i32_58 : i32
    scf.if %137 {
      %c0_59 = arith.constant 0 : index
      %c0_60 = arith.constant 0 : index
      %138 = vector.load %arg7[%c0_59, %c0_60] : memref<16x384xf32, #tpu.memory_space<vmem>>, vector<16x384xf32>
      %c0_61 = arith.constant 0 : index
      %c0_62 = arith.constant 0 : index
      %139 = vector.load %arg4[%c0_61, %c0_62] : memref<16x1xf32, #tpu.memory_space<vmem>>, vector<16x1xf32>
      %140 = vector.broadcast %139 : vector<16x1xf32> to vector<16x384xf32>
      %141 = arith.addf %138, %140 : vector<16x384xf32>
      %c0_63 = arith.constant 0 : index
      %c0_64 = arith.constant 0 : index
      %c0_65 = arith.constant 0 : index
      %142 = vector.load %arg6[%c0_63, %c0_64, %c0_65] : memref<1x16x384xf32, #tpu.memory_space<vmem>>, vector<1x16x384xf32>
      %143 = vector.shape_cast %142 : vector<1x16x384xf32> to vector<16x384xf32>
      %144 = vector.shape_cast %141 : vector<16x384xf32> to vector<1x16x384xf32>
      tpu.vector_store %arg6[%c0_63, %c0_64, %c0_65], %144 {strides = array<i32>} : memref<1x16x384xf32, #tpu.memory_space<vmem>>, vector<1x16x384xf32>,
    } else {
    }
    return
  }
  func.func @transform_0(%arg0: i32, %arg1: i32) -> (i32, i32, i32) {
    %c0_i32 = arith.constant 0 : i32
    %c0_i32_0 = arith.constant 0 : i32
    return %arg0, %arg1, %c0_i32 : i32, i32, i32
  }
  func.func @transform_1(%arg0: i32, %arg1: i32) -> (i32, i32) {
    %c0_i32 = arith.constant 0 : i32
    %c0_i32_0 = arith.constant 0 : i32
    return %c0_i32, %arg1 : i32, i32
  }
  func.func @transform_2(%arg0: i32, %arg1: i32) -> (i32, i32) {
    %c0_i32 = arith.constant 0 : i32
    %c0_i32_0 = arith.constant 0 : i32
    %c0_i32_1 = arith.constant 0 : i32
    return %c0_i32, %c0_i32_0 : i32, i32
  }
  func.func @transform_3(%arg0: i32, %arg1: i32) -> (i32, i32, i32) {
    %c0_i32 = arith.constant 0 : i32
    %c0_i32_0 = arith.constant 0 : i32
    %c0_i32_1 = arith.constant 0 : i32
    %c0_i32_2 = arith.constant 0 : i32
    return %c0_i32, %c0_i32_0, %c0_i32_1 : i32, i32, i32
  }
  func.func @transform_4(%arg0: i32, %arg1: i32) -> (i32, i32, i32) {
    %c0_i32 = arith.constant 0 : i32
    %c0_i32_0 = arith.constant 0 : i32
    %c0_i32_1 = arith.constant 0 : i32
    return %arg0, %c0_i32, %c0_i32_0 : i32, i32, i32
  }
}

</mosaic_0001>

<bundles_post_ra>
// kernel: tpu_custom_call.1
= control target key start
LH: loop header
LB: loop body
LE: loop exit
PB: predicated region body
PF: predicated region fallthrough
CT: control target
= control target key end

     0   :  { %s6564_s0 = inlined_call_operand.vmem [shape: bf16[2,384,663], index: 0, kind: input, shape index: {}]   ;;  %s6565_s1 = inlined_call_operand.vmem [shape: bf16[432,384], index: 1, kind: input, shape index: {}]   ;;  %s6566_s2 = inlined_call_operand.vmem [shape: f32[16,1], index: 2, kind: input, shape index: {}]   ;;  %s6567_s3 = inlined_call_operand.vmem [shape: f32[6,1,384], index: 3, kind: input, shape index: {}]   ;;  %s6568_s4 = inlined_call_operand.hbm [shape: f32[2,16,384], index: 4, kind: output, shape index: {}]  }
   0x1   :  { %6642 = sst [smem:[#allocation144_spill]] %s6565_s1 }
   0x2   :  { %9 = vsyncpa [#allocation5], 0 }
   0x3   :  { %11 = vsyncpa [#allocation5 + $0x1], 0  ;;  %s4218_s15 = smov 0   ;;  %s4220_s16 = smov 0  }
   0x4   :  { %s4222_s17 = smov 0   ;;  %s4224_s18 = smov 0  }
   0x5   :  { %s4226_s19 = smov 0   ;;  %s4228_s20 = smov 0  }
   0x6   :  { %s4230_s21 = smov 0   ;;  %s4232_s22 = smov 0  }
   0x7   :  { %s4234_s23 = smov 0   ;;  %s4236_s24 = smov 0  }
   0x8 LB: > { %6643 = sst [smem:[#allocation7_spill]] %s4146_s23  ;;  %s3698_s25 = sadd.s32 4294967295, %s4150_s24   ;;  %s4150_s24 = sphi %s4236_s24, %s17_s24   ;;  %s4146_s23 = sphi %s4234_s23, %s6939_s23   ;;  %s4142_s22 = sphi %s4232_s22, %s6946_s22   ;;  %s4138_s21 = sphi %s4230_s21, %s6937_s21   ;;  %s4134_s20 = sphi %s4228_s20, %s6945_s20   ;;  %s4130_s19 = sphi %s4226_s19, %s6944_s19   ;;  %s4126_s18 = sphi %s4224_s18, %s6943_s18   ;;  %s4122_s17 = sphi %s4222_s17, %s6942_s17   ;;  %s4118_s16 = sphi %s4220_s16, %s6941_s16   ;;  %s4114_s15 = sphi %s4218_s15, %s6940_s15  }
   0x9   : > { %s3699_s26 = sadd.s32 4294967294, %s4150_s24   ;;  %s26_s27 = sadd.s32 1, %s4142_s22 }
   0xa   : > { %s29_s28 = sadd.s32 1, %s4146_s23  ;;  %p27_p0 = scmp.ge.s32.totalorder %s26_s27, 3 }
   0xb   : > { %s64_s29 = sadd.s32 1, %s4130_s19  ;;  %p71_p1 = scmp.ne.s32.totalorder %s4130_s19, %s4126_s18 }
   0xc   : > { %p72_p2 = scmp.eq.s32.totalorder %s4150_s24, 0  ;;  %s6948_s27 = smov (%p27_p0, %s26_s27), 0 }
   0xd   : > { %6644 = sst [smem:[#allocation8_spill]] %s6948_s27  ;;  %s6950_s28 = smov (!%p27_p0, %s29_s28), %s4146_s23 }
   0xe   : > { %s61_s30 = ssub.s32 %s4142_s22, %s6948_s27  ;;  %p4281_p3 = por %p72_p2, %p71_p1 }
   0xf   : > { %p31_p4 = scmp.ge.s32.totalorder %s6950_s28, 2  ;;  %p62_p5 = scmp.eq.s32.totalorder %s61_s30, 0 }
  0x10   : > { %s132_s6 = sadd.s32 1, %s4122_s17  ;;  %p142_p6 = scmp.ne.s32.totalorder %s4122_s17, %s4118_s16 }
  0x11   : > { %s6952_s28 = smov (%p31_p4, %s6950_s28), 0  ;;  %p143_p7 = scmp.eq.s32.totalorder %s3698_s25, 5 }
  0x12   : > { %6646 = sst [smem:[#allocation9_spill]] %s6952_s28  ;;  %s129_s8 = ssub.s32 %s4146_s23, %s6952_s28 }
  0x13   : > { %s4291_s7 = scalar_select %p62_p5, %s4130_s19, %s64_s29  }
  0x14   : > { %p130_p8 = scmp.eq.s32.totalorder %s129_s8, 0  ;;  %p148_p9 = scmp.ne.s32.totalorder %s4118_s16, %s4114_s15 }
  0x15   : > { %p4297_p10 = por %p143_p7, %p142_p6  ;;  %p149_p11 = scmp.eq.s32.totalorder %s3699_s26, 5 }
  0x16   : > { %s4302_s10 = scalar_select %p130_p8, %s4122_s17, %s132_s6  }
  0x17   : > { %p4304_p12 = por %p149_p11, %p148_p9  ;;  %p3701_p13 = scmp.ge.s32.totalorder %s4150_s24, 6 }
  0x19   : > { %171 = sbr.rel (%p3701_p13) target bundleno = 78 (0x4e), region = 24 }
  0x20   : > { %188 = sbr.rel (!%p4281_p3) target bundleno = 78 (0x4e), region = 32  ;;  %s190_s12 = sand.u32 (%p4281_p3), 1, %s4130_s19  }
  0x21   : > { %s3702_s13 = sshll.u32 (%p4281_p3), %s4142_s22, 2  ;;  %s3807_s14 = smul.u32 (%p4281_p3), 216, %s190_s12 }
  0x22   : > { %s6649_s1 = sld [smem:[#allocation144_spill]] (%p4281_p3) }
  0x23   : > { %s4323_s30 = scalar_lea.vmem (%p4281_p3), [#allocation3], %s3807_s14 }
  0x28   : > { %s4316_s26 = scalar_lea.vmem %s6649_s1, %s3702_s13 }
  0x29   : > { %v210_v0 = vld [vmem:[%s4316_s26] sm:$0xf]  ;;  %v212_v1 = vld [vmem:[%s4316_s26 + $0xc] sm:$0xf]  ;;  %v214_v2 = vld [vmem:[%s4316_s26 + $0x18] sm:$0xf] }
  0x2a   : > { %v216_v3 = vld [vmem:[%s4316_s26 + $0x24] sm:$0xf]  ;;  %v218_v4 = vld [vmem:[%s4316_s26 + $0x30] sm:$0xf]  ;;  %211 = vst [vmem:[%s4323_s30] sm:$0xf] %v210_v0 }
  0x2b   : > { %213 = vst [vmem:[%s4323_s30 + $0x4] sm:$0xf] %v212_v1  ;;  %215 = vst [vmem:[%s4323_s30 + $0x8] sm:$0xf] %v214_v2  ;;  %v220_v5 = vld [vmem:[%s4316_s26 + $0x3c] sm:$0xf] }
  0x2c   : > { %217 = vst [vmem:[%s4323_s30 + $0xc] sm:$0xf] %v216_v3  ;;  %219 = vst [vmem:[%s4323_s30 + $0x10] sm:$0xf] %v218_v4  ;;  %v222_v6 = vld [vmem:[%s4316_s26 + $0x48] sm:$0xf] }
  0x2d   : > { %v224_v7 = vld [vmem:[%s4316_s26 + $0x54] sm:$0xf]  ;;  %221 = vst [vmem:[%s4323_s30 + $0x14] sm:$0xf] %v220_v5  ;;  %223 = vst [vmem:[%s4323_s30 + $0x18] sm:$0xf] %v222_v6 }
  0x2e   : > { %225 = vst [vmem:[%s4323_s30 + $0x1c] sm:$0xf] %v224_v7  ;;  %v226_v8 = vld [vmem:[%s4316_s26 + $0x60] sm:$0xf]  ;;  %v228_v9 = vld [vmem:[%s4316_s26 + $0x6c] sm:$0xf] }
  0x2f   : > { %v230_v10 = vld [vmem:[%s4316_s26 + $0x78] sm:$0xf]  ;;  %227 = vst [vmem:[%s4323_s30 + $0x20] sm:$0xf] %v226_v8  ;;  %229 = vst [vmem:[%s4323_s30 + $0x24] sm:$0xf] %v228_v9 }
  0x30   : > { %231 = vst [vmem:[%s4323_s30 + $0x28] sm:$0xf] %v230_v10  ;;  %v232_v11 = vld [vmem:[%s4316_s26 + $0x84] sm:$0xf]  ;;  %v234_v12 = vld [vmem:[%s4316_s26 + $0x90] sm:$0xf] }
  0x31   : > { %v236_v13 = vld [vmem:[%s4316_s26 + $0x9c] sm:$0xf]  ;;  %233 = vst [vmem:[%s4323_s30 + $0x2c] sm:$0xf] %v232_v11  ;;  %235 = vst [vmem:[%s4323_s30 + $0x30] sm:$0xf] %v234_v12 }
  0x32   : > { %237 = vst [vmem:[%s4323_s30 + $0x34] sm:$0xf] %v236_v13  ;;  %v238_v14 = vld [vmem:[%s4316_s26 + $0xa8] sm:$0xf]  ;;  %v240_v15 = vld [vmem:[%s4316_s26 + $0xb4] sm:$0xf] }
  0x33   : > { %v242_v16 = vld [vmem:[%s4316_s26 + $0xc0] sm:$0xf]  ;;  %239 = vst [vmem:[%s4323_s30 + $0x38] sm:$0xf] %v238_v14  ;;  %241 = vst [vmem:[%s4323_s30 + $0x3c] sm:$0xf] %v240_v15 }
  0x34   : > { %243 = vst [vmem:[%s4323_s30 + $0x40] sm:$0xf] %v242_v16  ;;  %v244_v17 = vld [vmem:[%s4316_s26 + $0xcc] sm:$0xf]  ;;  %v246_v18 = vld [vmem:[%s4316_s26 + $0xd8] sm:$0xf] }
  0x35   : > { %v248_v19 = vld [vmem:[%s4316_s26 + $0xe4] sm:$0xf]  ;;  %245 = vst [vmem:[%s4323_s30 + $0x44] sm:$0xf] %v244_v17  ;;  %247 = vst [vmem:[%s4323_s30 + $0x48] sm:$0xf] %v246_v18 }
  0x36   : > { %249 = vst [vmem:[%s4323_s30 + $0x4c] sm:$0xf] %v248_v19  ;;  %v250_v20 = vld [vmem:[%s4316_s26 + $0xf0] sm:$0xf]  ;;  %v252_v21 = vld [vmem:[%s4316_s26 + $0xfc] sm:$0xf] }
  0x37   : > { %v254_v22 = vld [vmem:[%s4316_s26 + $0x108] sm:$0xf]  ;;  %251 = vst [vmem:[%s4323_s30 + $0x50] sm:$0xf] %v250_v20  ;;  %253 = vst [vmem:[%s4323_s30 + $0x54] sm:$0xf] %v252_v21 }
  0x38   : > { %255 = vst [vmem:[%s4323_s30 + $0x58] sm:$0xf] %v254_v22  ;;  %v256_v23 = vld [vmem:[%s4316_s26 + $0x114] sm:$0xf]  ;;  %v258_v24 = vld [vmem:[%s4316_s26 + $0x120] sm:$0xf] }
  0x39   : > { %v260_v25 = vld [vmem:[%s4316_s26 + $0x12c] sm:$0xf]  ;;  %257 = vst [vmem:[%s4323_s30 + $0x5c] sm:$0xf] %v256_v23  ;;  %259 = vst [vmem:[%s4323_s30 + $0x60] sm:$0xf] %v258_v24 }
  0x3a   : > { %261 = vst [vmem:[%s4323_s30 + $0x64] sm:$0xf] %v260_v25  ;;  %v262_v26 = vld [vmem:[%s4316_s26 + $0x138] sm:$0xf]  ;;  %v264_v27 = vld [vmem:[%s4316_s26 + $0x144] sm:$0xf] }
  0x3b   : > { %v266_v28 = vld [vmem:[%s4316_s26 + $0x150] sm:$0xf]  ;;  %263 = vst [vmem:[%s4323_s30 + $0x68] sm:$0xf] %v262_v26  ;;  %265 = vst [vmem:[%s4323_s30 + $0x6c] sm:$0xf] %v264_v27 }
  0x3c   : > { %267 = vst [vmem:[%s4323_s30 + $0x70] sm:$0xf] %v266_v28  ;;  %v268_v29 = vld [vmem:[%s4316_s26 + $0x15c] sm:$0xf]  ;;  %v270_v30 = vld [vmem:[%s4316_s26 + $0x168] sm:$0xf] }
  0x3d   : > { %v272_v31 = vld [vmem:[%s4316_s26 + $0x174] sm:$0xf]  ;;  %269 = vst [vmem:[%s4323_s30 + $0x74] sm:$0xf] %v268_v29  ;;  %271 = vst [vmem:[%s4323_s30 + $0x78] sm:$0xf] %v270_v30 }
  0x3e   : > { %273 = vst [vmem:[%s4323_s30 + $0x7c] sm:$0xf] %v272_v31  ;;  %v274_v32 = vld [vmem:[%s4316_s26 + $0x180] sm:$0xf]  ;;  %v276_v33 = vld [vmem:[%s4316_s26 + $0x18c] sm:$0xf] }
  0x3f   : > { %v278_v34 = vld [vmem:[%s4316_s26 + $0x198] sm:$0xf]  ;;  %275 = vst [vmem:[%s4323_s30 + $0x80] sm:$0xf] %v274_v32  ;;  %277 = vst [vmem:[%s4323_s30 + $0x84] sm:$0xf] %v276_v33 }
  0x40   : > { %279 = vst [vmem:[%s4323_s30 + $0x88] sm:$0xf] %v278_v34  ;;  %v280_v35 = vld [vmem:[%s4316_s26 + $0x1a4] sm:$0xf]  ;;  %v282_v36 = vld [vmem:[%s4316_s26 + $0x1b0] sm:$0xf] }
  0x41   : > { %v284_v37 = vld [vmem:[%s4316_s26 + $0x1bc] sm:$0xf]  ;;  %281 = vst [vmem:[%s4323_s30 + $0x8c] sm:$0xf] %v280_v35  ;;  %283 = vst [vmem:[%s4323_s30 + $0x90] sm:$0xf] %v282_v36 }
  0x42   : > { %285 = vst [vmem:[%s4323_s30 + $0x94] sm:$0xf] %v284_v37  ;;  %v286_v38 = vld [vmem:[%s4316_s26 + $0x1c8] sm:$0xf]  ;;  %v288_v39 = vld [vmem:[%s4316_s26 + $0x1d4] sm:$0xf] }
  0x43   : > { %v290_v40 = vld [vmem:[%s4316_s26 + $0x1e0] sm:$0xf]  ;;  %287 = vst [vmem:[%s4323_s30 + $0x98] sm:$0xf] %v286_v38  ;;  %289 = vst [vmem:[%s4323_s30 + $0x9c] sm:$0xf] %v288_v39 }
  0x44   : > { %291 = vst [vmem:[%s4323_s30 + $0xa0] sm:$0xf] %v290_v40  ;;  %v292_v41 = vld [vmem:[%s4316_s26 + $0x1ec] sm:$0xf]  ;;  %v294_v42 = vld [vmem:[%s4316_s26 + $0x1f8] sm:$0xf] }
  0x45   : > { %v296_v43 = vld [vmem:[%s4316_s26 + $0x204] sm:$0xf]  ;;  %293 = vst [vmem:[%s4323_s30 + $0xa4] sm:$0xf] %v292_v41  ;;  %295 = vst [vmem:[%s4323_s30 + $0xa8] sm:$0xf] %v294_v42 }
  0x46   : > { %297 = vst [vmem:[%s4323_s30 + $0xac] sm:$0xf] %v296_v43  ;;  %v298_v44 = vld [vmem:[%s4316_s26 + $0x210] sm:$0xf]  ;;  %v300_v45 = vld [vmem:[%s4316_s26 + $0x21c] sm:$0xf] }
  0x47   : > { %v302_v46 = vld [vmem:[%s4316_s26 + $0x228] sm:$0xf]  ;;  %299 = vst [vmem:[%s4323_s30 + $0xb0] sm:$0xf] %v298_v44  ;;  %301 = vst [vmem:[%s4323_s30 + $0xb4] sm:$0xf] %v300_v45 }
  0x48   : > { %303 = vst [vmem:[%s4323_s30 + $0xb8] sm:$0xf] %v302_v46  ;;  %v304_v47 = vld [vmem:[%s4316_s26 + $0x234] sm:$0xf]  ;;  %v306_v48 = vld [vmem:[%s4316_s26 + $0x240] sm:$0xf] }
  0x49   : > { %v308_v49 = vld [vmem:[%s4316_s26 + $0x24c] sm:$0xf]  ;;  %305 = vst [vmem:[%s4323_s30 + $0xbc] sm:$0xf] %v304_v47  ;;  %307 = vst [vmem:[%s4323_s30 + $0xc0] sm:$0xf] %v306_v48 }
  0x4a   : > { %309 = vst [vmem:[%s4323_s30 + $0xc4] sm:$0xf] %v308_v49  ;;  %v310_v50 = vld [vmem:[%s4316_s26 + $0x258] sm:$0xf]  ;;  %v312_v51 = vld [vmem:[%s4316_s26 + $0x264] sm:$0xf] }
  0x4b   : > { %v314_v52 = vld [vmem:[%s4316_s26 + $0x270] sm:$0xf]  ;;  %311 = vst [vmem:[%s4323_s30 + $0xc8] sm:$0xf] %v310_v50  ;;  %313 = vst [vmem:[%s4323_s30 + $0xcc] sm:$0xf] %v312_v51 }
  0x4c   : > { %315 = vst [vmem:[%s4323_s30 + $0xd0] sm:$0xf] %v314_v52  ;;  %v316_v53 = vld [vmem:[%s4316_s26 + $0x27c] sm:$0xf] }
  0x4d   : > { %317 = vst [vmem:[%s4323_s30 + $0xd4] sm:$0xf] %v316_v53 }
  0x4e PF: > { %p3703_p0 = scmp.ge.s32.totalorder %s4150_s24, 1  ;;  %p447_p1 = scmp.lt.s32.totalorder %s4150_s24, 7 }
  0x50   : > { %p448_p2 = pnand %p3703_p0, %p447_p1 }
  0x52   : > { %451 = sbr.rel (%p448_p2) target bundleno = 1063 (0x427), region = 73 }
  0x59   : > { %s454_s5 = sand.u32 1, %s4126_s18   ;;  %s6575_s6 = sand.u32 1, %s4118_s16  }
  0x5a   : > { %s3808_s8 = smul.u32 216, %s454_s5  ;;  %s3704_s12 = sshll.u32 %s4134_s20, 4 }
  0x5b   : > { %s3809_s13 = smul.u32 48, %s6575_s6  ;;  %p490_p3 = scmp.lt.s32.totalorder %s4138_s21, 1 }
  0x5c   : > { %p492_p4 = scmp.lt.s32.totalorder %s3704_s12, 47  ;;  %s4442_s23 = scalar_lea.vmem [#allocation3], %s3808_s8 }
  0x5d   : > { %s491_s14 = scalar_select %p490_p3, %s4138_s21, 1 }
  0x5e   : > { %s6954_s12 = smov (!%p492_p4, %s3704_s12), 47  ;;  %s4444_s18 = scalar_lea.vmem [#allocation4], %s3809_s13 }
  0x5f   : > { %s3811_s25 = smul.u32 288, %s491_s14  ;;  %p3706_p5 = scmp.ne.s32.totalorder %s4134_s20, 0 }
  0x60   : > { %s3810_s29 = smul.u32 6, %s6954_s12  ;;  %v4152_v54 = vmov (!%p3706_p5), 0.0  }
  0x61   : > { %504 = sbr.rel (%p3706_p5) target bundleno = 104 (0x68), region = 81  ;;  %505 = vst [vmem:[#allocation2] sm:$0xff] (!%p3706_p5), %v4152_v54  ;;  %506 = vst [vmem:[#allocation2 + $0x8] sm:$0xff] (!%p3706_p5), %v4152_v54 }
  0x62   : > { %s496_s26 = sadd.s32 %s3811_s25, %s3810_s29  ;;  %507 = vst [vmem:[#allocation2 + $0x10] sm:$0xff] (!%p3706_p5), %v4152_v54  ;;  %508 = vst [vmem:[#allocation2 + $0x18] sm:$0xff] (!%p3706_p5), %v4152_v54 }
  0x63   : > { %s3705_s30 = sshll.u32 %s496_s26, 2  ;;  %509 = vst [vmem:[#allocation2 + $0x20] sm:$0xff] (!%p3706_p5), %v4152_v54  ;;  %510 = vst [vmem:[#allocation2 + $0x28] sm:$0xff] (!%p3706_p5), %v4152_v54 }
  0x64   : > { %s4440_s27 = scalar_lea.vmem %s6564_s0, %s3705_s30 }
  0x68 PF: > { %v3940_v55 = vld [vmem:[%s4440_s27 + $0x4] ss:$24 sps:$4 sm:$0xff]   ;;  %v3942_v56 = vld [vmem:[%s4440_s27] ss:$24 sps:$4 sm:$0xff]   ;;  %v6579_v57 = vmov 0   ;;  %v1819_v5 = vlaneseq  ;;  %v4468_v12 = vld [vmem:[%s4442_s23] sm:$0xff]  }
  0x69   : > { %1047 = vmatprep.mubr.bf16.mxu0 %v6579_v57  ;;  %1159 = vmatprep.mubr.bf16.mxu1 %v6579_v57  ;;  %v3943_v58 = vld [vmem:[%s4440_s27 + $0x34] ss:$24 sps:$4 sm:$0xff]   ;;  %v3945_v59 = vld [vmem:[%s4440_s27 + $0x30] ss:$24 sps:$4 sm:$0xff]   ;;  %v3946_v60 = vld [vmem:[%s4440_s27 + $0x64] ss:$24 sps:$4 sm:$0xff]  }
  0x6a   : > { %1015 = vmatprep.subr.bf16.mxu0 %v3940_v55  ;;  %3791 = vmatprep.subr.bf16.mxu1 %v3940_v55  ;;  %v3948_v61 = vld [vmem:[%s4440_s27 + $0x60] ss:$24 sps:$4 sm:$0xff]   ;;  %v3949_v62 = vld [vmem:[%s4440_s27 + $0x94] ss:$24 sps:$4 sm:$0xff]   ;;  %v3951_v63 = vld [vmem:[%s4440_s27 + $0x90] ss:$24 sps:$4 sm:$0xff]  }
  0x6b   : > { %1016 = vmatpush1.bf16.msra.mxu0 %v3942_v56  ;;  %3799 = vmatpush1.bf16.msra.mxu1 %v3942_v56  ;;  %v3952_v0 = vld [vmem:[%s4440_s27 + $0xc4] ss:$24 sps:$4 sm:$0xff]   ;;  %v3954_v1 = vld [vmem:[%s4440_s27 + $0xc0] ss:$24 sps:$4 sm:$0xff]   ;;  %v3955_v2 = vld [vmem:[%s4440_s27 + $0xf4] ss:$24 sps:$4 sm:$0xff]  }
  0x6c   : > { %1017 = vmatprep.subr.bf16.mxu0 %v3943_v58  ;;  %3792 = vmatprep.subr.bf16.mxu1 %v3943_v58  ;;  %v3957_v3 = vld [vmem:[%s4440_s27 + $0xf0] ss:$24 sps:$4 sm:$0xff]   ;;  %v3958_v4 = vld [vmem:[%s4440_s27 + $0x124] ss:$24 sps:$4 sm:$0xff]   ;;  %v3960_v6 = vld [vmem:[%s4440_s27 + $0x120] ss:$24 sps:$4 sm:$0xff]  }
  0x6d   : > { %v3961_v7 = vld [vmem:[%s4440_s27 + $0x154] ss:$24 sps:$4 sm:$0xff]   ;;  %v1820_v8 = vshrl.u32 %v1819_v5, 7  ;;  %v3963_v9 = vld [vmem:[%s4440_s27 + $0x150] ss:$24 sps:$4 sm:$0xff]   ;;  %v4471_v13 = vld [vmem:[%s4442_s23 + $0x70] sm:$0xff]  }
  0x6e   : > { %v3968_v10 = vld [vmem:[%s4440_s27 + $0xc] ss:$24 sps:$4 sm:$0xff]   ;;  %v3966_v16 = vld [vmem:[%s4440_s27 + $0x8] ss:$24 sps:$4 sm:$0xff]   ;;  %v3976_v18 = vld [vmem:[%s4440_s27 + $0x3c] ss:$24 sps:$4 sm:$0xff]  }
  0x6f   : > { %1018 = vmatpush1.bf16.msra.mxu0 %v3945_v59  ;;  %3800 = vmatpush1.bf16.msra.mxu1 %v3945_v59  ;;  %v3971_v11 = vld [vmem:[%s4440_s27 + $0x14] ss:$24 sps:$4 sm:$0xff]   ;;  %v4473_v14 = vsub.s32 2, %v1820_v8  ;;  %v4475_v15 = vsub.s32 0, %v1820_v8  ;;  %v3969_v17 = vld [vmem:[%s4440_s27 + $0x10] ss:$24 sps:$4 sm:$0xff]  }
  0x70   : > { %1019 = vmatprep.subr.bf16.mxu0 %v3946_v60  ;;  %3793 = vmatprep.subr.bf16.mxu1 %v3946_v60  ;;  %v3979_v19 = vld [vmem:[%s4440_s27 + $0x44] ss:$24 sps:$4 sm:$0xff]   ;;  %v3974_v21 = vld [vmem:[%s4440_s27 + $0x38] ss:$24 sps:$4 sm:$0xff]   ;;  %v3989_v27 = vld [vmem:[%s4440_s27 + $0x74] ss:$24 sps:$4 sm:$0xff]  }
  0x71   : > { %v3782_v20 = vld [vmem:[%s6567_s3 + $0x6] sm:$0x7]  ;;  %v3977_v24 = vld [vmem:[%s4440_s27 + $0x40] ss:$24 sps:$4 sm:$0xff]   ;;  %s4154_s5 = smov 23   ;;  %v4509_v30 = vsub.s32 1, %v1820_v8 }
  0x72   : > { %v4488_v22 = vrot.slane %v3782_v20, %v4473_v14  ;;  %v4491_v23 = vrot.slane %v3782_v20, %v4475_v15  ;;  %v3986_v25 = vld [vmem:[%s4440_s27 + $0x6c] ss:$24 sps:$4 sm:$0xff]   ;;  %v4498_v26 = vld [vmem:[%s4442_s23 + $0x8] sm:$0xff]   ;;  %v3984_v29 = vld [vmem:[%s4440_s27 + $0x68] ss:$24 sps:$4 sm:$0xff]   ;;  %s4155_s13 = smov 27  }
  0x73   : > { %1020 = vmatpush1.bf16.msra.mxu0 %v3948_v61  ;;  %3801 = vmatpush1.bf16.msra.mxu1 %v3948_v61  ;;  %v4502_v28 = vld [vmem:[%s4442_s23 + $0x78] sm:$0xff]   ;;  %v3994_v33 = vld [vmem:[%s4440_s27 + $0x9c] ss:$24 sps:$4 sm:$0xff]   ;;  %v4523_v36 = vrot.slane %v3782_v20, %v4509_v30  ;;  %v3992_v37 = vld [vmem:[%s4440_s27 + $0x98] ss:$24 sps:$4 sm:$0xff]   ;;  %s4156_s14 = smov 57  }
  0x74   : > { %1021 = vmatprep.subr.bf16.mxu0 %v3949_v62  ;;  %3794 = vmatprep.subr.bf16.mxu1 %v3949_v62  ;;  %v3783_v31 = vld [vmem:[%s6567_s3 + $0x9] sm:$0x7]  ;;  %v3999_v34 = vld [vmem:[%s4440_s27 + $0xa4] ss:$24 sps:$4 sm:$0xff]   ;;  %v3997_v39 = vld [vmem:[%s4440_s27 + $0xa0] ss:$24 sps:$4 sm:$0xff]  }
  0x75   : > { %1835 = vrot.lane.b32.xlu1 %v4488_v22, %s4154_s5  ;;  %1831 = vrot.lane.b32.xlu0 %v4491_v23, %s4154_s5  ;;  %v3987_v32 = vld [vmem:[%s4440_s27 + $0x70] ss:$24 sps:$4 sm:$0xff]   ;;  %v4520_v35 = vrot.slane %v3783_v31, %v4475_v15  ;;  %v4529_v38 = vld [vmem:[%s4442_s23 + $0x10] sm:$0xff]   ;;  %v4542_v44 = vrot.slane %v3783_v31, %v4473_v14  ;;  %v4546_v46 = vrot.slane %v3783_v31, %v4509_v30  ;;  %s4157_s25 = smov 61   ;;  %s4158_s29 = smov 91   ;;  %vm2944_vm0 = vcmask 793600  }
  0x76   : > { %v4004_v40 = vld [vmem:[%s4440_s27 + $0xcc] ss:$24 sps:$4 sm:$0xff]   ;;  %v4002_v43 = vld [vmem:[%s4440_s27 + $0xc8] ss:$24 sps:$4 sm:$0xff]   ;;  %v4014_v47 = vld [vmem:[%s4440_s27 + $0xfc] ss:$24 sps:$4 sm:$0xff]  }
  0x77   : > { %1022 = vmatpush1.bf16.msra.mxu0 %v3951_v63  ;;  %3802 = vmatpush1.bf16.msra.mxu1 %v3951_v63  ;;  %v4009_v41 = vld [vmem:[%s4440_s27 + $0xd4] ss:$24 sps:$4 sm:$0xff]   ;;  %v4007_v45 = vld [vmem:[%s4440_s27 + $0xd0] ss:$24 sps:$4 sm:$0xff]   ;;  %v4017_v48 = vld [vmem:[%s4440_s27 + $0x104] ss:$24 sps:$4 sm:$0xff]  }
  0x78   : > { %1023 = vmatprep.subr.bf16.mxu0 %v3952_v0  ;;  %3795 = vmatprep.subr.bf16.mxu1 %v3952_v0  ;;  %v4535_v42 = vld [vmem:[%s4442_s23 + $0x80] sm:$0xff]   ;;  %v4555_v49 = vld [vmem:[%s4442_s23 + $0x18] sm:$0xff]   ;;  %v4562_v52 = vld [vmem:[%s4442_s23 + $0x88] sm:$0xff]   ;;  %s4161_s8 = smov 11   ;;  %s4162_s12 = smov 56   ;;  %vm2747_vm1 = vcmask 875520  }
  0x79   : > { %1914 = vrot.lane.b32.xlu1 %v4520_v35, %s4155_s13  ;;  %1833 = vrot.lane.b32.xlu0 %v4523_v36, %s4154_s5  ;;  %v4012_v50 = vld [vmem:[%s4440_s27 + $0xf8] ss:$24 sps:$4 sm:$0xff]   ;;  %v4020_v53 = vld [vmem:[%s4440_s27 + $0x128] ss:$24 sps:$4 sm:$0xff]   ;;  %s4160_s5 = smov 5   ;;  %s6581_s28 = smov 97  }
  0x7a   : > { %v4015_v51 = vld [vmem:[%s4440_s27 + $0x100] ss:$24 sps:$4 sm:$0xff]   ;;  %v4022_v54 = vld [vmem:[%s4440_s27 + $0x12c] ss:$24 sps:$4 sm:$0xff]   ;;  %v4032_v56 = vld [vmem:[%s4440_s27 + $0x15c] ss:$24 sps:$4 sm:$0xff]  }
  0x7b   : > { %1024 = vmatpush1.bf16.msra.mxu0 %v3954_v1  ;;  %3803 = vmatpush1.bf16.msra.mxu1 %v3954_v1  ;;  %v4027_v55 = vld [vmem:[%s4440_s27 + $0x134] ss:$24 sps:$4 sm:$0xff]   ;;  %v4025_v58 = vld [vmem:[%s4440_s27 + $0x130] ss:$24 sps:$4 sm:$0xff]   ;;  %v4037_v59 = vld [vmem:[%s4440_s27 + $0x164] ss:$24 sps:$4 sm:$0xff]  }
  0x7c   : > { %1025 = vmatprep.subr.bf16.mxu0 %v3955_v2  ;;  %3796 = vmatprep.subr.bf16.mxu1 %v3955_v2  ;;  %v4030_v60 = vld [vmem:[%s4440_s27 + $0x158] ss:$24 sps:$4 sm:$0xff]   ;;  %v4598_v1 = vld [vmem:[%s4442_s23 + $0x98] sm:$0xff]   ;;  %s6587_s26 = smov 41   ;;  %s6585_s30 = smov 38   ;;  %vm1920_vm2 = vcmask 220160  }
  0x7d   : > { %1918 = vrot.lane.b32.xlu1 %v4542_v44, %s4155_s13  ;;  %1916 = vrot.lane.b32.xlu0 %v4546_v46, %s4155_s13  ;;  %v4580_v61 = vld [vmem:[%s4442_s23 + $0x20] sm:$0xff]   ;;  %v4583_v62 = vld [vmem:[%s4442_s23 + $0x90] sm:$0xff]   ;;  %s4163_s13 = smov 62   ;;  %s4176_s1 = smov 94   ;;  %vm1988_vm3 = vcmask 465920   ;;  %vm2103_vm4 = vcmask 498688  }
  0x7e   : > { %v4035_v63 = vld [vmem:[%s4440_s27 + $0x160] ss:$24 sps:$4 sm:$0xff]   ;;  %s4159_s27 = smov 95   ;;  %v3785_v5 = vld [vmem:[%s6567_s3 + $0xc] sm:$0x7]  ;;  %s4179_s6 = smov 90  }
  0x7f   : > { %1026 = vmatpush1.bf16.msra.mxu0 %v3957_v3  ;;  %3804 = vmatpush1.bf16.msra.mxu1 %v3957_v3  ;;  %v4595_v0 = vld [vmem:[%s4442_s23 + $0x28] sm:$0xff]   ;;  %v3784_v2 = vld [vmem:[%s6567_s3 + $0x3] sm:$0x7]  ;;  %v2484_v8 = vrot.slane %v3785_v5, %v4475_v15  ;;  %vm2171_vm5 = vcmask 744448   ;;  %vm2286_vm6 = vcmask 777216   ;;  %vm2369_vm7 = vcmask 39936  }
  0x80   : > { %1027 = vmatprep.subr.bf16.mxu0 %v3958_v4  ;;  %3797 = vmatprep.subr.bf16.mxu1 %v3958_v4  ;;  %v2358_v3 = vrot.slane %v3784_v2, %v4509_v30  ;;  %v2354_v4 = vrot.slane %v3784_v2, %v4475_v15  ;;  %v4660_v20 = vld [vmem:[%s4442_s23 + $0x48] sm:$0xff]   ;;  %vm2499_vm8 = vcmask 89088   ;;  %vm2325_vm9 = vcmask 457728   ;;  %p3787_p6 = scmp.ne.s32.totalorder %s4134_s20, 2 }
  0x81   : > { %1984 = vrot.lane.b32.xlu1 %v4523_v36, %s4156_s14  ;;  %1982 = vrot.lane.b32.xlu0 %v4491_v23, %s4156_s14  ;;  %vm2679_vm10 = vcmask 506880   ;;  %vm2862_vm11 = vcmask 924672   ;;  %vm2983_vm12 = vcmask 441344   ;;  %vm1837_vm13 = vcmask 187392  }
  0x82   : > { %vm3252_vm14 = vcmask 523264   ;;  %vm1876_vm15 = vcmask 1031168  }
  0x83   : > { %1028 = vmatpush1.bf16.msra.mxu0 %v3960_v6  ;;  %3805 = vmatpush1.bf16.msra.mxu1 %v3960_v6  ;;  %v4620_v6 = vld [vmem:[%s4442_s23 + $0x30] sm:$0xff]  }
  0x84   : > { %1029 = vmatprep.subr.bf16.mxu0 %v3961_v7  ;;  %3798 = vmatprep.subr.bf16.mxu1 %v3961_v7  ;;  %v4623_v7 = vld [vmem:[%s4442_s23 + $0xa0] sm:$0xff]  }
  0x85   : > { %2097 = vrot.lane.b32.xlu1 %v4520_v35, %s4157_s25  ;;  %1986 = vrot.lane.b32.xlu0 %v4488_v22, %s4156_s14  ;;  %s4164_s14 = smov 107  }
  0x87   : > { %1030 = vmatpush1.bf16.msra.mxu0 %v3963_v9  ;;  %3806 = vmatpush1.bf16.msra.mxu1 %v3963_v9  ;;  %v2362_v9 = vrot.slane %v3784_v2, %v4473_v14 }
  0x88   : > { %1264 = vmatprep.subr.bf16.mxu1 %v3968_v10  ;;  %1567 = vmatprep.subr.bf16.mxu0 %v3971_v11  ;;  %v2492_v10 = vrot.slane %v3785_v5, %v4473_v14  ;;  %v2488_v11 = vrot.slane %v3785_v5, %v4509_v30 }
  0x89   : > { %2101 = vrot.lane.b32.xlu1 %v4542_v44, %s4157_s25  ;;  %2099 = vrot.lane.b32.xlu0 %v4546_v46, %s4157_s25  ;;  %s4165_s25 = smov 113  }
  0x8a   : > { %1048 = vmatmul.mubr.bf16.vlgmr.msra.gmra.mrb[0].mxu0 %v4468_v12  ;;  %1160 = vmatmul.mubr.bf16.vlgmr.msra.gmra.mrb[0].mxu1 %v4471_v13 }
  0x8b   : > { %1265 = vmatpush1.bf16.msra.mxu1 %v3966_v16  ;;  %1568 = vmatpush1.bf16.msra.mxu0 %v3969_v17  ;;  %v4635_v16 = vld [vmem:[%s4442_s23 + $0x38] sm:$0xff]   ;;  %v4638_v17 = vld [vmem:[%s4442_s23 + $0xa8] sm:$0xff]  }
  0x8c   : > { %1055 = vmatprep.mubr.bf16.mxu0 %v6579_v57  ;;  %1167 = vmatprep.mubr.bf16.mxu1 %v6579_v57 }
  0x8d   : > { %1266 = vmatprep.subr.bf16.mxu1 %v3976_v18  ;;  %1569 = vmatprep.subr.bf16.mxu0 %v3979_v19  ;;  %v4649_v18 = vld [vmem:[%s4442_s23 + $0x40] sm:$0xff]   ;;  %v4652_v19 = vld [vmem:[%s4442_s23 + $0xb0] sm:$0xff]  }
  0x8e   : > { %2167 = vrot.lane.b32.xlu1 %v4523_v36, %s4158_s29  ;;  %2165 = vrot.lane.b32.xlu0 %v4491_v23, %s4158_s29  ;;  %v4676_v23 = vld [vmem:[%s4442_s23 + $0x50] sm:$0xff]  }
  0x8f   : > { %1267 = vmatpush1.bf16.msra.mxu1 %v3974_v21  ;;  %1570 = vmatpush1.bf16.msra.mxu0 %v3977_v24  ;;  %v4663_v21 = vld [vmem:[%s4442_s23 + $0xb8] sm:$0xff]   ;;  %v4679_v24 = vld [vmem:[%s4442_s23 + $0xc0] sm:$0xff]  }
  0x90   : > { %1268 = vmatprep.subr.bf16.mxu1 %v3986_v25  ;;  %1571 = vmatprep.subr.bf16.mxu0 %v3989_v27 }
  0x92   : > { %1056 = vmatmul.mubr.bf16.gmra.mrb[4].mxu0 %v4498_v26  ;;  %1168 = vmatmul.mubr.bf16.gmra.mrb[4].mxu1 %v4502_v28 }
  0x93   : > { %1063 = vmatprep.mubr.bf16.mxu0 %v6579_v57  ;;  %1175 = vmatprep.mubr.bf16.mxu1 %v6579_v57 }
  0x94   : > { %1269 = vmatpush1.bf16.msra.mxu1 %v3984_v29  ;;  %1572 = vmatpush1.bf16.msra.mxu0 %v3987_v32  ;;  %v3786_v29 = vld [vmem:[%s6567_s3 + $0xf] sm:$0x7] }
  0x95   : > { %1270 = vmatprep.subr.bf16.mxu1 %v3994_v33  ;;  %1573 = vmatprep.subr.bf16.mxu0 %v3999_v34  ;;  %v3059_v32 = vrot.slane %v3786_v29, %v4475_v15  ;;  %v4695_v33 = vld [vmem:[%s4442_s23 + $0x58] sm:$0xff]   ;;  %v4698_v34 = vld [vmem:[%s4442_s23 + $0xc8] sm:$0xff]   ;;  %v3067_v36 = vrot.slane %v3786_v29, %v4473_v14 }
  0x96   : > { %2280 = vrot.lane.b32.xlu1 %v4520_v35, %s4159_s27  ;;  %2169 = vrot.lane.b32.xlu0 %v4488_v22, %s4158_s29  ;;  %v2924_v22 = vld [vmem:[%s6567_s3] sm:$0x7]  ;;  %v3063_v35 = vrot.slane %v3786_v29, %v4509_v30  ;;  %s4173_s29 = smov 124  }
  0x97   : > { %v2929_v25 = vrot.slane %v2924_v22, %v4475_v15  ;;  %v2933_v27 = vrot.slane %v2924_v22, %v4509_v30  ;;  %v2937_v31 = vrot.slane %v2924_v22, %v4473_v14  ;;  %v4711_v15 = vld [vmem:[%s4442_s23 + $0x60] sm:$0xff]   ;;  %v4714_v30 = vld [vmem:[%s4442_s23 + $0xd0] sm:$0xff]   ;;  %v4724_v14 = vld [vmem:[%s4442_s23 + $0x68] sm:$0xff]   ;;  %s4170_s23 = smov 89  }
  0x98   : > { %1271 = vmatpush1.bf16.msra.mxu1 %v3992_v37  ;;  %1574 = vmatpush1.bf16.msra.mxu0 %v3997_v39 }
  0x99   : > { %1272 = vmatprep.subr.bf16.mxu1 %v4004_v40  ;;  %1575 = vmatprep.subr.bf16.mxu0 %v4009_v41 }
  0x9a   : > { %1064 = vmatmul.mubr.bf16.gmra.mrb[8].mxu0 %v4529_v38  ;;  %1176 = vmatmul.mubr.bf16.gmra.mrb[8].mxu1 %v4535_v42 }
  0x9b   : > { %1071 = vmatprep.mubr.bf16.mxu0 %v6579_v57  ;;  %1183 = vmatprep.mubr.bf16.mxu1 %v6579_v57 }
  0x9c   : > { %1273 = vmatpush1.bf16.msra.mxu1 %v4002_v43  ;;  %1576 = vmatpush1.bf16.msra.mxu0 %v4007_v45 }
  0x9d   : > { %1274 = vmatprep.subr.bf16.mxu1 %v4014_v47  ;;  %1577 = vmatprep.subr.bf16.mxu0 %v4017_v48 }
  0x9e   : > { %2284 = vrot.lane.b32.xlu1 %v4542_v44, %s4159_s27  ;;  %2282 = vrot.lane.b32.xlu0 %v4546_v46, %s4159_s27 }
  0xa0   : > { %1275 = vmatpush1.bf16.msra.mxu1 %v4012_v50  ;;  %1578 = vmatpush1.bf16.msra.mxu0 %v4015_v51 }
  0xa1   : > { %1276 = vmatprep.subr.bf16.mxu1 %v4022_v54  ;;  %1579 = vmatprep.subr.bf16.mxu0 %v4027_v55 }
  0xa2   : > { %1072 = vmatmul.mubr.bf16.gmra.mrb[12].mxu0 %v4555_v49  ;;  %1184 = vmatmul.mubr.bf16.gmra.mrb[12].mxu1 %v4562_v52 }
  0xa3   : > { %1079 = vmatprep.mubr.bf16.mxu0 %v6579_v57  ;;  %1191 = vmatprep.mubr.bf16.mxu1 %v6579_v57 }
  0xa4   : > { %1277 = vmatpush1.bf16.msra.mxu1 %v4020_v53  ;;  %1580 = vmatpush1.bf16.msra.mxu0 %v4025_v58 }
  0xa5   : > { %1278 = vmatprep.subr.bf16.mxu1 %v4032_v56  ;;  %1581 = vmatprep.subr.bf16.mxu0 %v4037_v59 }
  0xa6   : > { %2365 = vrot.lane.b32.xlu1 %v2358_v3, %s4160_s5  ;;  %2363 = vrot.lane.b32.xlu0 %v2354_v4, %s4160_s5 }
  0xa8   : > { %1279 = vmatpush1.bf16.msra.mxu1 %v4030_v60  ;;  %1582 = vmatpush1.bf16.msra.mxu0 %v4035_v63 }
  0xaa   : > { %1080 = vmatmul.mubr.bf16.gmra.mrb[16].mxu0 %v4580_v61  ;;  %1192 = vmatmul.mubr.bf16.gmra.mrb[16].mxu1 %v4583_v62 }
  0xab   : > { %1087 = vmatprep.mubr.bf16.mxu0 %v6579_v57  ;;  %1201 = vmatprep.mubr.bf16.mxu1 %v6579_v57 }
  0xac   : > { %2493 = vrot.lane.b32.xlu1 %v2484_v8, %s4161_s8  ;;  %2367 = vrot.lane.b32.xlu0 %v2362_v9, %s4160_s5  ;;  %s6583_s5 = smov 54  }
  0xb0   : > { %2497 = vrot.lane.b32.xlu1 %v2492_v10, %s4161_s8  ;;  %2495 = vrot.lane.b32.xlu0 %v2488_v11, %s4161_s8 }
  0xb2   : > { %1088 = vmatmul.mubr.bf16.gmra.mrb[20].mxu0 %v4595_v0  ;;  %1202 = vmatmul.mubr.bf16.gmra.mrb[20].mxu1 %v4598_v1 }
  0xb3   : > { %1095 = vmatprep.mubr.bf16.mxu0 %v6579_v57  ;;  %1211 = vmatprep.mubr.bf16.mxu1 %v6579_v57 }
  0xb4   : > { %2563 = vrot.lane.b32.xlu1 %v2358_v3, %s4162_s12  ;;  %2561 = vrot.lane.b32.xlu0 %v2354_v4, %s4162_s12 }
  0xb8   : > { %2673 = vrot.lane.b32.xlu1 %v2484_v8, %s4163_s13  ;;  %2565 = vrot.lane.b32.xlu0 %v2362_v9, %s4162_s12 }
  0xba   : > { %1096 = vmatmul.mubr.bf16.gmra.mrb[24].mxu0 %v4620_v6  ;;  %1212 = vmatmul.mubr.bf16.gmra.mrb[24].mxu1 %v4623_v7 }
  0xbb   : > { %1103 = vmatprep.mubr.bf16.mxu0 %v6579_v57  ;;  %1221 = vmatprep.mubr.bf16.mxu1 %v6579_v57 }
  0xbc   : > { %2677 = vrot.lane.b32.xlu1 %v2492_v10, %s4163_s13  ;;  %2675 = vrot.lane.b32.xlu0 %v2488_v11, %s4163_s13  ;;  %s4168_s13 = smov 64  }
  0xc0   : > { %2743 = vrot.lane.b32.xlu1 %v2358_v3, %s4164_s14  ;;  %2741 = vrot.lane.b32.xlu0 %v2354_v4, %s4164_s14 }
  0xc2   : > { %1104 = vmatmul.mubr.bf16.gmra.mrb[28].mxu0 %v4635_v16  ;;  %1222 = vmatmul.mubr.bf16.gmra.mrb[28].mxu1 %v4638_v17 }
  0xc3   : > { %1111 = vmatprep.mubr.bf16.mxu0 %v6579_v57  ;;  %1229 = vmatprep.mubr.bf16.mxu1 %v6579_v57 }
  0xc4   : > { %2856 = vrot.lane.b32.xlu1 %v2484_v8, %s4165_s25  ;;  %2745 = vrot.lane.b32.xlu0 %v2362_v9, %s4164_s14 }
  0xc8   : > { %2860 = vrot.lane.b32.xlu1 %v2492_v10, %s4165_s25  ;;  %2858 = vrot.lane.b32.xlu0 %v2488_v11, %s4165_s25  ;;  %s6589_s25 = smov 44  }
  0xca   : > { %1112 = vmatmul.mubr.bf16.gmra.mrb[32].mxu0 %v4649_v18  ;;  %1230 = vmatmul.mubr.bf16.gmra.mrb[32].mxu1 %v4652_v19 }
  0xcb   : > { %1119 = vmatprep.mubr.bf16.mxu0 %v6579_v57  ;;  %1237 = vmatprep.mubr.bf16.mxu1 %v6579_v57 }
  0xcc   : > { %2938 = vrot.lane.b32.xlu1 %v2929_v25, %s6581_s28  ;;  %2940 = vrot.lane.b32.xlu0 %v2933_v27, %s6581_s28 }
  0xd0   : > { %2942 = vrot.lane.b32.xlu1 %v2937_v31, %s6581_s28  ;;  %3068 = vrot.lane.b32.xlu0 %v3059_v32, %s4164_s14 }
  0xd2   : > { %1120 = vmatmul.mubr.bf16.gmra.mrb[36].mxu0 %v4660_v20  ;;  %1238 = vmatmul.mubr.bf16.gmra.mrb[36].mxu1 %v4663_v21 }
  0xd3   : > { %1127 = vmatprep.mubr.bf16.mxu0 %v6579_v57  ;;  %1245 = vmatprep.mubr.bf16.mxu1 %v6579_v57 }
  0xd4   : > { %3070 = vrot.lane.b32.xlu1 %v3063_v35, %s4164_s14  ;;  %3072 = vrot.lane.b32.xlu0 %v3067_v36, %s4164_s14  ;;  %s4169_s14 = smov 21  }
  0xd8   : > { %3134 = vrot.lane.b32.xlu1 %v2929_v25, %s6583_s5  ;;  %3136 = vrot.lane.b32.xlu0 %v2933_v27, %s6583_s5 }
  0xda   : > { %1128 = vmatmul.mubr.bf16.gmra.mrb[40].mxu0 %v4676_v23  ;;  %1246 = vmatmul.mubr.bf16.gmra.mrb[40].mxu1 %v4679_v24 }
  0xdb   : > { %1135 = vmatprep.mubr.bf16.mxu0 %v6579_v57  ;;  %1251 = vmatprep.mubr.bf16.mxu1 %v6579_v57 }
  0xdc   : > { %3138 = vrot.lane.b32.xlu1 %v2937_v31, %s6583_s5  ;;  %3246 = vrot.lane.b32.xlu0 %v3059_v32, %s4168_s13 }
  0xe0   : > { %3248 = vrot.lane.b32.xlu1 %v3063_v35, %s4168_s13  ;;  %3250 = vrot.lane.b32.xlu0 %v3067_v36, %s4168_s13  ;;  %s4177_s13 = smov 92  }
  0xe2   : > { %1136 = vmatmul.mubr.bf16.gmra.mrb[44].mxu0 %v4695_v33  ;;  %1252 = vmatmul.mubr.bf16.gmra.mrb[44].mxu1 %v4698_v34 }
  0xe3   : > { %1143 = vmatprep.mubr.bf16.mxu0 %v6579_v57  ;;  %1257 = vmatprep.mubr.bf16.mxu1 %v6579_v57 }
  0xe4   : > { %3314 = vrot.lane.b32.xlu1 %v2929_v25, %s4161_s8  ;;  %3316 = vrot.lane.b32.xlu0 %v2933_v27, %s4161_s8 }
  0xe7   : > { %v4743_v37 = vpop.permute.xlu1 %1835 }
  0xe8   : > { %3318 = vrot.lane.b32.xlu1 %v2937_v31, %s4161_s8  ;;  %3427 = vrot.lane.b32.xlu0 %v3059_v32, %s4169_s14  ;;  %6650 = vst [vmem:[#allocation10_spill] sm:$0xff] %v4743_v37  ;;  %s4171_s8 = smov 126  }
  0xea   : > { %1144 = vmatmul.mubr.bf16.gmra.mrb[48].mxu0 %v4711_v15  ;;  %1258 = vmatmul.mubr.bf16.gmra.mrb[48].mxu1 %v4714_v30 }
  0xeb   : > { %1151 = vmatprep.mubr.bf16.mxu0 %v6579_v57  ;;  %1296 = vmatprep.mubr.bf16.mxu1 %v6579_v57  ;;  %v4749_v39 = vpop.permute.xlu1 %1914 }
  0xec   : > { %3429 = vrot.lane.b32.xlu1 %v3063_v35, %s4169_s14  ;;  %3431 = vrot.lane.b32.xlu0 %v3067_v36, %s4169_s14  ;;  %s6576_s14 = smov 49  }
  0xf2   : > { %1152 = vmatmul.mubr.bf16.gmra.mrb[52].mxu0 %v4724_v14  ;;  %1297 = vmatmul.mubr.bf16.vlgmr.msra.gmra.mrb[52].mxu1 %v4468_v12 }
  0xf3   : > { %1306 = vmatprep.mubr.bf16.mxu1 %v6579_v57  ;;  %1599 = vmatprep.mubr.bf16.mxu0 %v6579_v57 }
  0xfa   : > { %1307 = vmatmul.mubr.bf16.gmra.mrb[56].mxu1 %v4498_v26  ;;  %1600 = vmatmul.mubr.bf16.vlgmr.msra.gmra.mrb[56].mxu0 %v4468_v12  ;;  %v4747_v12 = vpop.permute.xlu0 %1831 }
  0xfb   : > { %1316 = vmatprep.mubr.bf16.mxu1 %v6579_v57  ;;  %1607 = vmatprep.mubr.bf16.mxu0 %v6579_v57  ;;  %6651 = vst [vmem:[#allocation11_spill] sm:$0xff] %v4747_v12 }
 0x102   : > { %1317 = vmatmul.mubr.bf16.gmra.mrb[60].mxu1 %v4529_v38  ;;  %1608 = vmatmul.mubr.bf16.gmra.mrb[60].mxu0 %v4498_v26  ;;  %v4755_v26 = vpop.permute.xlu0 %1833 }
 0x103   : > { %1326 = vmatprep.mubr.bf16.mxu1 %v6579_v57  ;;  %1615 = vmatprep.mubr.bf16.mxu0 %v6579_v57  ;;  %6652 = vst [vmem:[#allocation12_spill] sm:$0xff] %v4755_v26 }
 0x106   : > { %v4761_v40 = vpop.permute.xlu0 %1916 }
 0x10a   : > { %1327 = vmatmul.mubr.bf16.gmra.mrb[64].mxu1 %v4555_v49  ;;  %1616 = vmatmul.mubr.bf16.gmra.mrb[64].mxu0 %v4529_v38  ;;  %v4757_v38 = vpop.permute.xlu1 %1918  ;;  %v4767_v43 = vpop.permute.xlu0 %1982 }
 0x10b   : > { %1336 = vmatprep.mubr.bf16.mxu1 %v6579_v57  ;;  %1623 = vmatprep.mubr.bf16.mxu0 %v6579_v57 }
 0x10e   : > { %v4765_v41 = vpop.permute.xlu1 %1984  ;;  %v4775_v45 = vpop.permute.xlu0 %1986 }
 0x112   : > { %1337 = vmatmul.mubr.bf16.gmra.mrb[68].mxu1 %v4580_v61  ;;  %1624 = vmatmul.mubr.bf16.gmra.mrb[68].mxu0 %v4555_v49  ;;  %v4771_v44 = vpop.permute.xlu1 %2097  ;;  %v4783_v47 = vpop.permute.xlu0 %2099 }
 0x113   : > { %1346 = vmatprep.mubr.bf16.mxu1 %v6579_v57  ;;  %1631 = vmatprep.mubr.bf16.mxu0 %v6579_v57 }
 0x116   : > { %v4777_v46 = vpop.permute.xlu1 %2101  ;;  %v4789_v49 = vpop.permute.xlu0 %2165 }
 0x11a   : > { %1347 = vmatmul.mubr.bf16.gmra.mrb[72].mxu1 %v4595_v0  ;;  %1632 = vmatmul.mubr.bf16.gmra.mrb[72].mxu0 %v4580_v61  ;;  %v4785_v48 = vpop.permute.xlu1 %2167  ;;  %v4795_v51 = vpop.permute.xlu0 %2169 }
 0x11b   : > { %1356 = vmatprep.mubr.bf16.mxu1 %v6579_v57  ;;  %1639 = vmatprep.mubr.bf16.mxu0 %v6579_v57 }
 0x11e   : > { %v4793_v50 = vpop.permute.xlu1 %2280  ;;  %v4803_v54 = vpop.permute.xlu0 %2282 }
 0x122   : > { %1357 = vmatmul.mubr.bf16.gmra.mrb[76].mxu1 %v4620_v6  ;;  %1640 = vmatmul.mubr.bf16.gmra.mrb[76].mxu0 %v4595_v0  ;;  %v4799_v53 = vpop.permute.xlu1 %2284  ;;  %v4811_v56 = vpop.permute.xlu0 %2363 }
 0x123   : > { %1366 = vmatprep.mubr.bf16.mxu1 %v6579_v57  ;;  %1647 = vmatprep.mubr.bf16.mxu0 %v6579_v57 }
 0x126   : > { %v4805_v55 = vpop.permute.xlu1 %2365  ;;  %v4817_v59 = vpop.permute.xlu0 %2367 }
 0x12a   : > { %1367 = vmatmul.mubr.bf16.gmra.mrb[80].mxu1 %v4635_v16  ;;  %1648 = vmatmul.mubr.bf16.gmra.mrb[80].mxu0 %v4620_v6  ;;  %v4813_v58 = vpop.permute.xlu1 %2493  ;;  %v4823_v61 = vpop.permute.xlu0 %2495 }
 0x12b   : > { %1376 = vmatprep.mubr.bf16.mxu1 %v6579_v57  ;;  %1655 = vmatprep.mubr.bf16.mxu0 %v6579_v57 }
 0x12e   : > { %v4821_v60 = vpop.permute.xlu1 %2497  ;;  %v4831_v0 = vpop.permute.xlu0 %2561 }
 0x132   : > { %1377 = vmatmul.mubr.bf16.gmra.mrb[84].mxu1 %v4649_v18  ;;  %1656 = vmatmul.mubr.bf16.gmra.mrb[84].mxu0 %v4635_v16  ;;  %v4827_v63 = vpop.permute.xlu1 %2563  ;;  %v4839_v3 = vpop.permute.xlu0 %2565 }
 0x133   : > { %1386 = vmatprep.mubr.bf16.mxu1 %v6579_v57  ;;  %1663 = vmatprep.mubr.bf16.mxu0 %v6579_v57 }
 0x136   : > { %v4833_v2 = vpop.permute.xlu1 %2673 }
 0x13a   : > { %1387 = vmatmul.mubr.bf16.gmra.mrb[88].mxu1 %v4660_v20  ;;  %1664 = vmatmul.mubr.bf16.gmra.mrb[88].mxu0 %v4649_v18  ;;  %v4841_v4 = vpop.permute.xlu1 %2677 }
 0x13b   : > { %1396 = vmatprep.mubr.bf16.mxu1 %v6579_v57  ;;  %1671 = vmatprep.mubr.bf16.mxu0 %v6579_v57 }
 0x13e   : > { %v4856_v25 = vpop.permute.xlu1 %2743 }
 0x142   : > { %1397 = vmatmul.mubr.bf16.gmra.mrb[92].mxu1 %v4676_v23  ;;  %1672 = vmatmul.mubr.bf16.gmra.mrb[92].mxu0 %v4660_v20 }
 0x143   : > { %1406 = vmatprep.mubr.bf16.mxu1 %v6579_v57  ;;  %1679 = vmatprep.mubr.bf16.mxu0 %v6579_v57 }
 0x14a   : > { %1407 = vmatmul.mubr.bf16.gmra.mrb[96].mxu1 %v4695_v33  ;;  %1680 = vmatmul.mubr.bf16.gmra.mrb[96].mxu0 %v4676_v23  ;;  %v4854_v23 = vpop.permute.xlu0 %2675 }
 0x14b   : > { %1416 = vmatprep.mubr.bf16.mxu1 %v6579_v57  ;;  %1687 = vmatprep.mubr.bf16.mxu0 %v6579_v57 }
 0x152   : > { %1417 = vmatmul.mubr.bf16.gmra.mrb[100].mxu1 %v4711_v15  ;;  %1688 = vmatmul.mubr.bf16.gmra.mrb[100].mxu0 %v4695_v33 }
 0x153   : > { %1426 = vmatprep.mubr.bf16.mxu1 %v6579_v57  ;;  %1695 = vmatprep.mubr.bf16.mxu0 %v6579_v57 }
 0x15a   : > { %1427 = vmatmul.mubr.bf16.gmra.mrb[104].mxu1 %v4724_v14  ;;  %1696 = vmatmul.mubr.bf16.gmra.mrb[104].mxu0 %v4711_v15 }
 0x15b   : > { %1436 = vmatprep.mubr.bf16.mxu1 %v6579_v57  ;;  %1703 = vmatprep.mubr.bf16.mxu0 %v6579_v57 }
 0x15d   : > { %v1049_v5 = vpop.f32.mrb[0].mxu0  ;;  %v1161_v6 = vpop.f32.mrb[0].mxu1 }
 0x15e   : > { %v4843_v8 = vpop.f32.mrb[1].mxu0  ;;  %v1162_v9 = vpop.f32.mrb[1].mxu1 }
 0x15f   : > { %6653 = vst [vmem:[#allocation13_spill] sm:$0xff] %v4843_v8  ;;  %v2686_v10 = vmul.f32 %v4833_v2, %v1162_v9  ;;  %v1052_v11 = vpop.f32.mrb[2].mxu0  ;;  %v1164_v16 = vpop.f32.mrb[2].mxu1 }
 0x160   : > { %v4846_v18 = vpop.f32.mrb[3].mxu0  ;;  %v1165_v20 = vpop.f32.mrb[3].mxu1 }
 0x161   : > { %6654 = vst [vmem:[#allocation14_spill] sm:$0xff] %v4846_v18  ;;  %2702 = vrot.lane.b32.xlu0 %v2686_v10, %s4170_s23  ;;  %v2690_v22 = vmul.f32 %v4833_v2, %v1165_v20  ;;  %v4867_v5 = vpop.permute.xlu1 %2856 }
 0x162   : > { %1437 = vmatmul.mubr.bf16.gmra.mrb[108].mxu1 %v4471_v13  ;;  %1704 = vmatmul.mubr.bf16.gmra.mrb[108].mxu0 %v4724_v14  ;;  %v4860_v14 = vpop.permute.xlu0 %2741 }
 0x163   : > { %1446 = vmatprep.mubr.bf16.mxu1 %v6579_v57  ;;  %1711 = vmatprep.mubr.bf16.mxu0 %v6579_v57 }
 0x165   : > { %2710 = vrot.lane.b32.xlu0 %v2690_v22, %s4170_s23  ;;  %v1057_v27 = vpop.f32.mrb[4].mxu0  ;;  %v1169_v29 = vpop.f32.mrb[4].mxu1 }
 0x166   : > { %v1058_v31 = vpop.f32.mrb[5].mxu0  ;;  %v1170_v32 = vpop.f32.mrb[5].mxu1 }
 0x167   : > { %v1172_v33 = vpop.f32.mrb[6].mxu1  ;;  %1860 = vrot.lane.b32.xlu1 %v1058_v31, %s4171_s8  ;;  %v1060_v35 = vpop.f32.mrb[6].mxu0  ;;  %v2754_v6 = vmul.f32 %v4860_v14, %v1170_v32 }
 0x168   : > { %v1061_v36 = vpop.f32.mrb[7].mxu0  ;;  %v1173_v15 = vpop.f32.mrb[7].mxu1 }
 0x169   : > { %v2758_v31 = vmul.f32 %v4860_v14, %v1173_v15  ;;  %v4879_v33 = vpop.permute.xlu0 %2745  ;;  %v4881_v35 = vpop.permute.xlu1 %2860 }
 0x16a   : > { %1447 = vmatmul.mubr.bf16.gmra.mrb[112].mxu1 %v4502_v28  ;;  %1712 = vmatmul.mubr.bf16.gmra.mrb[112].mxu0 %v4471_v13 }
 0x16b   : > { %1868 = vrot.lane.b32.xlu1 %v1061_v36, %s4171_s8  ;;  %1456 = vmatprep.mubr.bf16.mxu1 %v6579_v57 }
 0x16c   : > { %1719 = vmatprep.mubr.bf16.mxu0 %v6579_v57 }
 0x16d   : > { %v1065_v9 = vpop.f32.mrb[8].mxu0  ;;  %v1177_v10 = vpop.f32.mrb[8].mxu1 }
 0x16e   : > { %v1066_v11 = vpop.f32.mrb[9].mxu0  ;;  %v1178_v16 = vpop.f32.mrb[9].mxu1 }
 0x16f   : > { %v1927_v20 = vmul.f32 %v4749_v39, %v1066_v11  ;;  %v1180_v22 = vpop.f32.mrb[10].mxu1  ;;  %2770 = vrot.lane.b32.xlu1 %v2754_v6, %s6589_s25  ;;  %v1068_v13 = vpop.f32.mrb[10].mxu0 }
 0x170   : > { %v1069_v27 = vpop.f32.mrb[11].mxu0  ;;  %v1181_v29 = vpop.f32.mrb[11].mxu1 }
 0x171   : > { %1943 = vrot.lane.b32.xlu0 %v1927_v20, %s4173_s29  ;;  %v1931_v32 = vmul.f32 %v4749_v39, %v1069_v27  ;;  %v2939_v27 = vpop.permute.xlu1 %2938 }
 0x172   : > { %1457 = vmatmul.mubr.bf16.gmra.mrb[116].mxu1 %v4535_v42  ;;  %1720 = vmatmul.mubr.bf16.gmra.mrb[116].mxu0 %v4502_v28 }
 0x173   : > { %2778 = vrot.lane.b32.xlu1 %v2758_v31, %s6589_s25  ;;  %1466 = vmatprep.mubr.bf16.mxu1 %v6579_v57  ;;  %v4893_v31 = vpop.permute.xlu0 %2858 }
 0x174   : > { %1727 = vmatprep.mubr.bf16.mxu0 %v6579_v57 }
 0x175   : > { %v1185_v36 = vpop.f32.mrb[12].mxu1  ;;  %1951 = vrot.lane.b32.xlu0 %v1931_v32, %s4173_s29  ;;  %v1073_v15 = vpop.f32.mrb[12].mxu0 }
 0x176   : > { %v1074_v6 = vpop.f32.mrb[13].mxu0  ;;  %v1186_v9 = vpop.f32.mrb[13].mxu1 }
 0x177   : > { %v2869_v28 = vmul.f32 %v4867_v5, %v1186_v9  ;;  %v1188_v10 = vpop.f32.mrb[14].mxu1  ;;  %2817 = vrot.lane.b32.xlu1 %v1178_v16, %s6587_s26  ;;  %v1076_v11 = vpop.f32.mrb[14].mxu0  ;;  %v1995_v16 = vmul.f32 %v4767_v43, %v1074_v6 }
 0x178   : > { %v1077_v20 = vpop.f32.mrb[15].mxu0  ;;  %v1189_v22 = vpop.f32.mrb[15].mxu1 }
 0x179   : > { %2885 = vrot.lane.b32.xlu0 %v2869_v28, %s6585_s30  ;;  %v2873_v13 = vmul.f32 %v4867_v5, %v1189_v22  ;;  %v1999_v22 = vmul.f32 %v4767_v43, %v1077_v20 }
 0x17a   : > { %1467 = vmatmul.mubr.bf16.gmra.mrb[120].mxu1 %v4562_v52  ;;  %1728 = vmatmul.mubr.bf16.gmra.mrb[120].mxu0 %v4535_v42 }
 0x17b   : > { %2825 = vrot.lane.b32.xlu1 %v1181_v29, %s6587_s26  ;;  %1476 = vmatprep.mubr.bf16.mxu1 %v6579_v57  ;;  %s4184_s26 = smov 15  }
 0x17c   : > { %1735 = vmatprep.mubr.bf16.mxu0 %v6579_v57 }
 0x17d   : > { %v1193_v32 = vpop.f32.mrb[16].mxu1  ;;  %2893 = vrot.lane.b32.xlu0 %v2873_v13, %s6585_s30  ;;  %v1081_v36 = vpop.f32.mrb[16].mxu0  ;;  %s4183_s30 = smov 87  }
 0x17e   : > { %v2951_v15 = vmul.f32 %v2939_v27, %v1193_v32  ;;  %v1082_v9 = vpop.f32.mrb[17].mxu0  ;;  %v1195_v42 = vpop.f32.mrb[17].mxu1 }
 0x17f   : > { %v1197_v28 = vpop.f32.mrb[18].mxu1  ;;  %2011 = vrot.lane.b32.xlu1 %v1995_v16, %s4176_s1  ;;  %v1084_v29 = vpop.f32.mrb[18].mxu0 }
 0x180   : > { %v1085_v10 = vpop.f32.mrb[19].mxu0  ;;  %v1199_v11 = vpop.f32.mrb[19].mxu1  ;;  %v2955_v6 = vmul.f32 %v2939_v27, %v1197_v28 }
 0x181   : > { %2967 = vrot.lane.b32.xlu0 %v2951_v15, %s6583_s5  ;;  %v4905_v13 = vpop.permute.xlu0 %2940 }
 0x182   : > { %1477 = vmatmul.mubr.bf16.gmra.mrb[124].mxu1 %v4583_v62  ;;  %1736 = vmatmul.mubr.bf16.gmra.mrb[124].mxu0 %v4562_v52  ;;  %6655 = vst [vmem:[#allocation15_spill] sm:$0xff] %v4905_v13 }
 0x183   : > { %2019 = vrot.lane.b32.xlu1 %v1999_v22, %s4176_s1  ;;  %1486 = vmatprep.mubr.bf16.mxu1 %v6579_v57  ;;  %v2945_v22 = vsel %vm2944_vm0, %v2939_v27, %v4905_v13 }
 0x184   : > { %1743 = vmatprep.mubr.bf16.mxu0 %v6579_v57  ;;  %v2956_v26 = vmul.f32 %v2945_v22, %v1199_v11 }
 0x185   : > { %v1203_v16 = vpop.f32.mrb[20].mxu1  ;;  %2975 = vrot.lane.b32.xlu0 %v2955_v6, %s6583_s5  ;;  %v1089_v32 = vpop.f32.mrb[20].mxu0 }
 0x186   : > { %v1090_v20 = vpop.f32.mrb[21].mxu0  ;;  %v1205_v36 = vpop.f32.mrb[21].mxu1 }
 0x187   : > { %v1207_v15 = vpop.f32.mrb[22].mxu1  ;;  %2058 = vrot.lane.b32.xlu1 %v1082_v9, %s4177_s13  ;;  %v1092_v52 = vpop.f32.mrb[22].mxu0  ;;  %v2952_v9 = vmul.f32 %v2945_v22, %v1195_v42  ;;  %v2110_v27 = vmul.f32 %v4771_v44, %v1090_v20 }
 0x188   : > { %v1093_v28 = vpop.f32.mrb[23].mxu0  ;;  %v1209_v29 = vpop.f32.mrb[23].mxu1 }
 0x189   : > { %3014 = vrot.lane.b32.xlu0 %v1203_v16, %s6576_s14  ;;  %v4917_v6 = vpop.permute.xlu1 %2942  ;;  %v2114_v42 = vmul.f32 %v4771_v44, %v1093_v28 }
 0x18a   : > { %1487 = vmatmul.mubr.bf16.gmra.mrb[128].mxu1 %v4598_v1  ;;  %1744 = vmatmul.mubr.bf16.gmra.mrb[128].mxu0 %v4583_v62 }
 0x18b   : > { %2066 = vrot.lane.b32.xlu1 %v1085_v10, %s4177_s13  ;;  %1496 = vmatprep.mubr.bf16.mxu1 %v6579_v57 }
 0x18c   : > { %1749 = vmatprep.mubr.bf16.mxu0 %v6579_v57 }
 0x18d   : > { %v1213_v32 = vpop.f32.mrb[24].mxu1  ;;  %3022 = vrot.lane.b32.xlu0 %v1207_v15, %s6576_s14  ;;  %v1097_v16 = vpop.f32.mrb[24].mxu0 }
 0x18e   : > { %v1098_v52 = vpop.f32.mrb[25].mxu0  ;;  %v1215_v18 = vpop.f32.mrb[25].mxu1 }
 0x18f   : > { %v1217_v13 = vpop.f32.mrb[26].mxu1  ;;  %2969 = vrot.lane.b32.xlu1 %v2952_v9, %s6583_s5  ;;  %v1100_v62 = vpop.f32.mrb[26].mxu0 }
 0x190   : > { %v1101_v10 = vpop.f32.mrb[27].mxu0  ;;  %v4923_v37 = vpop.f32.mrb[27].mxu1 }
 0x191   : > { %2126 = vrot.lane.b32.xlu0 %v2110_v27, %s4179_s6  ;;  %v4931_v20 = vpop.permute.xlu1 %3070  ;;  %v3069_v15 = vpop.permute.xlu0 %3068 }
 0x192   : > { %1497 = vmatmul.mubr.bf16.gmra.mrb[132].mxu1 %v4623_v7  ;;  %1750 = vmatmul.mubr.bf16.gmra.mrb[132].mxu0 %v4598_v1  ;;  %v3080_v27 = vmul.f32 %v3069_v15, %v1213_v32 }
 0x193   : > { %2977 = vrot.lane.b32.xlu1 %v2956_v26, %s6583_s5  ;;  %1506 = vmatprep.mubr.bf16.mxu1 %v6579_v57  ;;  %s4182_s5 = smov 18  }
 0x194   : > { %1755 = vmatprep.mubr.bf16.mxu0 %v6579_v57 }
 0x195   : > { %v1223_v9 = vpop.f32.mrb[28].mxu1  ;;  %2134 = vrot.lane.b32.xlu0 %v2114_v42, %s4179_s6  ;;  %v1105_v11 = vpop.f32.mrb[28].mxu0 }
 0x196   : > { %v4935_v22 = vpop.f32.mrb[29].mxu0  ;;  %v1224_v16 = vpop.f32.mrb[29].mxu1  ;;  %v3084_v9 = vmul.f32 %v3069_v15, %v1217_v13 }
 0x197   : > { %v1226_v1 = vpop.f32.mrb[30].mxu1  ;;  %3016 = vrot.lane.b32.xlu1 %v1205_v36, %s6576_s14  ;;  %v1108_v28 = vpop.f32.mrb[30].mxu0  ;;  %v2178_v36 = vmul.f32 %v4789_v49, %v1098_v52 }
 0x198   : > { %v4938_v26 = vpop.f32.mrb[31].mxu0  ;;  %v1227_v62 = vpop.f32.mrb[31].mxu1 }
 0x199   : > { %3096 = vrot.lane.b32.xlu0 %v3080_v27, %s6589_s25  ;;  %v4945_v42 = vpop.permute.xlu1 %3134  ;;  %v4947_v32 = vpop.permute.xlu0 %3072 }
 0x19a   : > { %1507 = vmatmul.mubr.bf16.gmra.mrb[136].mxu1 %v4638_v17  ;;  %1756 = vmatmul.mubr.bf16.gmra.mrb[136].mxu0 %v4623_v7  ;;  %v3074_v7 = vsel %vm2747_vm1, %v3069_v15, %v4931_v20  ;;  %v3146_v1 = vmul.f32 %v4945_v42, %v1224_v16  ;;  %v3150_v15 = vmul.f32 %v4945_v42, %v1227_v62 }
 0x19b   : > { %3024 = vrot.lane.b32.xlu1 %v1209_v29, %s6576_s14  ;;  %1516 = vmatprep.mubr.bf16.mxu1 %v6579_v57  ;;  %s4180_s14 = smov 60   ;;  %v3081_v52 = vmul.f32 %v3074_v7, %v1215_v18 }
 0x19c   : > { %1761 = vmatprep.mubr.bf16.mxu0 %v6579_v57 }
 0x19d   : > { %v1231_v11 = vpop.f32.mrb[32].mxu1  ;;  %3104 = vrot.lane.b32.xlu0 %v3084_v9, %s6589_s25  ;;  %v1113_v27 = vpop.f32.mrb[32].mxu0  ;;  %v6656_v9 = vmov 0  }
 0x19e   : > { %v1114_v13 = vpop.f32.mrb[33].mxu0  ;;  %v1232_v29 = vpop.f32.mrb[33].mxu1 }
 0x19f   : > { %v1234_v28 = vpop.f32.mrb[34].mxu1  ;;  %2194 = vrot.lane.b32.xlu1 %v2178_v36, %s4180_s14  ;;  %v1116_v12 = vpop.f32.mrb[34].mxu0 }
 0x1a0   : > { %v1117_v57 = vpop.f32.mrb[35].mxu0  ;;  %v1235_v8 = vpop.f32.mrb[35].mxu1  ;;  %v2182_v12 = vmul.f32 %v4789_v49, %v1101_v10  ;;  %v2293_v10 = vmul.f32 %v4793_v50, %v1114_v13 }
 0x1a1   : > { %3162 = vrot.lane.b32.xlu0 %v3146_v1, %s6581_s28  ;;  %v4962_v16 = vpop.permute.xlu0 %3136 }
 0x1a2   : > { %1517 = vmatmul.mubr.bf16.gmra.mrb[140].mxu1 %v4652_v19  ;;  %1762 = vmatmul.mubr.bf16.gmra.mrb[140].mxu0 %v4638_v17 }
 0x1a3   : > { %3098 = vrot.lane.b32.xlu1 %v3081_v52, %s6589_s25  ;;  %1526 = vmatprep.mubr.bf16.mxu1 %v6656_v9  ;;  %v3085_v52 = vmul.f32 %v3074_v7, %v4923_v37 }
 0x1a4   : > { %1769 = vmatprep.mubr.bf16.mxu0 %v6656_v9 }
 0x1a5   : > { %v1239_v36 = vpop.f32.mrb[36].mxu1  ;;  %3170 = vrot.lane.b32.xlu0 %v3150_v15, %s6581_s28  ;;  %v1121_v18 = vpop.f32.mrb[36].mxu0  ;;  %s4181_s28 = smov 58  }
 0x1a6   : > { %v1122_v11 = vpop.f32.mrb[37].mxu0  ;;  %v1240_v27 = vpop.f32.mrb[37].mxu1 }
 0x1a7   : > { %v1242_v1 = vpop.f32.mrb[38].mxu1  ;;  %2202 = vrot.lane.b32.xlu1 %v2182_v12, %s4180_s14  ;;  %v1124_v17 = vpop.f32.mrb[38].mxu0 }
 0x1a8   : > { %v1125_v62 = vpop.f32.mrb[39].mxu0  ;;  %v1243_v28 = vpop.f32.mrb[39].mxu1  ;;  %v2297_v1 = vmul.f32 %v4793_v50, %v1117_v57 }
 0x1a9   : > { %3208 = vrot.lane.b32.xlu0 %v1232_v29, %s4177_s13  ;;  %v4975_v15 = vpop.permute.xlu0 %3246  ;;  %v4988_v17 = vpop.permute.xlu1 %3138 }
 0x1aa   : > { %1527 = vmatmul.mubr.bf16.gmra.mrb[144].mxu1 %v4663_v21  ;;  %1770 = vmatmul.mubr.bf16.gmra.mrb[144].mxu0 %v4652_v19  ;;  %6657 = vst [vmem:[#allocation16_spill] sm:$0xff] %v4975_v15  ;;  %v3259_v57 = vmul.f32 %v4975_v15, %v1240_v27 }
 0x1ab   : > { %3106 = vrot.lane.b32.xlu1 %v3085_v52, %s6589_s25  ;;  %1536 = vmatprep.mubr.bf16.mxu1 %v6656_v9  ;;  %v2376_v52 = vmul.f32 %v4811_v56, %v1122_v11  ;;  %v3263_v11 = vmul.f32 %v4975_v15, %v1243_v28  ;;  %s4185_s25 = smov 12  }
 0x1ac   : > { %1777 = vmatprep.mubr.bf16.mxu0 %v6656_v9 }
 0x1ad   : > { %v1247_v12 = vpop.f32.mrb[40].mxu1  ;;  %2309 = vrot.lane.b32.xlu0 %v2293_v10, %s4162_s12  ;;  %v1129_v37 = vpop.f32.mrb[40].mxu0 }
 0x1ae   : > { %v1130_v7 = vpop.f32.mrb[41].mxu0  ;;  %v1248_v29 = vpop.f32.mrb[41].mxu1 }
 0x1af   : > { %v1249_v36 = vpop.f32.mrb[42].mxu1  ;;  %2241 = vrot.lane.b32.xlu1 %v4935_v22, %s4181_s28  ;;  %v1132_v19 = vpop.f32.mrb[42].mxu0 }
 0x1b0   : > { %v1133_v13 = vpop.f32.mrb[43].mxu0  ;;  %v1250_v18 = vpop.f32.mrb[43].mxu1  ;;  %v2380_v19 = vmul.f32 %v4811_v56, %v1125_v62 }
 0x1b1   : > { %3216 = vrot.lane.b32.xlu0 %v1235_v8, %s4177_s13  ;;  %v4991_v22 = vpop.permute.xlu0 %3250  ;;  %v5004_v27 = vpop.permute.xlu1 %3248 }
 0x1b2   : > { %1537 = vmatmul.mubr.bf16.gmra.mrb[148].mxu1 %v4679_v24  ;;  %1778 = vmatmul.mubr.bf16.gmra.mrb[148].mxu0 %v4663_v21  ;;  %6658 = vst [vmem:[#allocation17_spill] sm:$0xff] %v4991_v22  ;;  %6659 = vst [vmem:[#allocation18_spill] sm:$0xff] %v5004_v27 }
 0x1b3   : > { %2249 = vrot.lane.b32.xlu1 %v4938_v26, %s4181_s28  ;;  %1546 = vmatprep.mubr.bf16.mxu1 %v6656_v9 }
 0x1b4   : > { %1785 = vmatprep.mubr.bf16.mxu0 %v6656_v9 }
 0x1b5   : > { %v1253_v8 = vpop.f32.mrb[44].mxu1  ;;  %2317 = vrot.lane.b32.xlu0 %v2297_v1, %s4162_s12  ;;  %v1137_v10 = vpop.f32.mrb[44].mxu0 }
 0x1b6   : > { %v1138_v21 = vpop.f32.mrb[45].mxu0  ;;  %v1254_v12 = vpop.f32.mrb[45].mxu1 }
 0x1b7   : > { %v1255_v37 = vpop.f32.mrb[46].mxu1  ;;  %2392 = vrot.lane.b32.xlu1 %v2376_v52, %s4182_s5  ;;  %v1140_v26 = vpop.f32.mrb[46].mxu0 }
 0x1b8   : > { %v1141_v29 = vpop.f32.mrb[47].mxu0  ;;  %v1256_v36 = vpop.f32.mrb[47].mxu1 }
 0x1b9   : > { %3275 = vrot.lane.b32.xlu0 %v3259_v57, %s4183_s30  ;;  %v5007_v18 = vpop.permute.xlu0 %3316  ;;  %v2510_v37 = vmul.f32 %v4813_v58, %v1141_v29  ;;  %v5020_v26 = vpop.permute.xlu1 %3314 }
 0x1ba   : > { %1547 = vmatmul.mubr.bf16.gmra.mrb[152].mxu1 %v4698_v34  ;;  %1786 = vmatmul.mubr.bf16.gmra.mrb[152].mxu0 %v4679_v24  ;;  %6660 = vst [vmem:[#allocation19_spill] sm:$0xff] %v5007_v18  ;;  %v2506_v24 = vmul.f32 %v4813_v58, %v1138_v21  ;;  %6662 = vst [vmem:[#allocation21_spill] sm:$0xff] %v5020_v26 }
 0x1bb   : > { %2400 = vrot.lane.b32.xlu1 %v2380_v19, %s4182_s5  ;;  %1556 = vmatprep.mubr.bf16.mxu1 %v6656_v9 }
 0x1bc   : > { %1795 = vmatprep.mubr.bf16.mxu0 %v6656_v9 }
 0x1bd   : > { %v1259_v62 = vpop.f32.mrb[48].mxu1  ;;  %3283 = vrot.lane.b32.xlu0 %v3263_v11, %s4183_s30  ;;  %v1145_v1 = vpop.f32.mrb[48].mxu0 }
 0x1be   : > { %v1146_v52 = vpop.f32.mrb[49].mxu0  ;;  %v1260_v8 = vpop.f32.mrb[49].mxu1 }
 0x1bf   : > { %v1261_v10 = vpop.f32.mrb[50].mxu1  ;;  %2439 = vrot.lane.b32.xlu1 %v1130_v7, %s4184_s26  ;;  %v1148_v28 = vpop.f32.mrb[50].mxu0  ;;  %v2573_v7 = vmul.f32 %v4831_v0, %v1146_v52 }
 0x1c0   : > { %v1149_v12 = vpop.f32.mrb[51].mxu0  ;;  %v1262_v57 = vpop.f32.mrb[51].mxu1 }
 0x1c1   : > { %2522 = vrot.lane.b32.xlu0 %v2506_v24, %s4185_s25  ;;  %v5018_v21 = vpop.permute.xlu0 %3427  ;;  %v2577_v1 = vmul.f32 %v4831_v0, %v1149_v12  ;;  %v5038_v8 = vpop.permute.xlu1 %3318 }
 0x1c2   : > { %1557 = vmatmul.mubr.bf16.gmra.mrb[156].mxu1 %v4714_v30  ;;  %1796 = vmatmul.mubr.bf16.gmra.mrb[156].mxu0 %v4698_v34  ;;  %6661 = vst [vmem:[#allocation20_spill] sm:$0xff] %v5018_v21  ;;  %6667 = vst [vmem:[#allocation26_spill] sm:$0xff] %v5038_v8 }
 0x1c3   : > { %2447 = vrot.lane.b32.xlu1 %v1133_v13, %s4184_s26  ;;  %1805 = vmatprep.mubr.bf16.mxu0 %v6656_v9 }
 0x1c5   : > { %v5023_v36 = vpop.f32.mrb[52].mxu1  ;;  %2530 = vrot.lane.b32.xlu0 %v2510_v37, %s4185_s25  ;;  %v1153_v19 = vpop.f32.mrb[52].mxu0 }
 0x1c6   : > { %v1154_v11 = vpop.f32.mrb[53].mxu0  ;;  %v5026_v62 = vpop.f32.mrb[53].mxu1 }
 0x1c7   : > { %6663 = vst [vmem:[#allocation22_spill] sm:$0xff] %v5026_v62  ;;  %v5028_v34 = vpop.f32.mrb[54].mxu1  ;;  %2589 = vrot.lane.b32.xlu1 %v2573_v7, %s4159_s27  ;;  %v1156_v13 = vpop.f32.mrb[54].mxu0 }
 0x1c8   : > { %6664 = vst [vmem:[#allocation23_spill] sm:$0xff] %v5028_v34  ;;  %v1157_v9 = vpop.f32.mrb[55].mxu0  ;;  %v5031_v29 = vpop.f32.mrb[55].mxu1 }
 0x1c9   : > { %6665 = vst [vmem:[#allocation24_spill] sm:$0xff] %v5031_v29  ;;  %v5036_v52 = vpop.permute.xlu0 %3431  ;;  %v5048_v19 = vpop.permute.xlu1 %3429 }
 0x1ca   : > { %1806 = vmatmul.mubr.bf16.gmra.mrb[160].mxu0 %v4714_v30  ;;  %6666 = vst [vmem:[#allocation25_spill] sm:$0xff] %v5036_v52  ;;  %6670 = vst [vmem:[#allocation29_spill] sm:$0xff] %v5048_v19 }
 0x1cb   : > { %2597 = vrot.lane.b32.xlu1 %v2577_v1, %s4159_s27 }
 0x1cd   : > { %v1308_v24 = vpop.f32.mrb[56].mxu1  ;;  %v5040_v10 = vpop.f32.mrb[56].mxu0 }
 0x1ce   : > { %6668 = vst [vmem:[#allocation27_spill] sm:$0xff] %v5040_v10  ;;  %v1310_v28 = vpop.f32.mrb[57].mxu1  ;;  %1862 = vrot.lane.b32.xlu0 %v1308_v24, %s4171_s8  ;;  %v1603_v57 = vpop.f32.mrb[57].mxu0 }
 0x1cf   : > { %v1312_v37 = vpop.f32.mrb[58].mxu1  ;;  %2635 = vrot.lane.b32.xlu1 %v1154_v11, %s4177_s13  ;;  %v5044_v7 = vpop.f32.mrb[58].mxu0 }
 0x1d0   : > { %6669 = vst [vmem:[#allocation28_spill] sm:$0xff] %v5044_v7  ;;  %v1314_v12 = vpop.f32.mrb[59].mxu1  ;;  %v1606_v30 = vpop.f32.mrb[59].mxu0 }
 0x1d2   : > { %1870 = vrot.lane.b32.xlu0 %v1312_v37, %s4171_s8 }
 0x1d3   : > { %2643 = vrot.lane.b32.xlu1 %v1157_v9, %s4177_s13  ;;  %v5050_v13 = vpop.permute.xlu0 %2702  ;;  %v1922_v9 = vsel %vm1920_vm2, %v4761_v40, %v4757_v38 }
 0x1d4   : > { %6671 = vst [vmem:[#allocation30_spill] sm:$0xff] %v5050_v13 }
 0x1d5   : > { %v1318_v1 = vpop.f32.mrb[60].mxu1  ;;  %v1609_v52 = vpop.f32.mrb[60].mxu0 }
 0x1d6   : > { %v1320_v21 = vpop.f32.mrb[61].mxu1  ;;  %1866 = vrot.lane.b32.xlu0 %v1609_v52, %s4171_s8  ;;  %v1611_v24 = vpop.f32.mrb[61].mxu0  ;;  %v1921_v52 = vsel %vm1920_vm2, %v4749_v39, %v4761_v40  ;;  %vm2027_vm2 = vcmask 769024  }
 0x1d7   : > { %v1322_v57 = vpop.f32.mrb[62].mxu1  ;;  %1864 = vrot.lane.b32.xlu1 %v1310_v28, %s4171_s8  ;;  %v1612_v11 = vpop.f32.mrb[62].mxu0  ;;  %v1929_v24 = vmul.f32 %v1922_v9, %v1320_v21  ;;  %v1928_v28 = vmul.f32 %v1921_v52, %v1318_v1  ;;  %v1989_v1 = vsel %vm1988_vm3, %v4767_v43, %v4765_v41  ;;  %v1990_v43 = vsel %vm1988_vm3, %v4765_v41, %v4775_v45 }
 0x1d8   : > { %v1324_v8 = vpop.f32.mrb[63].mxu1  ;;  %v1614_v30 = vpop.f32.mrb[63].mxu0  ;;  %v1932_v39 = vmul.f32 %v1921_v52, %v1322_v57  ;;  %vm2074_vm3 = vcmask 752640  }
 0x1d9   : > { %v5054_v37 = vpop.permute.xlu1 %1860  ;;  %v5062_v19 = vpop.permute.xlu0 %2710  ;;  %v1933_v7 = vmul.f32 %v1922_v9, %v1324_v8 }
 0x1da   : > { %6672 = vst [vmem:[#allocation31_spill] sm:$0xff] %v5054_v37  ;;  %1874 = vrot.lane.b32.xlu0 %v1612_v11, %s4171_s8  ;;  %6673 = vst [vmem:[#allocation32_spill] sm:$0xff] %v5062_v19 }
 0x1db   : > { %1872 = vrot.lane.b32.xlu1 %v1314_v12, %s4171_s8  ;;  %s4186_s8 = smov 7  }
 0x1dd   : > { %v1328_v13 = vpop.f32.mrb[64].mxu1  ;;  %v5064_v26 = vpop.permute.xlu1 %1868 }
 0x1de   : > { %6674 = vst [vmem:[#allocation33_spill] sm:$0xff] %v5064_v26  ;;  %v1617_v30 = vpop.f32.mrb[64].mxu0  ;;  %v1330_v18 = vpop.f32.mrb[65].mxu1  ;;  %1947 = vrot.lane.b32.xlu0 %v1929_v24, %s4173_s29  ;;  %v1996_v24 = vmul.f32 %v1989_v1, %v1328_v13 }
 0x1df   : > { %v1619_v11 = vpop.f32.mrb[65].mxu0  ;;  %v1332_v22 = vpop.f32.mrb[66].mxu1  ;;  %1945 = vrot.lane.b32.xlu1 %v1928_v28, %s4173_s29  ;;  %v1930_v8 = vmul.f32 %v4757_v38, %v1617_v30  ;;  %v1997_v30 = vmul.f32 %v1990_v43, %v1330_v18 }
 0x1e0   : > { %v1620_v12 = vpop.f32.mrb[66].mxu0  ;;  %v1334_v10 = vpop.f32.mrb[67].mxu1 }
 0x1e1   : > { %v5068_v40 = vpop.permute.xlu1 %2770  ;;  %v1622_v21 = vpop.f32.mrb[67].mxu0 }
 0x1e2   : > { %6675 = vst [vmem:[#allocation34_spill] sm:$0xff] %v5068_v40  ;;  %1955 = vrot.lane.b32.xlu0 %v1933_v7, %s4173_s29 }
 0x1e3   : > { %v5074_v19 = vpop.permute.xlu0 %1943  ;;  %1953 = vrot.lane.b32.xlu1 %v1932_v39, %s4173_s29  ;;  %v2000_v39 = vmul.f32 %v1989_v1, %v1332_v22 }
 0x1e4   : > { %6676 = vst [vmem:[#allocation35_spill] sm:$0xff] %v5074_v19 }
 0x1e5   : > { %v5078_v9 = vpop.permute.xlu1 %2778  ;;  %v1625_v28 = vpop.f32.mrb[68].mxu0 }
 0x1e6   : > { %6677 = vst [vmem:[#allocation36_spill] sm:$0xff] %v5078_v9  ;;  %2013 = vrot.lane.b32.xlu0 %v1996_v24, %s4176_s1  ;;  %v1627_v57 = vpop.f32.mrb[69].mxu0  ;;  %v1338_v52 = vpop.f32.mrb[68].mxu1 }
 0x1e7   : > { %v5081_v11 = vpop.permute.xlu0 %1951  ;;  %1949 = vrot.lane.b32.xlu1 %v1930_v8, %s4173_s29  ;;  %v1628_v7 = vpop.f32.mrb[70].mxu0  ;;  %v1934_v8 = vmul.f32 %v4757_v38, %v1620_v12 }
 0x1e8   : > { %6678 = vst [vmem:[#allocation37_spill] sm:$0xff] %v5081_v11  ;;  %v1340_v13 = vpop.f32.mrb[69].mxu1  ;;  %v1630_v21 = vpop.f32.mrb[71].mxu0 }
 0x1e9   : > { %v5087_v40 = vpop.permute.xlu1 %2817  ;;  %v1342_v9 = vpop.f32.mrb[70].mxu1 }
 0x1ea   : > { %6679 = vst [vmem:[#allocation38_spill] sm:$0xff] %v5087_v40  ;;  %2021 = vrot.lane.b32.xlu0 %v2000_v39, %s4176_s1  ;;  %v1344_v24 = vpop.f32.mrb[71].mxu1  ;;  %v1998_v39 = vmul.f32 %v4775_v45, %v1625_v28  ;;  %v2001_v40 = vmul.f32 %v1990_v43, %v1334_v10  ;;  %v2002_v10 = vmul.f32 %v4775_v45, %v1628_v7 }
 0x1eb   : > { %v5090_v57 = vpop.permute.xlu0 %2885  ;;  %2015 = vrot.lane.b32.xlu1 %v1997_v30, %s4176_s1 }
 0x1ec   : > { %6680 = vst [vmem:[#allocation39_spill] sm:$0xff] %v5090_v57 }
 0x1ed   : > { %v1348_v11 = vpop.f32.mrb[72].mxu1  ;;  %v5094_v19 = vpop.permute.xlu1 %2825 }
 0x1ee   : > { %6681 = vst [vmem:[#allocation40_spill] sm:$0xff] %v5094_v19  ;;  %v1350_v41 = vpop.f32.mrb[73].mxu1  ;;  %2060 = vrot.lane.b32.xlu0 %v1338_v52, %s4177_s13  ;;  %v1633_v22 = vpop.f32.mrb[72].mxu0 }
 0x1ef   : > { %v1352_v18 = vpop.f32.mrb[74].mxu1  ;;  %v5097_v1 = vpop.permute.xlu0 %2893  ;;  %1957 = vrot.lane.b32.xlu1 %v1934_v8, %s4173_s29  ;;  %s4188_s29 = smov 105  }
 0x1f0   : > { %6682 = vst [vmem:[#allocation41_spill] sm:$0xff] %v5097_v1  ;;  %v1354_v21 = vpop.f32.mrb[75].mxu1  ;;  %v1635_v57 = vpop.f32.mrb[73].mxu0 }
 0x1f1   : > { %v5101_v30 = vpop.permute.xlu1 %2011  ;;  %v1636_v38 = vpop.f32.mrb[74].mxu0 }
 0x1f2   : > { %6683 = vst [vmem:[#allocation42_spill] sm:$0xff] %v5101_v30  ;;  %2017 = vrot.lane.b32.xlu0 %v1998_v39, %s4176_s1  ;;  %v1638_v12 = vpop.f32.mrb[75].mxu0 }
 0x1f3   : > { %v5104_v19 = vpop.permute.xlu0 %2967  ;;  %2023 = vrot.lane.b32.xlu1 %v2001_v40, %s4176_s1 }
 0x1f4   : > { %6684 = vst [vmem:[#allocation43_spill] sm:$0xff] %v5104_v19 }
 0x1f5   : > { %v1358_v52 = vpop.f32.mrb[76].mxu1  ;;  %v5107_v29 = vpop.permute.xlu1 %2019 }
 0x1f6   : > { %6685 = vst [vmem:[#allocation44_spill] sm:$0xff] %v5107_v29  ;;  %v1641_v1 = vpop.f32.mrb[76].mxu0  ;;  %v1360_v8 = vpop.f32.mrb[77].mxu1  ;;  %2068 = vrot.lane.b32.xlu0 %v1342_v9, %s4177_s13  ;;  %v2104_v9 = vsel %vm2103_vm4, %v4771_v44, %v4783_v47 }
 0x1f7   : > { %v1643_v28 = vpop.f32.mrb[77].mxu0  ;;  %v5110_v57 = vpop.f32.mrb[78].mxu1  ;;  %2062 = vrot.lane.b32.xlu1 %v1340_v13, %s4177_s13  ;;  %v2111_v13 = vmul.f32 %v2104_v9, %v1348_v11  ;;  %v2115_v44 = vmul.f32 %v2104_v9, %v1352_v18 }
 0x1f8   : > { %v5114_v43 = vpop.permute.xlu0 %2975  ;;  %v1644_v39 = vpop.f32.mrb[78].mxu0 }
 0x1f9   : > { %6686 = vst [vmem:[#allocation45_spill] sm:$0xff] %v5114_v43  ;;  %v1364_v12 = vpop.f32.mrb[79].mxu1  ;;  %v5116_v40 = vpop.permute.xlu1 %2058 }
 0x1fa   : > { %6687 = vst [vmem:[#allocation46_spill] sm:$0xff] %v5116_v40  ;;  %2025 = vrot.lane.b32.xlu0 %v2002_v10, %s4176_s1  ;;  %v1646_v19 = vpop.f32.mrb[79].mxu0 }
 0x1fb   : > { %2070 = vrot.lane.b32.xlu1 %v1344_v24, %s4177_s13 }
 0x1fc   : > { %v5123_v28 = vpop.permute.xlu0 %3014 }
 0x1fd   : > { %6688 = vst [vmem:[#allocation47_spill] sm:$0xff] %v5123_v28  ;;  %v5125_v45 = vpop.permute.xlu1 %2066  ;;  %v5127_v7 = vpop.f32.mrb[80].mxu0 }
 0x1fe   : > { %6689 = vst [vmem:[#allocation48_spill] sm:$0xff] %v5125_v45  ;;  %2064 = vrot.lane.b32.xlu0 %v1633_v22, %s4177_s13  ;;  %v1651_v43 = vpop.f32.mrb[81].mxu0  ;;  %v1368_v40 = vpop.f32.mrb[80].mxu1  ;;  %v2105_v22 = vsel %vm2103_vm4, %v4783_v47, %v4777_v46  ;;  %vm2142_vm4 = vcmask 736256  }
 0x1ff   : > { %2128 = vrot.lane.b32.xlu1 %v2111_v13, %s4179_s6  ;;  %v5131_v19 = vpop.f32.mrb[82].mxu0  ;;  %v1370_v24 = vpop.f32.mrb[81].mxu1  ;;  %v2112_v43 = vmul.f32 %v2105_v22, %v1350_v41  ;;  %v2116_v41 = vmul.f32 %v2105_v22, %v1354_v21  ;;  %v2172_v21 = vsel %vm2171_vm5, %v4789_v49, %v4785_v48 }
 0x200   : > { %v5133_v10 = vpop.permute.xlu0 %3022  ;;  %v5135_v29 = vpop.f32.mrb[82].mxu1 }
 0x201   : > { %6690 = vst [vmem:[#allocation49_spill] sm:$0xff] %v5133_v10  ;;  %v5137_v28 = vpop.permute.xlu1 %2969  ;;  %v5139_v11 = vpop.f32.mrb[83].mxu1  ;;  %v2113_v10 = vmul.f32 %v4777_v46, %v1641_v1 }
 0x202   : > { %6691 = vst [vmem:[#allocation50_spill] sm:$0xff] %v5137_v28  ;;  %2072 = vrot.lane.b32.xlu0 %v1636_v38, %s4177_s13  ;;  %v1654_v45 = vpop.f32.mrb[83].mxu0 }
 0x203   : > { %2136 = vrot.lane.b32.xlu1 %v2115_v44, %s4179_s6  ;;  %v2173_v44 = vsel %vm2171_vm5, %v4785_v48, %v4795_v51  ;;  %v2183_v48 = vmul.f32 %v2172_v21, %v5110_v57  ;;  %vm2210_vm5 = vcmask 490496  }
 0x204   : > { %v5146_v13 = vpop.permute.xlu0 %2126 }
 0x205   : > { %6692 = vst [vmem:[#allocation51_spill] sm:$0xff] %v5146_v13  ;;  %v1378_v18 = vpop.f32.mrb[84].mxu1  ;;  %v5149_v9 = vpop.permute.xlu1 %2977 }
 0x206   : > { %6693 = vst [vmem:[#allocation52_spill] sm:$0xff] %v5149_v9  ;;  %v5151_v28 = vpop.f32.mrb[85].mxu1  ;;  %2130 = vrot.lane.b32.xlu0 %v2112_v43, %s4179_s6  ;;  %v5154_v38 = vpop.f32.mrb[84].mxu0  ;;  %v2180_v9 = vmul.f32 %v2173_v44, %v1360_v8 }
 0x207   : > { %v5156_v45 = vpop.f32.mrb[86].mxu1  ;;  %2132 = vrot.lane.b32.xlu1 %v2113_v10, %s4179_s6  ;;  %v1659_v47 = vpop.f32.mrb[85].mxu0  ;;  %v2179_v10 = vmul.f32 %v2172_v21, %v1358_v52 }
 0x208   : > { %v5162_v1 = vpop.permute.xlu0 %2134  ;;  %v5164_v13 = vpop.f32.mrb[87].mxu1  ;;  %v2117_v47 = vmul.f32 %v4777_v46, %v1644_v39  ;;  %v2184_v46 = vmul.f32 %v2173_v44, %v1364_v12 }
 0x209   : > { %6694 = vst [vmem:[#allocation53_spill] sm:$0xff] %v5162_v1  ;;  %v5166_v30 = vpop.permute.xlu1 %3016  ;;  %v5168_v43 = vpop.f32.mrb[86].mxu0 }
 0x20a   : > { %6695 = vst [vmem:[#allocation54_spill] sm:$0xff] %v5166_v30  ;;  %2138 = vrot.lane.b32.xlu0 %v2116_v41, %s4179_s6  ;;  %v1662_v34 = vpop.f32.mrb[87].mxu0 }
 0x20b   : > { %2198 = vrot.lane.b32.xlu1 %v2180_v9, %s4180_s14 }
 0x20c   : > { %v5175_v22 = vpop.permute.xlu0 %3096 }
 0x20d   : > { %6696 = vst [vmem:[#allocation55_spill] sm:$0xff] %v5175_v22  ;;  %v5178_v1 = vpop.f32.mrb[88].mxu1  ;;  %v5180_v8 = vpop.permute.xlu1 %3024 }
 0x20e   : > { %6697 = vst [vmem:[#allocation56_spill] sm:$0xff] %v5180_v8  ;;  %v1665_v30 = vpop.f32.mrb[88].mxu0  ;;  %v5182_v26 = vpop.f32.mrb[89].mxu1  ;;  %2196 = vrot.lane.b32.xlu0 %v2179_v10, %s4180_s14 }
 0x20f   : > { %v1667_v34 = vpop.f32.mrb[89].mxu0  ;;  %v5185_v41 = vpop.f32.mrb[90].mxu1  ;;  %2140 = vrot.lane.b32.xlu1 %v2117_v47, %s4179_s6  ;;  %s6739_s6 = smov 44  }
 0x210   : > { %v5189_v49 = vpop.permute.xlu0 %3104  ;;  %v5191_v52 = vpop.f32.mrb[90].mxu0 }
 0x211   : > { %6698 = vst [vmem:[#allocation57_spill] sm:$0xff] %v5189_v49  ;;  %v5193_v39 = vpop.f32.mrb[91].mxu1  ;;  %v5195_v9 = vpop.permute.xlu1 %2194 }
 0x212   : > { %6699 = vst [vmem:[#allocation58_spill] sm:$0xff] %v5195_v9  ;;  %2204 = vrot.lane.b32.xlu0 %v2183_v48, %s4180_s14  ;;  %v1670_v22 = vpop.f32.mrb[91].mxu0 }
 0x213   : > { %2206 = vrot.lane.b32.xlu1 %v2184_v46, %s4180_s14  ;;  %v2181_v22 = vmul.f32 %v4795_v51, %v5127_v7 }
 0x214   : > { %v5199_v10 = vpop.permute.xlu0 %3162 }
 0x215   : > { %6700 = vst [vmem:[#allocation59_spill] sm:$0xff] %v5199_v10  ;;  %v5201_v34 = vpop.permute.xlu1 %3098  ;;  %v5203_v47 = vpop.f32.mrb[92].mxu0 }
 0x216   : > { %6701 = vst [vmem:[#allocation60_spill] sm:$0xff] %v5201_v34  ;;  %2243 = vrot.lane.b32.xlu0 %v1368_v40, %s4181_s28  ;;  %v1675_v57 = vpop.f32.mrb[93].mxu0  ;;  %v5206_v21 = vpop.f32.mrb[92].mxu1 }
 0x217   : > { %2245 = vrot.lane.b32.xlu1 %v1370_v24, %s4181_s28  ;;  %v5209_v12 = vpop.f32.mrb[94].mxu0  ;;  %v5211_v44 = vpop.f32.mrb[93].mxu1  ;;  %v2287_v24 = vsel %vm2286_vm6, %v4793_v50, %v4803_v54  ;;  %v2185_v50 = vmul.f32 %v4795_v51, %v5131_v19  ;;  %v2296_v51 = vmul.f32 %v4799_v53, %v1665_v30  ;;  %v2371_v30 = vsel %vm2369_vm7, %v4805_v55, %v4817_v59 }
 0x218   : > { %v5215_v48 = vpop.permute.xlu0 %3170  ;;  %v5217_v46 = vpop.f32.mrb[94].mxu1 }
 0x219   : > { %6702 = vst [vmem:[#allocation61_spill] sm:$0xff] %v5215_v48  ;;  %v5219_v49 = vpop.permute.xlu1 %2202  ;;  %v5221_v40 = vpop.f32.mrb[95].mxu1  ;;  %v2294_v48 = vmul.f32 %v2287_v24, %v1378_v18 }
 0x21a   : > { %6703 = vst [vmem:[#allocation62_spill] sm:$0xff] %v5219_v49  ;;  %2200 = vrot.lane.b32.xlu0 %v2181_v22, %s4180_s14  ;;  %v1678_v57 = vpop.f32.mrb[95].mxu0 }
 0x21b   : > { %2253 = vrot.lane.b32.xlu1 %v5139_v11, %s4181_s28 }
 0x21c   : > { %v5229_v7 = vpop.permute.xlu0 %3208 }
 0x21d   : > { %6704 = vst [vmem:[#allocation63_spill] sm:$0xff] %v5229_v7  ;;  %v5231_v10 = vpop.f32.mrb[96].mxu1  ;;  %v5233_v34 = vpop.permute.xlu1 %3106 }
 0x21e   : > { %6705 = vst [vmem:[#allocation64_spill] sm:$0xff] %v5233_v34  ;;  %v5235_v8 = vpop.f32.mrb[97].mxu1  ;;  %2251 = vrot.lane.b32.xlu0 %v5135_v29, %s4181_s28  ;;  %v5239_v22 = vpop.f32.mrb[96].mxu0  ;;  %v2298_v34 = vmul.f32 %v2287_v24, %v5156_v45 }
 0x21f   : > { %v5241_v57 = vpop.f32.mrb[98].mxu1  ;;  %2311 = vrot.lane.b32.xlu1 %v2294_v48, %s4162_s12  ;;  %v1683_v11 = vpop.f32.mrb[97].mxu0 }
 0x220   : > { %v5246_v18 = vpop.permute.xlu0 %2309  ;;  %v5248_v7 = vpop.f32.mrb[99].mxu1 }
 0x221   : > { %6706 = vst [vmem:[#allocation65_spill] sm:$0xff] %v5246_v18  ;;  %v5251_v49 = vpop.permute.xlu1 %2241  ;;  %v5253_v9 = vpop.f32.mrb[98].mxu0 }
 0x222   : > { %6707 = vst [vmem:[#allocation66_spill] sm:$0xff] %v5251_v49  ;;  %2208 = vrot.lane.b32.xlu0 %v2185_v50, %s4180_s14  ;;  %v1686_v29 = vpop.f32.mrb[99].mxu0 }
 0x223   : > { %2319 = vrot.lane.b32.xlu1 %v2298_v34, %s4162_s12 }
 0x224   : > { %v5257_v48 = vpop.permute.xlu0 %3216 }
 0x225   : > { %6708 = vst [vmem:[#allocation67_spill] sm:$0xff] %v5257_v48  ;;  %v5260_v19 = vpop.f32.mrb[100].mxu1  ;;  %v5262_v11 = vpop.permute.xlu1 %2249  ;;  %v2378_v48 = vmul.f32 %v2371_v30, %v5182_v26  ;;  %v2300_v26 = vmul.f32 %v4799_v53, %v5191_v52  ;;  %v2382_v52 = vmul.f32 %v2371_v30, %v5193_v39 }
 0x226   : > { %6709 = vst [vmem:[#allocation68_spill] sm:$0xff] %v5262_v11  ;;  %v5264_v18 = vpop.f32.mrb[100].mxu0  ;;  %v5266_v45 = vpop.f32.mrb[101].mxu1  ;;  %2247 = vrot.lane.b32.xlu0 %v5154_v38, %s4181_s28 }
 0x227   : > { %v1691_v24 = vpop.f32.mrb[101].mxu0  ;;  %v5270_v50 = vpop.f32.mrb[102].mxu1  ;;  %2315 = vrot.lane.b32.xlu1 %v2296_v51, %s4162_s12  ;;  %v2288_v51 = vsel %vm2286_vm6, %v4803_v54, %v4799_v53 }
 0x228   : > { %v5276_v34 = vpop.permute.xlu0 %2317  ;;  %v5278_v29 = vpop.f32.mrb[102].mxu0  ;;  %v2295_v24 = vmul.f32 %v2288_v51, %v5151_v28  ;;  %v2299_v28 = vmul.f32 %v2288_v51, %v5164_v13 }
 0x229   : > { %6710 = vst [vmem:[#allocation69_spill] sm:$0xff] %v5276_v34  ;;  %v5281_v11 = vpop.f32.mrb[103].mxu1  ;;  %v5283_v49 = vpop.permute.xlu1 %2392 }
 0x22a   : > { %6711 = vst [vmem:[#allocation70_spill] sm:$0xff] %v5283_v49  ;;  %2255 = vrot.lane.b32.xlu0 %v5168_v43, %s4181_s28  ;;  %v1694_v38 = vpop.f32.mrb[103].mxu0  ;;  %s6759_s28 = smov 54  }
 0x22b   : > { %2396 = vrot.lane.b32.xlu1 %v2378_v48, %s4182_s5 }
 0x22c   : > { %v5292_v34 = vpop.permute.xlu0 %3275 }
 0x22d   : > { %6712 = vst [vmem:[#allocation71_spill] sm:$0xff] %v5292_v34  ;;  %v5296_v37 = vpop.permute.xlu1 %2400  ;;  %v5298_v49 = vpop.f32.mrb[104].mxu0 }
 0x22e   : > { %6713 = vst [vmem:[#allocation72_spill] sm:$0xff] %v5296_v37  ;;  %2313 = vrot.lane.b32.xlu0 %v2295_v24, %s4162_s12  ;;  %v1699_v43 = vpop.f32.mrb[105].mxu0  ;;  %v5301_v38 = vpop.f32.mrb[104].mxu1 }
 0x22f   : > { %2323 = vrot.lane.b32.xlu1 %v2300_v26, %s4162_s12  ;;  %v5304_v54 = vpop.f32.mrb[106].mxu0  ;;  %v5306_v48 = vpop.f32.mrb[105].mxu1  ;;  %v2370_v26 = vsel %vm2369_vm7, %v4811_v56, %v4805_v55  ;;  %vm2257_vm7 = vcmask 474112  }
 0x230   : > { %v5309_v34 = vpop.permute.xlu0 %3283  ;;  %v5311_v53 = vpop.f32.mrb[106].mxu1  ;;  %v2377_v13 = vmul.f32 %v2370_v26, %v5178_v1  ;;  %v2381_v56 = vmul.f32 %v2370_v26, %v5185_v41 }
 0x231   : > { %6714 = vst [vmem:[#allocation73_spill] sm:$0xff] %v5309_v34  ;;  %v5314_v37 = vpop.permute.xlu1 %2439  ;;  %v5316_v24 = vpop.f32.mrb[107].mxu1 }
 0x232   : > { %6715 = vst [vmem:[#allocation74_spill] sm:$0xff] %v5314_v37  ;;  %2321 = vrot.lane.b32.xlu0 %v2299_v28, %s4162_s12  ;;  %v1702_v43 = vpop.f32.mrb[107].mxu0  ;;  %s6743_s12 = smov 41  }
 0x233   : > { %2404 = vrot.lane.b32.xlu1 %v2382_v52, %s4182_s5 }
 0x234   : > { %v5324_v51 = vpop.permute.xlu0 %2522 }
 0x235   : > { %6716 = vst [vmem:[#allocation75_spill] sm:$0xff] %v5324_v51  ;;  %v5326_v34 = vpop.f32.mrb[108].mxu1  ;;  %v5328_v39 = vpop.permute.xlu1 %2447 }
 0x236   : > { %6717 = vst [vmem:[#allocation76_spill] sm:$0xff] %v5328_v39  ;;  %v5330_v30 = vpop.f32.mrb[109].mxu1  ;;  %2394 = vrot.lane.b32.xlu0 %v2377_v13, %s4182_s5  ;;  %v5333_v28 = vpop.f32.mrb[108].mxu0 }
 0x237   : > { %v5335_v43 = vpop.f32.mrb[110].mxu1  ;;  %2443 = vrot.lane.b32.xlu1 %v5211_v44, %s4184_s26  ;;  %v1707_v55 = vpop.f32.mrb[109].mxu0  ;;  %v2500_v44 = vsel %vm2499_vm8, %v4813_v58, %v4823_v61  ;;  %v2749_v58 = vsel %vm2747_vm1, %v4856_v25, %v4879_v33 }
 0x238   : > { %v5340_v1 = vpop.f32.mrb[111].mxu1  ;;  %v5344_v39 = vpop.f32.mrb[110].mxu0  ;;  %v2507_v41 = vmul.f32 %v2500_v44, %v5231_v10  ;;  %v2511_v15 = vmul.f32 %v2500_v44, %v5241_v57 }
 0x239   : > { %v5342_v52 = vpop.permute.xlu1 %2589  ;;  %v1710_v13 = vpop.f32.mrb[111].mxu0 }
 0x23a   : > { %6718 = vst [vmem:[#allocation77_spill] sm:$0xff] %v5342_v52  ;;  %2402 = vrot.lane.b32.xlu0 %v2381_v56, %s4182_s5  ;;  %v5352_v55 = vpop.permute.xlu0 %2530  ;;  %v2748_v52 = vsel %vm2747_vm1, %v4860_v14, %v4856_v25  ;;  %v2379_v14 = vmul.f32 %v4817_v59, %v5203_v47 }
 0x23b   : > { %2451 = vrot.lane.b32.xlu1 %v5221_v40, %s4184_s26  ;;  %6719 = vst [vmem:[#allocation78_spill] sm:$0xff] %v5352_v55 }
 0x23d   : > { %v1448_v26 = vpop.f32.mrb[112].mxu1  ;;  %v5358_v51 = vpop.permute.xlu1 %2597 }
 0x23e   : > { %6720 = vst [vmem:[#allocation79_spill] sm:$0xff] %v5358_v51  ;;  %v5360_v56 = vmul.f32 %v2748_v52, %v1448_v26  ;;  %v5362_v13 = vpop.f32.mrb[112].mxu0  ;;  %v1450_v40 = vpop.f32.mrb[113].mxu1  ;;  %2441 = vrot.lane.b32.xlu0 %v5206_v21, %s4184_s26 }
 0x23f   : > { %v5369_v10 = vmul.f32 %v2749_v58, %v1450_v40  ;;  %v1715_v55 = vpop.f32.mrb[113].mxu0  ;;  %v1452_v37 = vpop.f32.mrb[114].mxu1  ;;  %2524 = vrot.lane.b32.xlu1 %v2507_v41, %s4185_s25 }
 0x240   : > { %v5374_v26 = vmul.f32 %v2748_v52, %v1452_v37  ;;  %v5376_v51 = vpop.f32.mrb[114].mxu0  ;;  %v1454_v62 = vpop.f32.mrb[115].mxu1  ;;  %v2509_v37 = vmul.f32 %v4821_v60, %v5264_v18  ;;  %v2568_v18 = vsel %vm2325_vm9, %v4827_v63, %v4839_v3 }
 0x241   : > { %v5379_v25 = vmul.f32 %v2749_v58, %v1454_v62  ;;  %v5381_v27 = vpop.permute.xlu0 %1862  ;;  %v5383_v21 = vpop.permute.xlu1 %2635 }
 0x242   : > { %6721 = vst [vmem:[#allocation80_spill] sm:$0xff] %v5383_v21  ;;  %2398 = vrot.lane.b32.xlu0 %v2379_v14, %s4182_s5  ;;  %v1718_v55 = vpop.f32.mrb[115].mxu0 }
 0x243   : > { %2532 = vrot.lane.b32.xlu1 %v2511_v15, %s4185_s25  ;;  %v2383_v15 = vmul.f32 %v4817_v59, %v5209_v12  ;;  %v2513_v59 = vmul.f32 %v4821_v60, %v5278_v29 }
 0x245   : > { %v5389_v47 = vpop.permute.xlu0 %1870  ;;  %v5391_v52 = vpop.permute.xlu1 %2643 }
 0x246   : > { %6722 = vst [vmem:[#allocation81_spill] sm:$0xff] %v5389_v47  ;;  %6723 = vst [vmem:[#allocation82_spill] sm:$0xff] %v5391_v52  ;;  %v5393_v57 = vpop.f32.mrb[116].mxu0  ;;  %2449 = vrot.lane.b32.xlu0 %v5217_v46, %s4184_s26  ;;  %v5397_v62 = vpop.f32.mrb[116].mxu1  ;;  %v2575_v46 = vmul.f32 %v2568_v18, %v5266_v45 }
 0x247   : > { %v1723_v44 = vpop.f32.mrb[117].mxu0  ;;  %2528 = vrot.lane.b32.xlu1 %v2509_v37, %s4185_s25  ;;  %v5400_v41 = vpop.f32.mrb[117].mxu1 }
 0x248   : > { %v5407_v40 = vpop.f32.mrb[118].mxu0  ;;  %v5409_v58 = vpop.f32.mrb[118].mxu1 }
 0x249   : > { %v5412_v14 = vpop.permute.xlu0 %1866  ;;  %v5414_v55 = vpop.permute.xlu1 %1864 }
 0x24a   : > { %6724 = vst [vmem:[#allocation83_spill] sm:$0xff] %v5412_v14  ;;  %6725 = vst [vmem:[#allocation84_spill] sm:$0xff] %v5414_v55  ;;  %2406 = vrot.lane.b32.xlu0 %v2383_v15, %s4182_s5  ;;  %v5417_v37 = vpop.f32.mrb[119].mxu1  ;;  %v1726_v44 = vpop.f32.mrb[119].mxu0  ;;  %s6772_s5 = smov 49  }
 0x24b   : > { %2593 = vrot.lane.b32.xlu1 %v2575_v46, %s4159_s27 }
 0x24d   : > { %v5422_v12 = vpop.permute.xlu0 %1874  ;;  %v5424_v52 = vpop.f32.mrb[120].mxu1 }
 0x24e   : > { %6726 = vst [vmem:[#allocation85_spill] sm:$0xff] %v5422_v12  ;;  %v5426_v21 = vpop.permute.xlu1 %1872  ;;  %v5428_v45 = vpop.f32.mrb[121].mxu1  ;;  %2445 = vrot.lane.b32.xlu0 %v5239_v22, %s4184_s26  ;;  %v2579_v12 = vmul.f32 %v2568_v18, %v5281_v11 }
 0x24f   : > { %6727 = vst [vmem:[#allocation86_spill] sm:$0xff] %v5426_v21  ;;  %v5432_v15 = vpop.f32.mrb[122].mxu1  ;;  %2536 = vrot.lane.b32.xlu1 %v2513_v59, %s4185_s25  ;;  %v5435_v44 = vpop.f32.mrb[120].mxu0  ;;  %v2501_v59 = vsel %vm2499_vm8, %v4823_v61, %v4821_v60 }
 0x250   : > { %v5437_v46 = vpop.f32.mrb[123].mxu1  ;;  %v1731_v29 = vpop.f32.mrb[121].mxu0  ;;  %v2512_v60 = vmul.f32 %v2501_v59, %v5248_v7 }
 0x251   : > { %v5440_v14 = vpop.permute.xlu0 %1947  ;;  %v5442_v55 = vpop.f32.mrb[122].mxu0  ;;  %v2508_v29 = vmul.f32 %v2501_v59, %v5235_v8  ;;  %v2680_v59 = vsel %vm2679_vm10, %v4833_v2, %v4854_v23 }
 0x252   : > { %6728 = vst [vmem:[#allocation87_spill] sm:$0xff] %v5440_v14  ;;  %v5444_v21 = vpop.permute.xlu1 %1945  ;;  %2453 = vrot.lane.b32.xlu0 %v5253_v9, %s4184_s26  ;;  %v1734_v22 = vpop.f32.mrb[123].mxu0 }
 0x253   : > { %2601 = vrot.lane.b32.xlu1 %v2579_v12, %s4159_s27 }
 0x255   : > { %v5453_v47 = vpop.permute.xlu0 %1955  ;;  %v5455_v11 = vpop.f32.mrb[124].mxu1 }
 0x256   : > { %6729 = vst [vmem:[#allocation88_spill] sm:$0xff] %v5453_v47  ;;  %v5457_v18 = vpop.permute.xlu1 %1953  ;;  %v5459_v14 = vpop.f32.mrb[124].mxu0  ;;  %2526 = vrot.lane.b32.xlu0 %v2508_v29, %s4185_s25 }
 0x257   : > { %6730 = vst [vmem:[#allocation89_spill] sm:$0xff] %v5457_v18  ;;  %v5462_v9 = vpop.f32.mrb[125].mxu1  ;;  %v1739_v22 = vpop.f32.mrb[125].mxu0  ;;  %2639 = vrot.lane.b32.xlu1 %v5306_v48, %s4177_s13  ;;  %v2567_v48 = vsel %vm2325_vm9, %v4831_v0, %v4827_v63 }
 0x258   : > { %v5467_v61 = vpop.f32.mrb[126].mxu1  ;;  %v5469_v8 = vpop.f32.mrb[126].mxu0  ;;  %v2574_v7 = vmul.f32 %v2567_v48, %v5260_v19  ;;  %v2687_v22 = vmul.f32 %v2680_v59, %v5326_v34 }
 0x259   : > { %v5471_v12 = vpop.f32.mrb[127].mxu1  ;;  %v5473_v47 = vpop.permute.xlu0 %2013 }
 0x25a   : > { %6731 = vst [vmem:[#allocation90_spill] sm:$0xff] %v5473_v47  ;;  %v5475_v18 = vpop.permute.xlu1 %1949  ;;  %2534 = vrot.lane.b32.xlu0 %v2512_v60, %s4185_s25  ;;  %v1742_v29 = vpop.f32.mrb[127].mxu0 }
 0x25b   : > { %6732 = vst [vmem:[#allocation91_spill] sm:$0xff] %v5475_v18  ;;  %2647 = vrot.lane.b32.xlu1 %v5316_v24, %s4177_s13  ;;  %v2578_v24 = vmul.f32 %v2567_v48, %v5270_v50  ;;  %v2691_v29 = vmul.f32 %v2680_v59, %v5335_v43  ;;  %v3075_v43 = vsel %vm2747_vm1, %v4931_v20, %v4947_v32  ;;  %vm1959_vm1 = vcmask 1014784  }
 0x25d   : > { %v5488_v47 = vpop.permute.xlu0 %2021  ;;  %v5490_v18 = vpop.f32.mrb[128].mxu1 }
 0x25e   : > { %6733 = vst [vmem:[#allocation92_spill] sm:$0xff] %v5488_v47  ;;  %6734 = vst [vmem:[#allocation93_spill] sm:$0xff] %v5490_v18  ;;  %v5492_v60 = vpop.permute.xlu1 %2015  ;;  %2591 = vrot.lane.b32.xlu0 %v2574_v7, %s4159_s27  ;;  %v5495_v63 = vpop.f32.mrb[129].mxu1 }
 0x25f   : > { %6735 = vst [vmem:[#allocation94_spill] sm:$0xff] %v5492_v60  ;;  %2704 = vrot.lane.b32.xlu1 %v2687_v22, %s4170_s23  ;;  %v5498_v0 = vpop.f32.mrb[130].mxu1  ;;  %v1745_v19 = vpop.f32.mrb[128].mxu0  ;;  %v2689_v22 = vmul.f32 %v4841_v4, %v5362_v13 }
 0x260   : > { %6736 = vst [vmem:[#allocation95_spill] sm:$0xff] %v5498_v0  ;;  %v5501_v2 = vpop.f32.mrb[131].mxu1  ;;  %v1746_v34 = vpop.f32.mrb[129].mxu0 }
 0x261   : > { %v5504_v47 = vpop.permute.xlu0 %2060  ;;  %v1747_v18 = vpop.f32.mrb[130].mxu0  ;;  %v2576_v34 = vmul.f32 %v4839_v3, %v5298_v49 }
 0x262   : > { %v5506_v60 = vpop.permute.xlu1 %1957  ;;  %2599 = vrot.lane.b32.xlu0 %v2578_v24, %s4159_s27  ;;  %v1748_v7 = vpop.f32.mrb[131].mxu0 }
 0x263   : > { %2712 = vrot.lane.b32.xlu1 %v2691_v29, %s4170_s23 }
 0x265   : > { %v5512_v19 = vpop.permute.xlu0 %2017  ;;  %v1498_v50 = vpop.f32.mrb[132].mxu1 }
 0x266   : > { %v5517_v48 = vmul.f32 %v3075_v43, %v1498_v50  ;;  %v5519_v18 = vpop.permute.xlu1 %2023  ;;  %v5521_v59 = vpop.f32.mrb[133].mxu1  ;;  %2637 = vrot.lane.b32.xlu0 %v5301_v38, %s4177_s13 }
 0x267   : > { %v1502_v24 = vpop.f32.mrb[134].mxu1  ;;  %2708 = vrot.lane.b32.xlu1 %v2689_v22, %s4170_s23  ;;  %v1751_v13 = vpop.f32.mrb[132].mxu0  ;;  %v2693_v22 = vmul.f32 %v4841_v4, %v5376_v51 }
 0x268   : > { %6737 = vst [vmem:[#allocation96_spill] sm:$0xff] %v5517_v48  ;;  %v5528_v29 = vmul.f32 %v3075_v43, %v1502_v24  ;;  %v5530_v7 = vpop.f32.mrb[135].mxu1  ;;  %v1752_v20 = vpop.f32.mrb[133].mxu0 }
 0x269   : > { %v5532_v50 = vpop.permute.xlu0 %2068  ;;  %v1753_v48 = vpop.f32.mrb[134].mxu0 }
 0x26a   : > { %6738 = vst [vmem:[#allocation97_spill] sm:$0xff] %v5528_v29  ;;  %v5534_v0 = vpop.permute.xlu1 %2062  ;;  %2595 = vrot.lane.b32.xlu0 %v2576_v34, %s4159_s27  ;;  %v1754_v38 = vpop.f32.mrb[135].mxu0 }
 0x26b   : > { %2774 = vrot.lane.b32.xlu1 %v5369_v10, %s6739_s6  ;;  %v2580_v10 = vmul.f32 %v4839_v3, %v5304_v54 }
 0x26d   : > { %v5541_v49 = vpop.permute.xlu0 %2025  ;;  %v5543_v43 = vpop.f32.mrb[136].mxu1 }
 0x26e   : > { %v5545_v24 = vpop.permute.xlu1 %2070  ;;  %v5547_v13 = vpop.f32.mrb[137].mxu1  ;;  %2645 = vrot.lane.b32.xlu0 %v5311_v53, %s4177_s13 }
 0x26f   : > { %6740 = vst [vmem:[#allocation98_spill] sm:$0xff] %v5545_v24  ;;  %6741 = vst [vmem:[#allocation99_spill] sm:$0xff] %v5547_v13  ;;  %v5551_v48 = vpop.f32.mrb[138].mxu1  ;;  %2716 = vrot.lane.b32.xlu1 %v2693_v22, %s4170_s23  ;;  %v1757_v34 = vpop.f32.mrb[136].mxu0 }
 0x270   : > { %v5556_v51 = vpop.f32.mrb[139].mxu1  ;;  %v1758_v20 = vpop.f32.mrb[137].mxu0 }
 0x271   : > { %6742 = vst [vmem:[#allocation100_spill] sm:$0xff] %v5556_v51  ;;  %v5558_v38 = vpop.permute.xlu0 %2064  ;;  %v1759_v29 = vpop.f32.mrb[138].mxu0 }
 0x272   : > { %v5560_v24 = vpop.permute.xlu1 %2128  ;;  %2603 = vrot.lane.b32.xlu0 %v2580_v10, %s4159_s27  ;;  %v1760_v13 = vpop.f32.mrb[139].mxu0  ;;  %s6751_s27 = smov 38  }
 0x273   : > { %2782 = vrot.lane.b32.xlu1 %v5379_v25, %s6739_s6 }
 0x275   : > { %v5565_v53 = vpop.permute.xlu0 %2072  ;;  %v5567_v22 = vpop.f32.mrb[140].mxu0 }
 0x276   : > { %v5569_v34 = vpop.permute.xlu1 %2136  ;;  %2641 = vrot.lane.b32.xlu0 %v5333_v28, %s4177_s13  ;;  %v1765_v3 = vpop.f32.mrb[141].mxu0 }
 0x277   : > { %2821 = vrot.lane.b32.xlu1 %v5400_v41, %s6743_s12  ;;  %v5575_v54 = vpop.f32.mrb[142].mxu0  ;;  %v5577_v29 = vpop.f32.mrb[140].mxu1  ;;  %v2681_v41 = vsel %vm2679_vm10, %v4854_v23, %v4841_v4  ;;  %vm2408_vm10 = vcmask 146432  }
 0x278   : > { %v5579_v13 = vpop.f32.mrb[141].mxu1  ;;  %v1768_v25 = vpop.f32.mrb[143].mxu0  ;;  %v2688_v3 = vmul.f32 %v2681_v41, %v5330_v30 }
 0x279   : > { %6744 = vst [vmem:[#allocation101_spill] sm:$0xff] %v5579_v13  ;;  %v5581_v10 = vpop.permute.xlu0 %2130  ;;  %v5583_v20 = vpop.f32.mrb[142].mxu1  ;;  %v2863_v25 = vsel %vm2862_vm11, %v4867_v5, %v4893_v31  ;;  %v2692_v5 = vmul.f32 %v2681_v41, %v5340_v1 }
 0x27a   : > { %6745 = vst [vmem:[#allocation102_spill] sm:$0xff] %v5581_v10  ;;  %v5585_v51 = vpop.permute.xlu1 %2132  ;;  %2649 = vrot.lane.b32.xlu0 %v5344_v39, %s4177_s13  ;;  %v5589_v28 = vpop.f32.mrb[143].mxu1  ;;  %v2870_v13 = vmul.f32 %v2863_v25, %v5424_v52 }
 0x27b   : > { %6746 = vst [vmem:[#allocation103_spill] sm:$0xff] %v5585_v51  ;;  %6747 = vst [vmem:[#allocation104_spill] sm:$0xff] %v5589_v28  ;;  %2829 = vrot.lane.b32.xlu1 %v5417_v37, %s6743_s12  ;;  %v2874_v37 = vmul.f32 %v2863_v25, %v5432_v15 }
 0x27d   : > { %v5601_v51 = vpop.permute.xlu0 %2138  ;;  %v5603_v39 = vpop.f32.mrb[144].mxu1 }
 0x27e   : > { %6748 = vst [vmem:[#allocation105_spill] sm:$0xff] %v5603_v39  ;;  %v5605_v28 = vpop.permute.xlu1 %2198  ;;  %v5607_v10 = vpop.f32.mrb[145].mxu1  ;;  %2706 = vrot.lane.b32.xlu0 %v2688_v3, %s4170_s23 }
 0x27f   : > { %6749 = vst [vmem:[#allocation106_spill] sm:$0xff] %v5605_v28  ;;  %6750 = vst [vmem:[#allocation107_spill] sm:$0xff] %v5607_v10  ;;  %v5610_v4 = vpop.f32.mrb[146].mxu1  ;;  %2887 = vrot.lane.b32.xlu1 %v2870_v13, %s6751_s27  ;;  %v5613_v23 = vpop.f32.mrb[144].mxu0  ;;  %v2872_v13 = vmul.f32 %v4881_v35, %v5459_v14  ;;  %v2954_v14 = vmul.f32 %v4917_v6, %v5462_v9 }
 0x280   : > { %v5616_v30 = vpop.f32.mrb[147].mxu1  ;;  %v1773_v52 = vpop.f32.mrb[145].mxu0 }
 0x281   : > { %6752 = vst [vmem:[#allocation108_spill] sm:$0xff] %v5616_v30  ;;  %v5619_v39 = vpop.permute.xlu0 %2196  ;;  %v5621_v28 = vpop.f32.mrb[146].mxu0 }
 0x282   : > { %v5623_v10 = vpop.permute.xlu1 %2140  ;;  %2714 = vrot.lane.b32.xlu0 %v2692_v5, %s4170_s23  ;;  %v1776_v3 = vpop.f32.mrb[147].mxu0  ;;  %s6789_s23 = smov 97  }
 0x283   : > { %2895 = vrot.lane.b32.xlu1 %v2874_v37, %s6751_s27 }
 0x285   : > { %v5629_v1 = vpop.permute.xlu0 %2204  ;;  %v5631_v41 = vpop.f32.mrb[148].mxu1 }
 0x286   : > { %6753 = vst [vmem:[#allocation109_spill] sm:$0xff] %v5631_v41  ;;  %v5633_v52 = vpop.permute.xlu1 %2206  ;;  %v5635_v15 = vpop.f32.mrb[148].mxu0  ;;  %2772 = vrot.lane.b32.xlu0 %v5360_v56, %s6739_s6 }
 0x287   : > { %6754 = vst [vmem:[#allocation110_spill] sm:$0xff] %v5635_v15  ;;  %v5639_v25 = vpop.f32.mrb[149].mxu1  ;;  %v1781_v5 = vpop.f32.mrb[149].mxu0  ;;  %2891 = vrot.lane.b32.xlu1 %v2872_v13, %s6751_s27  ;;  %v2876_v13 = vmul.f32 %v4881_v35, %v5469_v8  ;;  %v2757_v8 = vmul.f32 %v4879_v33, %v5393_v57 }
 0x288   : > { %6755 = vst [vmem:[#allocation111_spill] sm:$0xff] %v5639_v25  ;;  %v5642_v37 = vpop.f32.mrb[150].mxu1  ;;  %v5644_v3 = vpop.f32.mrb[150].mxu0  ;;  %v6805_v25 = vld [vmem:[#allocation24_spill] sm:$0xff] }
 0x289   : > { %6756 = vst [vmem:[#allocation112_spill] sm:$0xff] %v5642_v37  ;;  %6757 = vst [vmem:[#allocation113_spill] sm:$0xff] %v5644_v3  ;;  %v5648_v41 = vpop.f32.mrb[151].mxu1  ;;  %v5650_v30 = vpop.permute.xlu0 %2243 }
 0x28a   : > { %6758 = vst [vmem:[#allocation114_spill] sm:$0xff] %v5648_v41  ;;  %v5652_v15 = vpop.permute.xlu1 %2245  ;;  %2780 = vrot.lane.b32.xlu0 %v5374_v26, %s6739_s6  ;;  %v1784_v56 = vpop.f32.mrb[151].mxu0 }
 0x28b   : > { %2973 = vrot.lane.b32.xlu1 %v2954_v14, %s6759_s28 }
 0x28d   : > { %v5659_v5 = vpop.permute.xlu0 %2200  ;;  %v5661_v37 = vpop.f32.mrb[152].mxu0 }
 0x28e   : > { %6760 = vst [vmem:[#allocation115_spill] sm:$0xff] %v5659_v5  ;;  %6761 = vst [vmem:[#allocation116_spill] sm:$0xff] %v5661_v37  ;;  %v5663_v9 = vpop.permute.xlu1 %2253  ;;  %2819 = vrot.lane.b32.xlu0 %v5397_v62, %s6743_s12  ;;  %v5667_v41 = vpop.f32.mrb[153].mxu0  ;;  %v2958_v37 = vmul.f32 %v4917_v6, %v5471_v12 }
 0x28f   : > { %6762 = vst [vmem:[#allocation117_spill] sm:$0xff] %v5667_v41  ;;  %2899 = vrot.lane.b32.xlu1 %v2876_v13, %s6751_s27  ;;  %v5670_v26 = vpop.f32.mrb[154].mxu0  ;;  %v5672_v56 = vpop.f32.mrb[152].mxu1 }
 0x290   : > { %6763 = vst [vmem:[#allocation118_spill] sm:$0xff] %v5670_v26  ;;  %6764 = vst [vmem:[#allocation119_spill] sm:$0xff] %v5672_v56  ;;  %v5676_v14 = vpop.f32.mrb[155].mxu0  ;;  %v5678_v3 = vpop.f32.mrb[153].mxu1 }
 0x291   : > { %6765 = vst [vmem:[#allocation120_spill] sm:$0xff] %v5676_v14  ;;  %6766 = vst [vmem:[#allocation121_spill] sm:$0xff] %v5678_v3  ;;  %v5682_v5 = vpop.permute.xlu0 %2251  ;;  %v5684_v62 = vpop.f32.mrb[154].mxu1 }
 0x292   : > { %6767 = vst [vmem:[#allocation122_spill] sm:$0xff] %v5684_v62  ;;  %v5686_v41 = vpop.permute.xlu1 %2311  ;;  %2776 = vrot.lane.b32.xlu0 %v2757_v8, %s6739_s6  ;;  %v5689_v13 = vpop.f32.mrb[155].mxu1 }
 0x293   : > { %6768 = vst [vmem:[#allocation123_spill] sm:$0xff] %v5689_v13  ;;  %2981 = vrot.lane.b32.xlu1 %v2958_v37, %s6759_s28  ;;  %v2761_v37 = vmul.f32 %v4879_v33, %v5407_v40  ;;  %v3083_v33 = vmul.f32 %v4947_v32, %v5521_v59 }
 0x295   : > { %v5692_v57 = vpop.permute.xlu0 %2208  ;;  %v5694_v26 = vpop.f32.mrb[156].mxu1 }
 0x296   : > { %6769 = vst [vmem:[#allocation124_spill] sm:$0xff] %v5694_v26  ;;  %v5696_v14 = vpop.permute.xlu1 %2319  ;;  %v5698_v56 = vpop.f32.mrb[157].mxu1  ;;  %2827 = vrot.lane.b32.xlu0 %v5409_v58, %s6743_s12 }
 0x297   : > { %6770 = vst [vmem:[#allocation125_spill] sm:$0xff] %v5698_v56  ;;  %v5702_v12 = vpop.f32.mrb[158].mxu1  ;;  %3020 = vrot.lane.b32.xlu1 %v5495_v63, %s6772_s5  ;;  %v5706_v8 = vpop.f32.mrb[156].mxu0 }
 0x298   : > { %6771 = vst [vmem:[#allocation126_spill] sm:$0xff] %v5702_v12  ;;  %6773 = vst [vmem:[#allocation127_spill] sm:$0xff] %v5706_v8  ;;  %v5710_v62 = vpop.f32.mrb[159].mxu1  ;;  %v5712_v26 = vpop.f32.mrb[157].mxu0  ;;  %v6794_v8 = vld [vmem:[#allocation10_spill] sm:$0xff] }
 0x299   : > { %6774 = vst [vmem:[#allocation128_spill] sm:$0xff] %v5710_v62  ;;  %6775 = vst [vmem:[#allocation129_spill] sm:$0xff] %v5712_v26  ;;  %v5714_v13 = vpop.permute.xlu0 %2247  ;;  %v5716_v56 = vpop.f32.mrb[158].mxu0  ;;  %v6798_v26 = vld [vmem:[#allocation18_spill] sm:$0xff] }
 0x29a   : > { %6776 = vst [vmem:[#allocation130_spill] sm:$0xff] %v5714_v13  ;;  %6777 = vst [vmem:[#allocation131_spill] sm:$0xff] %v5716_v56  ;;  %v5718_v3 = vpop.permute.xlu1 %2315  ;;  %2784 = vrot.lane.b32.xlu0 %v2761_v37, %s6739_s6  ;;  %v5721_v58 = vpop.f32.mrb[159].mxu0 }
 0x29b   : > { %6778 = vst [vmem:[#allocation132_spill] sm:$0xff] %v5718_v3  ;;  %6779 = vst [vmem:[#allocation133_spill] sm:$0xff] %v5721_v58  ;;  %3028 = vrot.lane.b32.xlu1 %v5501_v2, %s6772_s5  ;;  %v3087_v2 = vmul.f32 %v4947_v32, %v5530_v7  ;;  %v6795_v58 = vld [vmem:[#allocation15_spill] sm:$0xff] }
 0x29c   : > { %v6804_v3 = vld [vmem:[#allocation23_spill] sm:$0xff] }
 0x29d   : > { %v5727_v40 = vpop.permute.xlu0 %2255  ;;  %v5729_v63 = vpop.f32.mrb[160].mxu0 }
 0x29e   : > { %6780 = vst [vmem:[#allocation134_spill] sm:$0xff] %v5729_v63  ;;  %v5731_v12 = vpop.permute.xlu1 %2396  ;;  %2823 = vrot.lane.b32.xlu0 %v5435_v44, %s6743_s12  ;;  %v5735_v56 = vpop.f32.mrb[161].mxu0  ;;  %v2864_v44 = vsel %vm2862_vm11, %v4893_v31, %v4881_v35  ;;  %vm2455_vm11 = vcmask 121856  }
 0x29f   : > { %6781 = vst [vmem:[#allocation135_spill] sm:$0xff] %v5731_v12  ;;  %6782 = vst [vmem:[#allocation136_spill] sm:$0xff] %v5735_v56  ;;  %3102 = vrot.lane.b32.xlu1 %v3083_v33, %s6739_s6  ;;  %v5738_v37 = vpop.f32.mrb[162].mxu0  ;;  %v2871_v33 = vmul.f32 %v2864_v44, %v5428_v45  ;;  %v2875_v35 = vmul.f32 %v2864_v44, %v5437_v46  ;;  %v6792_v45 = vld [vmem:[#allocation11_spill] sm:$0xff] }
 0x2a0   : > { %6783 = vst [vmem:[#allocation137_spill] sm:$0xff] %v5738_v37  ;;  %v5740_v62 = vpop.f32.mrb[163].mxu0  ;;  %v3140_v37 = vsel %vm2983_vm12, %v4945_v42, %v4962_v16  ;;  %v6791_v42 = vld [vmem:[#allocation13_spill] sm:$0xff] }
 0x2a1   : > { %6784 = vst [vmem:[#allocation138_spill] sm:$0xff] %v5740_v62  ;;  %v5744_v59 = vpop.permute.xlu0 %2313  ;;  %v3147_v32 = vmul.f32 %v3140_v37, %v5543_v43  ;;  %v3151_v31 = vmul.f32 %v3140_v37, %v5551_v48  ;;  %v1844_v43 = vmul.f32 %v6792_v45, %v6791_v42  ;;  %v6797_v48 = vld [vmem:[#allocation14_spill] sm:$0xff]  ;;  %v5787_v42 = vsel %vm2983_vm12, %v4962_v16, %v4988_v17 }
 0x2a2   : > { %6785 = vst [vmem:[#allocation139_spill] sm:$0xff] %v5744_v59  ;;  %v5746_v63 = vpop.permute.xlu1 %2323  ;;  %2831 = vrot.lane.b32.xlu0 %v5442_v55, %s6743_s12  ;;  %v1848_v37 = vmul.f32 %v6792_v45, %v6797_v48  ;;  %v6802_v48 = vld [vmem:[#allocation81_spill] sm:$0xff]  ;;  %v6825_v59 = vld [vmem:[#allocation44_spill] sm:$0xff] }
 0x2a3   : > { %6786 = vst [vmem:[#allocation140_spill] sm:$0xff] %v5746_v63  ;;  %3110 = vrot.lane.b32.xlu1 %v3087_v2, %s6739_s6  ;;  %v6793_v2 = vld [vmem:[#allocation12_spill] sm:$0xff] }
 0x2a4   : > { %v1838_v56 = vsel %vm1837_vm13, %v6792_v45, %v6793_v2  ;;  %v6824_v63 = vld [vmem:[#allocation92_spill] sm:$0xff] }
 0x2a5   : > { %v5759_v7 = vpop.permute.xlu0 %2321  ;;  %v1845_v44 = vmul.f32 %v1838_v56, %v5023_v36  ;;  %v6803_v36 = vld [vmem:[#allocation33_spill] sm:$0xff]  ;;  %v1849_v13 = vmul.f32 %v1838_v56, %v6804_v3  ;;  %v6811_v56 = vld [vmem:[#allocation83_spill] sm:$0xff] }
 0x2a6   : > { %6787 = vst [vmem:[#allocation141_spill] sm:$0xff] %v5759_v7  ;;  %v5761_v62 = vpop.permute.xlu1 %2404  ;;  %2889 = vrot.lane.b32.xlu0 %v2871_v33, %s6751_s27  ;;  %v1839_v33 = vsel %vm1837_vm13, %v6793_v2, %v6794_v8  ;;  %v6799_v2 = vld [vmem:[#allocation16_spill] sm:$0xff]  ;;  %vm2538_vm13 = vcmask 97280  }
 0x2a7   : > { %6788 = vst [vmem:[#allocation142_spill] sm:$0xff] %v5761_v62  ;;  %3164 = vrot.lane.b32.xlu1 %v3147_v32, %s6789_s23  ;;  %v2946_v32 = vsel %vm2944_vm0, %v6795_v58, %v4917_v6  ;;  %v5792_v12 = vsel %vm3252_vm14, %v6799_v2, %v6798_v26  ;;  %v6800_v6 = vld [vmem:[#allocation22_spill] sm:$0xff]  ;;  %v1850_v62 = vmul.f32 %v1839_v33, %v6805_v25  ;;  %v6806_v2 = vld [vmem:[#allocation27_spill] sm:$0xff] }
 0x2a8   : > { %v1846_v58 = vmul.f32 %v1839_v33, %v6800_v6  ;;  %v2953_v16 = vmul.f32 %v2946_v32, %v5455_v11  ;;  %v1847_v26 = vmul.f32 %v6794_v8, %v6806_v2  ;;  %v6808_v6 = vld [vmem:[#allocation28_spill] sm:$0xff]  ;;  %v6813_v2 = vld [vmem:[#allocation35_spill] sm:$0xff] }
 0x2a9   : > { %v5767_v55 = vpop.permute.xlu0 %2394 }
 0x2aa   : > { %6790 = vst [vmem:[#allocation143_spill] sm:$0xff] %v5767_v55  ;;  %v5778_v46 = vpop.permute.xlu1 %2443  ;;  %2897 = vrot.lane.b32.xlu0 %v2875_v35, %s6751_s27  ;;  %v6801_v35 = vld [vmem:[#allocation31_spill] sm:$0xff]  ;;  %v1851_v55 = vmul.f32 %v6794_v8, %v6808_v6  ;;  %v1894_v8 = vadd.f32 %v6811_v56, %v1847_v26  ;;  %v3149_v26 = vmul.f32 %v4988_v17, %v5567_v22 }
 0x2ab   : > { %6796 = vst [vmem:[#allocation13_spill] sm:$0xff] %v5778_v46  ;;  %3172 = vrot.lane.b32.xlu1 %v3151_v31, %s6789_s23  ;;  %v1877_v45 = vsel %vm1876_vm15, %v6801_v35, %v5381_v27  ;;  %v1880_v46 = vsel %vm1876_vm15, %v6803_v36, %v6802_v48  ;;  %v6809_v35 = vld [vmem:[#allocation84_spill] sm:$0xff]  ;;  %v6812_v36 = vld [vmem:[#allocation86_spill] sm:$0xff]  ;;  %v6815_v6 = vld [vmem:[#allocation87_spill] sm:$0xff] }
 0x2ac   : > { %v1878_v7 = vsel %vm1876_vm15, %v5381_v27, %v6809_v35  ;;  %v1891_v25 = vadd.f32 %v1877_v45, %v1844_v43  ;;  %v1895_v3 = vadd.f32 %v1880_v46, %v1848_v37  ;;  %v1879_v33 = vsel %vm1876_vm15, %v6809_v35, %v6811_v56  ;;  %v6814_v37 = vld [vmem:[#allocation85_spill] sm:$0xff] }
 0x2ad   : > { %v5807_v31 = vpop.permute.xlu0 %2402  ;;  %v1881_v27 = vsel %vm1876_vm15, %v6802_v48, %v6812_v36  ;;  %v2957_v43 = vmul.f32 %v2946_v32, %v5467_v61  ;;  %v1892_v46 = vadd.f32 %v1878_v7, %v1845_v44  ;;  %v1882_v45 = vsel %vm1876_vm15, %v6812_v36, %v6814_v37  ;;  %v6817_v56 = vld [vmem:[#allocation89_spill] sm:$0xff]  ;;  %v6819_v7 = vld [vmem:[#allocation88_spill] sm:$0xff]  ;;  %v6820_v44 = vld [vmem:[#allocation90_spill] sm:$0xff] }
 0x2ae   : > { %6807 = vst [vmem:[#allocation11_spill] sm:$0xff] %v5807_v31  ;;  %v5814_v11 = vpop.permute.xlu1 %2451  ;;  %2971 = vrot.lane.b32.xlu0 %v2953_v16, %s6759_s28  ;;  %v1960_v16 = vsel %vm1959_vm1, %v6813_v2, %v5444_v21  ;;  %v1893_v35 = vadd.f32 %v1879_v33, %v1846_v58  ;;  %v6818_v2 = vld [vmem:[#allocation37_spill] sm:$0xff]  ;;  %v1964_v32 = vsel %vm1959_vm1, %v6817_v56, %v6819_v7  ;;  %v6821_v36 = vld [vmem:[#allocation42_spill] sm:$0xff]  ;;  %v6823_v33 = vld [vmem:[#allocation91_spill] sm:$0xff]  ;;  %vm2901_vm15 = vcmask 310272  }
 0x2af   : > { %6810 = vst [vmem:[#allocation12_spill] sm:$0xff] %v5814_v11  ;;  %3210 = vrot.lane.b32.xlu1 %v5577_v29, %s4177_s13  ;;  %v1961_v29 = vsel %vm1959_vm1, %v5444_v21, %v6815_v6  ;;  %v1963_v61 = vsel %vm1959_vm1, %v6818_v2, %v6817_v56  ;;  %v2028_v11 = vsel %vm2027_vm2, %v6821_v36, %v6820_v44 }
 0x2b0   : > { %v1898_v22 = vadd.f32 %v6814_v37, %v1851_v55  ;;  %v1974_v58 = vadd.f32 %v1960_v16, %v1891_v25  ;;  %v1962_v2 = vsel %vm1959_vm1, %v6815_v6, %v6823_v33  ;;  %v1897_v56 = vadd.f32 %v1882_v45, %v1850_v62 }
 0x2b1   : > { %v5838_v48 = vpop.permute.xlu0 %2441  ;;  %v1975_v31 = vadd.f32 %v1961_v29, %v1892_v46  ;;  %v2031_v36 = vsel %vm2027_vm2, %v6825_v59, %v6824_v63  ;;  %v1978_v55 = vadd.f32 %v1963_v61, %v1895_v3  ;;  %v1976_v6 = vadd.f32 %v1962_v2, %v1893_v35 }
 0x2b2   : > { %6816 = vst [vmem:[#allocation10_spill] sm:$0xff] %v5838_v48  ;;  %v5849_v21 = vpop.permute.xlu1 %2524  ;;  %2979 = vrot.lane.b32.xlu0 %v2957_v43, %s6759_s28  ;;  %v1896_v48 = vadd.f32 %v1881_v27, %v1849_v13  ;;  %v2042_v25 = vadd.f32 %v2028_v11, %v1974_v58  ;;  %v6827_v27 = vld [vmem:[#allocation46_spill] sm:$0xff]  ;;  %v1977_v62 = vadd.f32 %v6823_v33, %v1894_v8  ;;  %v6828_v11 = vld [vmem:[#allocation93_spill] sm:$0xff]  ;;  %v6829_v8 = vld [vmem:[#allocation48_spill] sm:$0xff] }
 0x2b3   : > { %6822 = vst [vmem:[#allocation15_spill] sm:$0xff] %v5849_v21  ;;  %3168 = vrot.lane.b32.xlu1 %v3149_v26, %s6789_s23  ;;  %v6826_v21 = vld [vmem:[#allocation94_spill] sm:$0xff]  ;;  %v2075_v16 = vsel %vm2074_vm3, %v6827_v27, %v5504_v47  ;;  %v1965_v59 = vsel %vm1959_vm1, %v6819_v7, %v5506_v60  ;;  %v2046_v45 = vadd.f32 %v2031_v36, %v1978_v55  ;;  %vm3030_vm1 = vcmask 400384  }
 0x2b4   : > { %v2029_v43 = vsel %vm2027_vm2, %v6820_v44, %v6826_v21  ;;  %v1979_v13 = vadd.f32 %v1964_v32, %v1896_v48  ;;  %v2030_v46 = vsel %vm2027_vm2, %v6826_v21, %v5512_v19  ;;  %v2032_v26 = vsel %vm2027_vm2, %v6824_v63, %v5519_v18  ;;  %v6835_v27 = vld [vmem:[#allocation58_spill] sm:$0xff] }
 0x2b5   : > { %v5866_v37 = vpop.permute.xlu0 %2398  ;;  %v2043_v29 = vadd.f32 %v2029_v43, %v1975_v31  ;;  %v2078_v48 = vsel %vm2074_vm3, %v6829_v8, %v5532_v50  ;;  %v2089_v35 = vadd.f32 %v2075_v16, %v2042_v25  ;;  %v1981_v61 = vadd.f32 %v5506_v60, %v1898_v22  ;;  %v6830_v60 = vld [vmem:[#allocation98_spill] sm:$0xff] }
 0x2b6   : > { %v5875_v3 = vpop.permute.xlu1 %2532  ;;  %3018 = vrot.lane.b32.xlu0 %v6828_v11, %s6772_s5  ;;  %v2076_v7 = vsel %vm2074_vm3, %v5504_v47, %v5534_v0  ;;  %v2033_v31 = vsel %vm2027_vm2, %v5519_v18, %v5541_v49  ;;  %v1980_v32 = vadd.f32 %v1965_v59, %v1897_v56  ;;  %v2044_v63 = vadd.f32 %v2030_v46, %v1976_v6  ;;  %v6831_v47 = vld [vmem:[#allocation51_spill] sm:$0xff]  ;;  %v6836_v6 = vld [vmem:[#allocation100_spill] sm:$0xff]  ;;  %v6837_v59 = vld [vmem:[#allocation102_spill] sm:$0xff] }
 0x2b7   : > { %3218 = vrot.lane.b32.xlu1 %v5583_v20, %s4177_s13  ;;  %v2045_v44 = vadd.f32 %v5512_v19, %v1977_v62  ;;  %v3153_v21 = vmul.f32 %v4988_v17, %v5575_v54  ;;  %v2047_v20 = vadd.f32 %v2032_v26, %v1979_v13  ;;  %v2093_v33 = vadd.f32 %v2078_v48, %v2046_v45  ;;  %v6832_v56 = vld [vmem:[#allocation95_spill] sm:$0xff]  ;;  %v6834_v13 = vld [vmem:[#allocation53_spill] sm:$0xff]  ;;  %v6838_v8 = vld [vmem:[#allocation66_spill] sm:$0xff] }
 0x2b8   : > { %v2079_v22 = vsel %vm2074_vm3, %v5532_v50, %v6830_v60  ;;  %v2143_v2 = vsel %vm2142_vm4, %v6831_v47, %v5560_v24  ;;  %v2090_v19 = vadd.f32 %v2076_v7, %v2043_v29  ;;  %v2048_v36 = vadd.f32 %v2033_v31, %v1980_v32  ;;  %v6833_v50 = vld [vmem:[#allocation99_spill] sm:$0xff] }
 0x2b9   : > { %v5897_v58 = vpop.permute.xlu0 %2449  ;;  %v2049_v17 = vadd.f32 %v5541_v49, %v1981_v61  ;;  %v2077_v54 = vsel %vm2074_vm3, %v5534_v0, %v5558_v38  ;;  %v3148_v43 = vmul.f32 %v5787_v42, %v6833_v50  ;;  %v2080_v55 = vsel %vm2074_vm3, %v6830_v60, %v5565_v53 }
 0x2ba   : > { %v5905_v18 = vpop.permute.xlu1 %2528  ;;  %3026 = vrot.lane.b32.xlu0 %v6832_v56, %s6772_s5  ;;  %v2146_v25 = vsel %vm2142_vm4, %v6834_v13, %v5569_v34  ;;  %v2211_v49 = vsel %vm2210_vm5, %v6835_v27, %v5619_v39  ;;  %v2094_v16 = vadd.f32 %v2079_v22, %v2047_v20  ;;  %v5927_v0 = vmul.f32 %v5787_v42, %v6836_v6  ;;  %v6839_v42 = vld [vmem:[#allocation96_spill] sm:$0xff]  ;;  %v6842_v20 = vld [vmem:[#allocation106_spill] sm:$0xff] }
 0x2bb   : > { %3176 = vrot.lane.b32.xlu1 %v3153_v21, %s6789_s23  ;;  %v2157_v62 = vadd.f32 %v2143_v2, %v2089_v35  ;;  %v2144_v46 = vsel %vm2142_vm4, %v5560_v24, %v6837_v59  ;;  %v5932_v45 = vadd.f32 %v2077_v54, %v2044_v63  ;;  %v2092_v29 = vadd.f32 %v5558_v38, %v2045_v44  ;;  %v6841_v44 = vld [vmem:[#allocation65_spill] sm:$0xff] }
 0x2bc   : > { %v2096_v26 = vadd.f32 %v5565_v53, %v2049_v17  ;;  %v2258_v48 = vsel %vm2257_vm7, %v6838_v8, %v5650_v30  ;;  %v2095_v35 = vadd.f32 %v2080_v55, %v2048_v36  ;;  %v2161_v7 = vadd.f32 %v2146_v25, %v2093_v33  ;;  %v6840_v53 = vld [vmem:[#allocation103_spill] sm:$0xff]  ;;  %v6843_v33 = vld [vmem:[#allocation62_spill] sm:$0xff]  ;;  %v6846_v55 = vld [vmem:[#allocation68_spill] sm:$0xff] }
 0x2bd   : > { %v2407_v11 = vpop.permute.xlu0 %2406  ;;  %v2147_v24 = vsel %vm2142_vm4, %v5569_v34, %v5601_v51  ;;  %v2225_v31 = vadd.f32 %v2211_v49, %v2157_v62  ;;  %v2158_v38 = vadd.f32 %v2144_v46, %v2090_v19  ;;  %v5951_v32 = vsel %vm2142_vm4, %v6837_v59, %v6840_v53  ;;  %v6847_v59 = vld [vmem:[#allocation69_spill] sm:$0xff]  ;;  %v6849_v8 = vld [vmem:[#allocation140_spill] sm:$0xff] }
 0x2be   : > { %v5939_v61 = vpop.permute.xlu1 %2593  ;;  %3100 = vrot.lane.b32.xlu0 %v6839_v42, %s6739_s6  ;;  %v2148_v63 = vsel %vm2142_vm4, %v5601_v51, %v5623_v10  ;;  %v2326_v21 = vsel %vm2325_vm9, %v6841_v44, %v5686_v41  ;;  %v5960_v34 = vadd.f32 %v6840_v53, %v2092_v29  ;;  %v2214_v60 = vsel %vm2210_vm5, %v6843_v33, %v5629_v1  ;;  %v6844_v51 = vld [vmem:[#allocation105_spill] sm:$0xff]  ;;  %v6853_v53 = vld [vmem:[#allocation142_spill] sm:$0xff] }
 0x2bf   : > { %3214 = vrot.lane.b32.xlu1 %v5613_v23, %s4177_s13  ;;  %v2212_v23 = vsel %vm2210_vm5, %v5619_v39, %v6842_v20  ;;  %v2272_v22 = vadd.f32 %v2258_v48, %v2225_v31  ;;  %v2162_v2 = vadd.f32 %v2147_v24, %v2094_v16  ;;  %v3260_v56 = vmul.f32 %v5792_v12, %v6844_v51  ;;  %v6845_v39 = vld [vmem:[#allocation97_spill] sm:$0xff]  ;;  %v6852_v31 = vld [vmem:[#allocation143_spill] sm:$0xff] }
 0x2c0   : > { %v2164_v19 = vadd.f32 %v5623_v10, %v2096_v26  ;;  %v2216_v36 = vsel %vm2210_vm5, %v5633_v52, %v5692_v57  ;;  %v2163_v54 = vadd.f32 %v2148_v63, %v2095_v35  ;;  %v2259_v50 = vsel %vm2257_vm7, %v5650_v30, %v5652_v15  ;;  %v6850_v48 = vld [vmem:[#allocation141_spill] sm:$0xff]  ;;  %v6854_v63 = vld [vmem:[#allocation11_spill] sm:$0xff] }
 0x2c1   : > { %v5968_v47 = vpop.permute.xlu0 %2445  ;;  %v2261_v13 = vsel %vm2257_vm7, %v6846_v55, %v5682_v5  ;;  %v2340_v25 = vadd.f32 %v2326_v21, %v2272_v22  ;;  %v3264_v10 = vmul.f32 %v5792_v12, %v5610_v4  ;;  %v2226_v27 = vadd.f32 %v2212_v23, %v2158_v38  ;;  %v6848_v12 = vld [vmem:[#allocation139_spill] sm:$0xff]  ;;  %v6856_v22 = vld [vmem:[#allocation74_spill] sm:$0xff]  ;;  %v6859_v55 = vld [vmem:[#allocation17_spill] sm:$0xff] }
 0x2c2   : > { %v2537_v17 = vpop.permute.xlu1 %2536  ;;  %3108 = vrot.lane.b32.xlu0 %v6845_v39, %s6739_s6  ;;  %v2229_v49 = vadd.f32 %v2214_v60, %v2161_v7  ;;  %v2263_v16 = vsel %vm2257_vm7, %v5663_v9, %v5727_v40  ;;  %v2215_v30 = vsel %vm2210_vm5, %v5629_v1, %v5633_v52  ;;  %v2231_v6 = vadd.f32 %v2216_v36, %v2163_v54  ;;  %v6851_v52 = vld [vmem:[#allocation70_spill] sm:$0xff] }
 0x2c3   : > { %3222 = vrot.lane.b32.xlu1 %v5621_v28, %s4177_s13  ;;  %v2232_v62 = vadd.f32 %v5692_v57, %v2164_v19  ;;  %v2329_v28 = vsel %vm2325_vm9, %v6847_v59, %v5696_v14  ;;  %v2273_v29 = vadd.f32 %v2259_v50, %v2226_v27  ;;  %v2327_v26 = vsel %vm2325_vm9, %v5686_v41, %v6848_v12  ;;  %v6855_v60 = vld [vmem:[#allocation10_spill] sm:$0xff] }
 0x2c4   : > { %v2276_v4 = vadd.f32 %v2261_v13, %v2229_v49  ;;  %v2331_v42 = vsel %vm2325_vm9, %v6850_v48, %v6849_v8  ;;  %v2262_v1 = vsel %vm2257_vm7, %v5682_v5, %v5663_v9  ;;  %v2423_v57 = vadd.f32 %v6851_v52, %v2340_v25  ;;  %v6858_v50 = vld [vmem:[#allocation110_spill] sm:$0xff]  ;;  %v6860_v25 = vld [vmem:[#allocation72_spill] sm:$0xff] }
 0x2c5   : > { %v2454_v46 = vpop.permute.xlu0 %2453  ;;  %v2278_v7 = vadd.f32 %v2263_v16, %v2231_v6  ;;  %v2279_v24 = vadd.f32 %v5727_v40, %v2232_v62  ;;  %v2409_v38 = vsel %vm2408_vm10, %v6851_v52, %v6852_v31  ;;  %v2414_v44 = vsel %vm2408_vm10, %v6853_v53, %v2407_v11  ;;  %v6866_v52 = vld [vmem:[#allocation21_spill] sm:$0xff] }
 0x2c6   : > { %v6004_v35 = vpop.permute.xlu1 %2601  ;;  %3166 = vrot.lane.b32.xlu0 %v3148_v43, %s6789_s23  ;;  %v2344_v41 = vadd.f32 %v2329_v28, %v2276_v4  ;;  %v2413_v43 = vsel %vm2408_vm10, %v6854_v63, %v6853_v53  ;;  %v2230_v5 = vadd.f32 %v2215_v30, %v2162_v2  ;;  %v2341_v9 = vadd.f32 %v2327_v26, %v2273_v29  ;;  %v6861_v28 = vld [vmem:[#allocation15_spill] sm:$0xff]  ;;  %v6863_v29 = vld [vmem:[#allocation76_spill] sm:$0xff] }
 0x2c7   : > { %3277 = vrot.lane.b32.xlu1 %v3260_v56, %s4183_s30  ;;  %v2347_v21 = vadd.f32 %v6849_v8, %v2279_v24  ;;  %v2346_v23 = vadd.f32 %v2331_v42, %v2278_v7  ;;  %v2330_v33 = vsel %vm2325_vm9, %v5696_v14, %v6850_v48  ;;  %v2456_v51 = vsel %vm2455_vm11, %v6856_v22, %v6855_v60  ;;  %v6857_v56 = vld [vmem:[#allocation12_spill] sm:$0xff]  ;;  %v6864_v42 = vld [vmem:[#allocation101_spill] sm:$0xff]  ;;  %v6868_v53 = vld [vmem:[#allocation115_spill] sm:$0xff] }
 0x2c8   : > { %v2460_v19 = vsel %vm2455_vm11, %v5897_v58, %v6857_v56  ;;  %v2461_v11 = vsel %vm2455_vm11, %v6857_v56, %v2454_v46  ;;  %v2277_v36 = vadd.f32 %v2262_v1, %v2230_v5  ;;  %v2424_v39 = vadd.f32 %v2409_v38, %v2341_v9  ;;  %v6862_v46 = vld [vmem:[#allocation75_spill] sm:$0xff]  ;;  %v6871_v56 = vld [vmem:[#allocation104_spill] sm:$0xff] }
 0x2c9   : > { %v6022_v40 = vpop.permute.xlu0 %2526  ;;  %v2429_v54 = vadd.f32 %v2413_v43, %v2346_v23  ;;  %v2430_v14 = vadd.f32 %v2414_v44, %v2347_v21  ;;  %v3262_v13 = vmul.f32 %v6859_v55, %v6858_v50  ;;  %v2427_v27 = vadd.f32 %v6860_v25, %v2344_v41  ;;  %v6865_v1 = vld [vmem:[#allocation19_spill] sm:$0xff]  ;;  %v6874_v50 = vld [vmem:[#allocation113_spill] sm:$0xff] }
 0x2ca   : > { %v6035_v2 = vpop.permute.xlu1 %2639  ;;  %3174 = vrot.lane.b32.xlu0 %v5927_v0, %s6789_s23  ;;  %v2412_v49 = vsel %vm2408_vm10, %v6860_v25, %v6854_v63  ;;  %v2470_v16 = vadd.f32 %v6856_v22, %v2423_v57  ;;  %v2345_v30 = vadd.f32 %v2330_v33, %v2277_v36  ;;  %v2471_v6 = vadd.f32 %v2456_v51, %v2424_v39  ;;  %v6869_v33 = vld [vmem:[#allocation130_spill] sm:$0xff]  ;;  %v6870_v22 = vld [vmem:[#allocation77_spill] sm:$0xff]  ;;  %v6875_v25 = vld [vmem:[#allocation132_spill] sm:$0xff] }
 0x2cb   : > { %3285 = vrot.lane.b32.xlu1 %v3264_v10, %s4183_s30  ;;  %v2476_v0 = vadd.f32 %v2460_v19, %v2429_v54  ;;  %v2477_v62 = vadd.f32 %v2461_v11, %v2430_v14  ;;  %v2539_v10 = vsel %vm2538_vm13, %v6862_v46, %v6861_v28  ;;  %v2459_v4 = vsel %vm2455_vm11, %v6863_v29, %v5897_v58  ;;  %v6872_v19 = vld [vmem:[#allocation18_spill] sm:$0xff]  ;;  %v6873_v54 = vld [vmem:[#allocation107_spill] sm:$0xff] }
 0x2cc   : > { %v3320_v57 = vsel %vm2499_vm8, %v6866_v52, %v6865_v1  ;;  %v2428_v7 = vadd.f32 %v2412_v49, %v2345_v30  ;;  %v2159_v58 = vadd.f32 %v5951_v32, %v5932_v45  ;;  %v2213_v63 = vsel %vm2210_vm5, %v6842_v20, %v6868_v53  ;;  %v6876_v49 = vld [vmem:[#allocation78_spill] sm:$0xff] }
 0x2cd   : > { %v2535_v59 = vpop.permute.xlu0 %2534  ;;  %v2228_v43 = vadd.f32 %v6868_v53, %v5960_v34  ;;  %v2554_v44 = vadd.f32 %v2539_v10, %v2471_v6  ;;  %v2553_v9 = vadd.f32 %v6862_v46, %v2470_v16  ;;  %v2474_v23 = vadd.f32 %v6863_v29, %v2427_v27  ;;  %v6877_v6 = vld [vmem:[#allocation135_spill] sm:$0xff]  ;;  %v6881_v53 = vld [vmem:[#allocation114_spill] sm:$0xff] }
 0x2ce   : > { %v2543_v26 = vsel %vm2538_vm13, %v5875_v3, %v2535_v59  ;;  %v2544_v8 = vsel %vm2538_vm13, %v2535_v59, %v2537_v17  ;;  %v6056_v48 = vpop.permute.xlu1 %2647  ;;  %3212 = vrot.lane.b32.xlu0 %v6864_v42, %s4177_s13  ;;  %v6867_v17 = vld [vmem:[#allocation111_spill] sm:$0xff]  ;;  %v2475_v5 = vadd.f32 %v2459_v4, %v2428_v7  ;;  %v2260_v45 = vsel %vm2257_vm7, %v5652_v15, %v6869_v33 }
 0x2cf   : > { %v6063_v24 = vadd.f32 %v2543_v26, %v2476_v0  ;;  %v6065_v41 = vadd.f32 %v2544_v8, %v2477_v62  ;;  %3281 = vrot.lane.b32.xlu1 %v3262_v13, %s4183_s30  ;;  %v3327_v38 = vmul.f32 %v3320_v57, %v6867_v17  ;;  %v2275_v32 = vadd.f32 %v6869_v33, %v2228_v43  ;;  %v6879_v26 = vld [vmem:[#allocation13_spill] sm:$0xff] }
 0x2d0   : > { %v3254_v11 = vsel %vm3252_vm14, %v6872_v19, %v6859_v55  ;;  %v2227_v36 = vadd.f32 %v2213_v63, %v2159_v58  ;;  %v3266_v13 = vmul.f32 %v6859_v55, %v6874_v50  ;;  %v2328_v27 = vsel %vm2325_vm9, %v6848_v12, %v6875_v25  ;;  %v6878_v12 = vld [vmem:[#allocation79_spill] sm:$0xff] }
 0x2d1   : > { %v2592_v21 = vpop.permute.xlu0 %2591  ;;  %v3261_v14 = vmul.f32 %v3254_v11, %v6873_v54  ;;  %v2542_v16 = vsel %vm2538_vm13, %v6876_v49, %v5875_v3  ;;  %v2411_v0 = vsel %vm2408_vm10, %v6877_v6, %v5866_v37  ;;  %v2557_v62 = vadd.f32 %v6876_v49, %v2474_v23  ;;  %v6885_v54 = vld [vmem:[#allocation121_spill] sm:$0xff] }
 0x2d2   : > { %v2605_v51 = vsel %vm2286_vm6, %v6870_v22, %v2592_v21  ;;  %v2606_v20 = vsel %vm2286_vm6, %v2592_v21, %v5939_v61  ;;  %v6086_v34 = vpop.permute.xlu1 %2704  ;;  %3220 = vrot.lane.b32.xlu0 %v6871_v56, %s4177_s13  ;;  %v2274_v30 = vadd.f32 %v2260_v45, %v2227_v36  ;;  %v2558_v59 = vadd.f32 %v2542_v16, %v2475_v5  ;;  %v6882_v21 = vld [vmem:[#allocation80_spill] sm:$0xff]  ;;  %v6889_v16 = vld [vmem:[#allocation82_spill] sm:$0xff] }
 0x2d3   : > { %v2619_v39 = vadd.f32 %v2605_v51, %v2553_v9  ;;  %v2620_v15 = vadd.f32 %v2606_v20, %v2554_v44  ;;  %3344 = vrot.lane.b32.xlu1 %v3327_v38, %s4185_s25  ;;  %v2343_v10 = vadd.f32 %v6875_v25, %v2275_v32  ;;  %v2410_v55 = vsel %vm2408_vm10, %v6852_v31, %v6877_v6  ;;  %v6880_v31 = vld [vmem:[#allocation108_spill] sm:$0xff]  ;;  %v6884_v51 = vld [vmem:[#allocation30_spill] sm:$0xff] }
 0x2d4   : > { %v2342_v37 = vadd.f32 %v2328_v27, %v2274_v30  ;;  %v2458_v8 = vsel %vm2455_vm11, %v6879_v26, %v5968_v47  ;;  %v3265_v58 = vmul.f32 %v3254_v11, %v6880_v31  ;;  %v2457_v17 = vsel %vm2455_vm11, %v6855_v60, %v6879_v26  ;;  %v6888_v25 = vld [vmem:[#allocation26_spill] sm:$0xff]  ;;  %v6894_v31 = vld [vmem:[#allocation120_spill] sm:$0xff] }
 0x2d5   : > { %v2600_v46 = vpop.permute.xlu0 %2599  ;;  %v2426_v38 = vadd.f32 %v2411_v0, %v2343_v10  ;;  %v3331_v63 = vmul.f32 %v3320_v57, %v6881_v53  ;;  %v2541_v44 = vsel %vm2538_vm13, %v6022_v40, %v5905_v18  ;;  %vm2718_vm9 = vcmask 728064   ;;  %v6883_v18 = vld [vmem:[#allocation109_spill] sm:$0xff] }
 0x2d6   : > { %v2608_v29 = vsel %vm2286_vm6, %v6878_v12, %v2600_v46  ;;  %v2609_v3 = vsel %vm2286_vm6, %v2600_v46, %v6004_v35  ;;  %v6115_v4 = vpop.permute.xlu1 %2712  ;;  %3279 = vrot.lane.b32.xlu0 %v3261_v14, %s4183_s30  ;;  %v2425_v43 = vadd.f32 %v2410_v55, %v2342_v37  ;;  %v2540_v9 = vsel %vm2538_vm13, %v6861_v28, %v6022_v40  ;;  %v6886_v14 = vld [vmem:[#allocation112_spill] sm:$0xff] }
 0x2d7   : > { %v2623_v42 = vadd.f32 %v2608_v29, %v2557_v62  ;;  %v2624_v7 = vadd.f32 %v2609_v3, %v2558_v59  ;;  %3289 = vrot.lane.b32.xlu1 %v3266_v13, %s4183_s30  ;;  %v2473_v5 = vadd.f32 %v2458_v8, %v2426_v38  ;;  %v3326_v22 = vmul.f32 %v6866_v52, %v6883_v18  ;;  %v6887_v13 = vld [vmem:[#allocation117_spill] sm:$0xff]  ;;  %v6890_v59 = vld [vmem:[#allocation32_spill] sm:$0xff]  ;;  %v6891_v3 = vld [vmem:[#allocation119_spill] sm:$0xff] }
 0x2d8   : > { %v2472_v57 = vadd.f32 %v2457_v17, %v2425_v43  ;;  %v2719_v40 = vsel %vm2718_vm9, %v6884_v51, %v6086_v34  ;;  %v3330_v50 = vmul.f32 %v6866_v52, %v6886_v14  ;;  %v3329_v27 = vmul.f32 %v6888_v25, %v6887_v13  ;;  %v6892_v8 = vld [vmem:[#allocation123_spill] sm:$0xff]  ;;  %v6898_v51 = vld [vmem:[#allocation133_spill] sm:$0xff] }
 0x2d9   : > { %v2638_v47 = vpop.permute.xlu0 %2637  ;;  %v2556_v28 = vadd.f32 %v2541_v44, %v2473_v5  ;;  %v2722_v52 = vsel %vm2718_vm9, %v6890_v59, %v6115_v4  ;;  %v3321_v37 = vsel %vm2499_vm8, %v6865_v1, %v6888_v25  ;;  %v6896_v5 = vld [vmem:[#allocation129_spill] sm:$0xff]  ;;  %vm2786_vm8 = vcmask 359424   ;;  %v6907_v59 = vld [vmem:[#allocation136_spill] sm:$0xff] }
 0x2da   : > { %v2651_v23 = vsel %vm2074_vm3, %v6882_v21, %v2638_v47  ;;  %v2652_v60 = vsel %vm2074_vm3, %v2638_v47, %v6035_v2  ;;  %v2709_v33 = vpop.permute.xlu1 %2708  ;;  %3287 = vrot.lane.b32.xlu0 %v3265_v58, %s4183_s30  ;;  %v2555_v20 = vadd.f32 %v2540_v9, %v2472_v57  ;;  %v6895_v47 = vld [vmem:[#allocation122_spill] sm:$0xff]  ;;  %vm2833_vm14 = vcmask 334848  }
 0x2db   : > { %v2665_v45 = vadd.f32 %v2651_v23, %v2619_v39  ;;  %v2666_v32 = vadd.f32 %v2652_v60, %v2620_v15  ;;  %3352 = vrot.lane.b32.xlu1 %v3331_v63, %s4185_s25  ;;  %v6897_v9 = vld [vmem:[#allocation118_spill] sm:$0xff]  ;;  %vm3404_vm2 = vcmask 56320   ;;  %vm3472_vm4 = vcmask 15360  }
 0x2dc   : > { %v3332_v21 = vmul.f32 %v3321_v37, %v6897_v9 }
 0x2dd   : > { %v2596_v56 = vpop.permute.xlu0 %2595  ;;  %v6144_v19 = vadd.f32 %v2719_v40, %v2665_v45  ;;  %v6899_v40 = vld [vmem:[#allocation29_spill] sm:$0xff] }
 0x2de   : > { %v2607_v11 = vsel %vm2286_vm6, %v5939_v61, %v2596_v56  ;;  %v2622_v36 = vadd.f32 %v2596_v56, %v2556_v28  ;;  %v6148_v39 = vpop.permute.xlu1 %2774  ;;  %3342 = vrot.lane.b32.xlu0 %v3326_v22, %s4185_s25  ;;  %v6900_v28 = vld [vmem:[#allocation20_spill] sm:$0xff]  ;;  %v6901_v56 = vld [vmem:[#allocation125_spill] sm:$0xff] }
 0x2df   : > { %v2621_v15 = vadd.f32 %v2607_v11, %v2555_v20  ;;  %3390 = vrot.lane.b32.xlu1 %v6885_v54, %s4186_s8 }
 0x2e1   : > { %v2646_v49 = vpop.permute.xlu0 %2645 }
 0x2e2   : > { %v2654_v61 = vsel %vm2074_vm3, %v6889_v16, %v2646_v49  ;;  %v2655_v30 = vsel %vm2074_vm3, %v2646_v49, %v6056_v48  ;;  %v2717_v6 = vpop.permute.xlu1 %2716  ;;  %3350 = vrot.lane.b32.xlu0 %v3330_v50, %s4185_s25  ;;  %v6903_v50 = vld [vmem:[#allocation128_spill] sm:$0xff] }
 0x2e3   : > { %v2669_v0 = vadd.f32 %v2654_v61, %v2623_v42  ;;  %v2670_v62 = vadd.f32 %v2655_v30, %v2624_v7  ;;  %3348 = vrot.lane.b32.xlu1 %v3329_v27, %s4185_s25  ;;  %v6893_v42 = vld [vmem:[#allocation116_spill] sm:$0xff]  ;;  %v6904_v27 = vld [vmem:[#allocation34_spill] sm:$0xff]  ;;  %v6905_v61 = vld [vmem:[#allocation131_spill] sm:$0xff] }
 0x2e4   : > { %v3328_v7 = vmul.f32 %v3321_v37, %v6893_v42  ;;  %v6910_v42 = vld [vmem:[#allocation126_spill] sm:$0xff] }
 0x2e5   : > { %v2604_v46 = vpop.permute.xlu0 %2603  ;;  %v6166_v10 = vadd.f32 %v2722_v52, %v2669_v0  ;;  %v6906_v0 = vld [vmem:[#allocation124_spill] sm:$0xff]  ;;  %v6908_v52 = vld [vmem:[#allocation25_spill] sm:$0xff] }
 0x2e6   : > { %v2610_v55 = vsel %vm2286_vm6, %v6004_v35, %v2604_v46  ;;  %v2626_v12 = vadd.f32 %v2604_v46, %v6065_v41  ;;  %v6171_v29 = vpop.permute.xlu1 %2782  ;;  %3388 = vrot.lane.b32.xlu0 %v6891_v3, %s4186_s8  ;;  %v3333_v35 = vmul.f32 %v6888_v25, %v6894_v31  ;;  %vm3433_vm6 = vcmask 171008   ;;  %v6911_v31 = vld [vmem:[#allocation138_spill] sm:$0xff] }
 0x2e7   : > { %v2625_v26 = vadd.f32 %v2610_v55, %v6063_v24  ;;  %3398 = vrot.lane.b32.xlu1 %v6892_v8, %s4186_s8  ;;  %v3434_v20 = vsel %vm3433_vm6, %v6900_v28, %v6899_v40  ;;  %v3443_v46 = vmul.f32 %v6908_v52, %v6907_v59 }
 0x2e8   : > { %v3441_v11 = vmul.f32 %v3434_v20, %v6901_v56  ;;  %v3445_v13 = vmul.f32 %v3434_v20, %v6903_v50  ;;  %v6916_v56 = vld [vmem:[#allocation40_spill] sm:$0xff] }
 0x2e9   : > { %v2642_v41 = vpop.permute.xlu0 %2641 }
 0x2ea   : > { %v2653_v58 = vsel %vm2074_vm3, %v6035_v2, %v2642_v41  ;;  %v2668_v17 = vadd.f32 %v2642_v41, %v2622_v36  ;;  %v6186_v38 = vpop.permute.xlu1 %2821  ;;  %3346 = vrot.lane.b32.xlu0 %v3328_v7, %s4185_s25  ;;  %v3444_v7 = vmul.f32 %v6900_v28, %v6910_v42 }
 0x2eb   : > { %v2667_v1 = vadd.f32 %v2653_v58, %v2621_v15  ;;  %3356 = vrot.lane.b32.xlu1 %v3333_v35, %s4185_s25  ;;  %v3447_v35 = vmul.f32 %v6908_v52, %v6911_v31  ;;  %v6912_v58 = vld [vmem:[#allocation38_spill] sm:$0xff] }
 0x2ec   : > { %v6190_v24 = vadd.f32 %v2709_v33, %v2668_v17 }
 0x2ed   : > { %v2650_v53 = vpop.permute.xlu0 %2649 }
 0x2ee   : > { %v2656_v63 = vsel %vm2074_vm3, %v6056_v48, %v2650_v53  ;;  %v2672_v43 = vadd.f32 %v2650_v53, %v2626_v12  ;;  %v6194_v44 = vpop.permute.xlu1 %2829  ;;  %3396 = vrot.lane.b32.xlu0 %v6895_v47, %s4186_s8  ;;  %v6909_v12 = vld [vmem:[#allocation36_spill] sm:$0xff]  ;;  %v6913_v47 = vld [vmem:[#allocation134_spill] sm:$0xff] }
 0x2ef   : > { %v2671_v2 = vadd.f32 %v2656_v63, %v2625_v26  ;;  %3394 = vrot.lane.b32.xlu1 %v6896_v5, %s4186_s8  ;;  %v6914_v5 = vld [vmem:[#allocation39_spill] sm:$0xff] }
 0x2f0   : > { %v6201_v23 = vadd.f32 %v2717_v6, %v2672_v43 }
 0x2f1   : > { %v2707_v60 = vpop.permute.xlu0 %2706 }
 0x2f2   : > { %v2720_v57 = vsel %vm2718_vm9, %v6086_v34, %v2707_v60  ;;  %v2721_v48 = vsel %vm2718_vm9, %v2707_v60, %v2709_v33  ;;  %v6206_v45 = vpop.permute.xlu1 %2887  ;;  %3354 = vrot.lane.b32.xlu0 %v3332_v21, %s4185_s25  ;;  %s4187_s25 = smov 2  }
 0x2f3   : > { %v2734_v18 = vadd.f32 %v2720_v57, %v2666_v32  ;;  %v2735_v22 = vadd.f32 %v2721_v48, %v2667_v1  ;;  %3402 = vrot.lane.b32.xlu1 %v6898_v51, %s4186_s8  ;;  %v6902_v32 = vld [vmem:[#allocation127_spill] sm:$0xff]  ;;  %v2902_v9 = vsel %vm2901_vm15, %v6914_v5, %v6206_v45 }
 0x2f5   : > { %v2715_v36 = vpop.permute.xlu0 %2714 }
 0x2f6   : > { %v2723_v34 = vsel %vm2718_vm9, %v6115_v4, %v2715_v36  ;;  %v2724_v33 = vsel %vm2718_vm9, %v2715_v36, %v2717_v6  ;;  %v6218_v15 = vpop.permute.xlu1 %2895  ;;  %3392 = vrot.lane.b32.xlu0 %v6902_v32, %s4186_s8 }
 0x2f7   : > { %v2738_v54 = vadd.f32 %v2723_v34, %v2670_v62  ;;  %v2739_v14 = vadd.f32 %v2724_v33, %v2671_v2  ;;  %3458 = vrot.lane.b32.xlu1 %v3441_v11, %s4187_s25  ;;  %v3440_v62 = vmul.f32 %v6900_v28, %v6906_v0  ;;  %v6917_v33 = vld [vmem:[#allocation41_spill] sm:$0xff] }
 0x2f8   : > { %v2905_v32 = vsel %vm2901_vm15, %v6917_v33, %v6218_v15  ;;  %v6930_v33 = vld [vmem:[#allocation57_spill] sm:$0xff] }
 0x2f9   : > { %v2773_v25 = vpop.permute.xlu0 %2772 }
 0x2fa   : > { %v2787_v49 = vsel %vm2786_vm8, %v6904_v27, %v2773_v25  ;;  %v2788_v4 = vsel %vm2786_vm8, %v2773_v25, %v6148_v39  ;;  %v6228_v16 = vpop.permute.xlu1 %2891  ;;  %3400 = vrot.lane.b32.xlu0 %v6905_v61, %s4186_s8 }
 0x2fb   : > { %v2801_v30 = vadd.f32 %v2787_v49, %v6144_v19  ;;  %v2802_v6 = vadd.f32 %v2788_v4, %v2734_v18  ;;  %3466 = vrot.lane.b32.xlu1 %v3445_v13, %s4187_s25  ;;  %v6918_v49 = vld [vmem:[#allocation50_spill] sm:$0xff]  ;;  %v6919_v4 = vld [vmem:[#allocation43_spill] sm:$0xff] }
 0x2fc   : > { %v2984_v61 = vsel %vm2983_vm12, %v6919_v4, %v6918_v49  ;;  %v6931_v4 = vld [vmem:[#allocation61_spill] sm:$0xff] }
 0x2fd   : > { %v2781_v55 = vpop.permute.xlu0 %2780 }
 0x2fe   : > { %v2790_v3 = vsel %vm2786_vm8, %v6909_v12, %v2781_v55  ;;  %v2791_v37 = vsel %vm2786_vm8, %v2781_v55, %v6171_v29  ;;  %v6242_v26 = vpop.permute.xlu1 %2973  ;;  %3456 = vrot.lane.b32.xlu0 %v3440_v62, %s4187_s25  ;;  %v6922_v55 = vld [vmem:[#allocation54_spill] sm:$0xff] }
 0x2ff   : > { %v2805_v19 = vadd.f32 %v2790_v3, %v6166_v10  ;;  %v2806_v8 = vadd.f32 %v2791_v37, %v2738_v54  ;;  %3462 = vrot.lane.b32.xlu1 %v3443_v46, %s4187_s25  ;;  %v3435_v10 = vsel %vm3433_vm6, %v6899_v40, %v6908_v52  ;;  %v6915_v40 = vld [vmem:[#allocation137_spill] sm:$0xff] }
 0x300   : > { %v3442_v2 = vmul.f32 %v3435_v10, %v6913_v47  ;;  %v3446_v28 = vmul.f32 %v3435_v10, %v6915_v40  ;;  %v6921_v46 = vld [vmem:[#allocation45_spill] sm:$0xff]  ;;  %v6927_v10 = vld [vmem:[#allocation55_spill] sm:$0xff] }
 0x301   : > { %v2820_v41 = vpop.permute.xlu0 %2819 }
 0x302   : > { %v2834_v17 = vsel %vm2833_vm14, %v6912_v58, %v2820_v41  ;;  %v2835_v1 = vsel %vm2833_vm14, %v2820_v41, %v6186_v38  ;;  %v6255_v53 = vpop.permute.xlu1 %2899  ;;  %3464 = vrot.lane.b32.xlu0 %v3444_v7, %s4187_s25  ;;  %v6924_v41 = vld [vmem:[#allocation56_spill] sm:$0xff]  ;;  %v6925_v58 = vld [vmem:[#allocation49_spill] sm:$0xff] }
 0x303   : > { %v2848_v63 = vadd.f32 %v2834_v17, %v2801_v30  ;;  %v2849_v43 = vadd.f32 %v2835_v1, %v2802_v6  ;;  %3470 = vrot.lane.b32.xlu1 %v3447_v35, %s4187_s25  ;;  %v3034_v17 = vsel %vm3030_vm1, %v6925_v58, %v6924_v41  ;;  %v6926_v1 = vld [vmem:[#allocation60_spill] sm:$0xff] }
 0x305   : > { %v2916_v21 = vadd.f32 %v2902_v9, %v2848_v63  ;;  %v2777_v60 = vpop.permute.xlu0 %2776  ;;  %v3112_v63 = vsel %vm2786_vm8, %v6927_v10, %v6926_v1 }
 0x306   : > { %v2789_v57 = vsel %vm2786_vm8, %v6148_v39, %v2777_v60  ;;  %v2804_v48 = vadd.f32 %v2777_v60, %v6190_v24  ;;  %v6269_v18 = vpop.permute.xlu1 %2981  ;;  %3460 = vrot.lane.b32.xlu0 %v3442_v2, %s4187_s25 }
 0x307   : > { %v2803_v51 = vadd.f32 %v2789_v57, %v2735_v22  ;;  %v2998_v30 = vadd.f32 %v2984_v61, %v2916_v21 }
 0x309   : > { %v2828_v20 = vpop.permute.xlu0 %2827 }
 0x30a   : > { %v2837_v11 = vsel %vm2833_vm14, %v6916_v56, %v2828_v20  ;;  %v2838_v36 = vsel %vm2833_vm14, %v2828_v20, %v6194_v44  ;;  %v6277_v34 = vpop.permute.xlu1 %3020  ;;  %3468 = vrot.lane.b32.xlu0 %v3446_v28, %s4187_s25  ;;  %v6928_v20 = vld [vmem:[#allocation59_spill] sm:$0xff] }
 0x30b   : > { %v2852_v39 = vadd.f32 %v2837_v11, %v2805_v19  ;;  %v2853_v24 = vadd.f32 %v2838_v36, %v2806_v8 }
 0x30d   : > { %v2920_v22 = vadd.f32 %v2905_v32, %v2852_v39  ;;  %v2785_v54 = vpop.permute.xlu0 %2784  ;;  %v6929_v39 = vld [vmem:[#allocation64_spill] sm:$0xff] }
 0x30e   : > { %v2792_v50 = vsel %vm2786_vm8, %v6171_v29, %v2785_v54  ;;  %v2808_v13 = vadd.f32 %v2785_v54, %v6201_v23  ;;  %v6286_v25 = vpop.permute.xlu1 %3028  ;;  %v6920_v29 = vld [vmem:[#allocation52_spill] sm:$0xff]  ;;  %v3115_v32 = vsel %vm2786_vm8, %v6930_v33, %v6929_v39 }
 0x30f   : > { %v2807_v27 = vadd.f32 %v2792_v50, %v2739_v14  ;;  %v2987_v23 = vsel %vm2983_vm12, %v6921_v46, %v6920_v29  ;;  %v6923_v14 = vld [vmem:[#allocation47_spill] sm:$0xff] }
 0x310   : > { %v3031_v12 = vsel %vm3030_vm1, %v6923_v14, %v6922_v55  ;;  %v3002_v37 = vadd.f32 %v2987_v23, %v2920_v22 }
 0x311   : > { %v2824_v6 = vpop.permute.xlu0 %2823  ;;  %v3045_v8 = vadd.f32 %v3031_v12, %v2998_v30 }
 0x312   : > { %v2836_v0 = vsel %vm2833_vm14, %v6186_v38, %v2824_v6  ;;  %v2851_v62 = vadd.f32 %v2824_v6, %v2804_v48  ;;  %v6293_v59 = vpop.permute.xlu1 %3102  ;;  %v3049_v21 = vadd.f32 %v3034_v17, %v3002_v37 }
 0x313   : > { %v2850_v52 = vadd.f32 %v2836_v0, %v2803_v51  ;;  %v3126_v9 = vadd.f32 %v3112_v63, %v3045_v8 }
 0x314   : > { %v2919_v3 = vadd.f32 %v6228_v16, %v2851_v62 }
 0x315   : > { %v2832_v19 = vpop.permute.xlu0 %2831 }
 0x316   : > { %v3001_v42 = vadd.f32 %v6242_v26, %v2919_v3  ;;  %v2839_v38 = vsel %vm2833_vm14, %v6194_v44, %v2832_v19  ;;  %v2855_v7 = vadd.f32 %v2832_v19, %v2808_v13  ;;  %v3111_v31 = vpop.permute.xlu1 %3110 }
 0x317   : > { %v2854_v35 = vadd.f32 %v2839_v38, %v2807_v27 }
 0x318   : > { %v3048_v47 = vadd.f32 %v6277_v34, %v3001_v42  ;;  %v2923_v2 = vadd.f32 %v6255_v53, %v2855_v7 }
 0x319   : > { %v2890_v5 = vpop.permute.xlu0 %2889 }
 0x31a   : > { %v3129_v44 = vadd.f32 %v6293_v59, %v3048_v47  ;;  %v3005_v60 = vadd.f32 %v6269_v18, %v2923_v2  ;;  %v2903_v57 = vsel %vm2901_vm15, %v6206_v45, %v2890_v5  ;;  %v2904_v48 = vsel %vm2901_vm15, %v2890_v5, %v6228_v16  ;;  %v3165_v51 = vpop.permute.xlu1 %3164 }
 0x31b   : > { %v2917_v40 = vadd.f32 %v2903_v57, %v2849_v43  ;;  %v2918_v28 = vadd.f32 %v2904_v48, %v2850_v52  ;;  %v3178_v56 = vsel %vm2944_vm0, %v6928_v20, %v3165_v51  ;;  %v3130_v43 = vadd.f32 %v3115_v32, %v3049_v21 }
 0x31c   : > { %v3052_v11 = vadd.f32 %v6286_v25, %v3005_v60  ;;  %v6322_v36 = vadd.f32 %v3178_v56, %v3126_v9 }
 0x31d   : > { %v2898_v22 = vpop.permute.xlu0 %2897 }
 0x31e   : > { %v6327_v54 = vadd.f32 %v3111_v31, %v3052_v11  ;;  %v2906_v45 = vsel %vm2901_vm15, %v6218_v15, %v2898_v22  ;;  %v2907_v16 = vsel %vm2901_vm15, %v2898_v22, %v6255_v53  ;;  %v3173_v50 = vpop.permute.xlu1 %3172 }
 0x31f   : > { %v2921_v13 = vadd.f32 %v2906_v45, %v2853_v24  ;;  %v2922_v27 = vadd.f32 %v2907_v16, %v2854_v35  ;;  %v3181_v61 = vsel %vm2944_vm0, %v6931_v4, %v3173_v50 }
 0x320   : > { %v6335_v30 = vadd.f32 %v3181_v61, %v3130_v43 }
 0x321   : > { %v2972_v6 = vpop.permute.xlu0 %2971 }
 0x322   : > { %v2985_v0 = vsel %vm2983_vm12, %v6918_v49, %v2972_v6  ;;  %v2986_v62 = vsel %vm2983_vm12, %v2972_v6, %v6242_v26  ;;  %v6341_v15 = vpop.permute.xlu1 %3210 }
 0x323   : > { %v2999_v52 = vadd.f32 %v2985_v0, %v2917_v40  ;;  %v3000_v53 = vadd.f32 %v2986_v62, %v2918_v28 }
 0x325   : > { %v2980_v46 = vpop.permute.xlu0 %2979 }
 0x326   : > { %v2988_v24 = vsel %vm2983_vm12, %v6920_v29, %v2980_v46  ;;  %v2989_v23 = vsel %vm2983_vm12, %v2980_v46, %v6269_v18  ;;  %v3169_v14 = vpop.permute.xlu1 %3168  ;;  %vm3291_vm12 = vcmask 711680  }
 0x327   : > { %v3003_v12 = vadd.f32 %v2988_v24, %v2921_v13  ;;  %v3004_v3 = vadd.f32 %v2989_v23, %v2922_v27  ;;  %v6347_v37 = vadd.f32 %v3169_v14, %v3129_v44 }
 0x329   : > { %v3019_v49 = vpop.permute.xlu0 %3018 }
 0x32a   : > { %v3033_v26 = vsel %vm3030_vm1, %v3019_v49, %v6277_v34  ;;  %v6351_v19 = vpop.permute.xlu1 %3218  ;;  %v3032_v34 = vsel %vm3030_vm1, %v6922_v55, %v3019_v49 }
 0x32b   : > { %v3047_v8 = vadd.f32 %v3033_v26, %v3000_v53  ;;  %v3046_v2 = vadd.f32 %v3032_v34, %v2999_v52 }
 0x32d   : > { %v3027_v42 = vpop.permute.xlu0 %3026 }
 0x32e   : > { %v3036_v38 = vsel %vm3030_vm1, %v3027_v42, %v6286_v25  ;;  %v6355_v29 = vpop.permute.xlu1 %3176 }
 0x32f   : > { %v3051_v7 = vadd.f32 %v3036_v38, %v3004_v3  ;;  %v6933_v3 = vld [vmem:[#allocation71_spill] sm:$0xff] }
 0x331   : > { %v3101_v18 = vpop.permute.xlu0 %3100 }
 0x332   : > { %v3114_v35 = vsel %vm2786_vm8, %v3101_v18, %v6293_v59  ;;  %v6359_v58 = vpop.permute.xlu1 %3214  ;;  %v3113_v63 = vsel %vm2786_vm8, %v6926_v1, %v3101_v18  ;;  %v3035_v59 = vsel %vm3030_vm1, %v6924_v41, %v3027_v42  ;;  %v6934_v42 = vld [vmem:[#allocation67_spill] sm:$0xff] }
 0x333   : > { %v3128_v17 = vadd.f32 %v3114_v35, %v3047_v8  ;;  %v3127_v9 = vadd.f32 %v3113_v63, %v3046_v2  ;;  %v3050_v57 = vadd.f32 %v3035_v59, %v3003_v12  ;;  %v3227_v38 = vsel %vm2074_vm3, %v6934_v42, %v6351_v19 }
 0x334   : > { %v3242_v34 = vadd.f32 %v3227_v38, %v6335_v30  ;;  %v3199_v2 = vadd.f32 %v6355_v29, %v6327_v54 }
 0x335   : > { %v3109_v10 = vpop.permute.xlu0 %3108 }
 0x336   : > { %v3117_v47 = vsel %vm2786_vm8, %v3109_v10, %v3111_v31  ;;  %v6366_v25 = vpop.permute.xlu1 %3222  ;;  %v3116_v44 = vsel %vm2786_vm8, %v6929_v39, %v3109_v10  ;;  %v6935_v10 = vld [vmem:[#allocation73_spill] sm:$0xff] }
 0x337   : > { %v6368_v5 = vadd.f32 %v3117_v47, %v3051_v7  ;;  %v3131_v40 = vadd.f32 %v3116_v44, %v3050_v57 }
 0x339   : > { %v3167_v21 = vpop.permute.xlu0 %3166 }
 0x33a   : > { %v3179_v55 = vsel %vm2944_vm0, %v3165_v51, %v3167_v21  ;;  %v3180_v60 = vsel %vm2944_vm0, %v3167_v21, %v3169_v14  ;;  %v3278_v1 = vpop.permute.xlu1 %3277  ;;  %v6932_v14 = vld [vmem:[#allocation63_spill] sm:$0xff]  ;;  %v3241_v21 = vadd.f32 %v6359_v58, %v6347_v37 }
 0x33b   : > { %v3193_v31 = vadd.f32 %v3179_v55, %v3127_v9  ;;  %v6376_v48 = vadd.f32 %v3180_v60, %v3128_v17  ;;  %v3224_v12 = vsel %vm2074_vm3, %v6932_v14, %v6341_v15  ;;  %v3292_v49 = vsel %vm3291_vm12, %v6933_v3, %v3278_v1 }
 0x33c   : > { %v3238_v8 = vadd.f32 %v3224_v12, %v6322_v36 }
 0x33d   : > { %v3175_v28 = vpop.permute.xlu0 %3174 }
 0x33e   : > { %v3182_v20 = vsel %vm2944_vm0, %v3173_v50, %v3175_v28  ;;  %v3286_v56 = vpop.permute.xlu1 %3285  ;;  %v3306_v35 = vadd.f32 %v3292_v49, %v3238_v8  ;;  %v3183_v30 = vsel %vm2944_vm0, %v3175_v28, %v6355_v29  ;;  %vm3525_vm0 = vcmask 859136  }
 0x33f   : > { %v3197_v41 = vadd.f32 %v3182_v20, %v3131_v40  ;;  %v3295_v36 = vsel %vm3291_vm12, %v6935_v10, %v3286_v56 }
 0x340   : > { %v3310_v60 = vadd.f32 %v3295_v36, %v3242_v34 }
 0x341   : > { %v3213_v11 = vpop.permute.xlu0 %3212 }
 0x342   : > { %v3225_v33 = vsel %vm2074_vm3, %v6341_v15, %v3213_v11  ;;  %v6381_v39 = vpop.permute.xlu1 %3281 }
 0x343   : > { %v3239_v51 = vadd.f32 %v3225_v33, %v3193_v31  ;;  %v3245_v31 = vadd.f32 %v6366_v25, %v3199_v2  ;;  %v3309_v3 = vadd.f32 %v6381_v39, %v3241_v21  ;;  %v3495_v21 = vld [vmem:[#allocation2] sm:$0xff] }
 0x345   : > { %v3221_v32 = vpop.permute.xlu0 %3220 }
 0x346   : > { %v3345_v22 = vpop.permute.xlu1 %3344  ;;  %v3228_v17 = vsel %vm2074_vm3, %v6351_v19, %v3221_v32 }
 0x347   : > { %v3243_v44 = vadd.f32 %v3228_v17, %v3197_v41 }
 0x349   : > { %v3280_v45 = vpop.permute.xlu0 %3279 }
 0x34a   : > { %v6383_v16 = vpop.permute.xlu1 %3289  ;;  %v3293_v7 = vsel %vm3291_vm12, %v3278_v1, %v3280_v45  ;;  %v3226_v1 = vsel %vm2074_vm3, %v3213_v11, %v6359_v58  ;;  %v3294_v40 = vsel %vm3291_vm12, %v3280_v45, %v6381_v39  ;;  %v3198_v11 = vadd.f32 %v3183_v30, %v6368_v5 }
 0x34b   : > { %v3307_v63 = vadd.f32 %v3293_v7, %v3239_v51  ;;  %v3240_v51 = vadd.f32 %v3226_v1, %v6376_v48  ;;  %v3229_v45 = vsel %vm2074_vm3, %v3221_v32, %v6366_v25  ;;  %v3498_v1 = vld [vmem:[#allocation2 + $0x18] sm:$0xff] }
 0x34d   : > { %v6385_v43 = vpop.permute.xlu0 %3287  ;;  %v3308_v49 = vadd.f32 %v3294_v40, %v3240_v51  ;;  %v3496_v40 = vld [vmem:[#allocation2 + $0x8] sm:$0xff] }
 0x34e   : > { %v6387_v13 = vpop.permute.xlu1 %3352  ;;  %v3296_v59 = vsel %vm3291_vm12, %v3286_v56, %v6385_v43  ;;  %v3297_v5 = vsel %vm3291_vm12, %v6385_v43, %v6383_v16 }
 0x34f   : > { %v3311_v20 = vadd.f32 %v3296_v59, %v3243_v44 }
 0x351   : > { %v3343_v27 = vpop.permute.xlu0 %3342 }
 0x352   : > { %v6389_v50 = vpop.permute.xlu1 %3390  ;;  %v3358_v15 = vsel %vm2538_vm13, %v3343_v27, %v3345_v22  ;;  %v3372_v9 = vadd.f32 %v3343_v27, %v3306_v35 }
 0x353   : > { %v3373_v55 = vadd.f32 %v3358_v15, %v3307_v63 }
 0x355   : > { %v3351_v4 = vpop.permute.xlu0 %3350 }
 0x356   : > { %v3349_v61 = vpop.permute.xlu1 %3348  ;;  %v3361_v54 = vsel %vm2538_vm13, %v3351_v4, %v6387_v13  ;;  %v3376_v29 = vadd.f32 %v3351_v4, %v3310_v60 }
 0x357   : > { %v3377_v27 = vadd.f32 %v3361_v54, %v3311_v20  ;;  %v3497_v20 = vld [vmem:[#allocation2 + $0x10] sm:$0xff] }
 0x359   : > { %v3389_v6 = vpop.permute.xlu0 %3388 }
 0x35a   : > { %v6391_v0 = vpop.permute.xlu1 %3398  ;;  %v3405_v19 = vsel %vm3404_vm2, %v3389_v6, %v6389_v50  ;;  %v3419_v57 = vadd.f32 %v3389_v6, %v3372_v9 }
 0x35b   : > { %v3420_v37 = vadd.f32 %v3405_v19, %v3373_v55 }
 0x35d   : > { %v3347_v62 = vpop.permute.xlu0 %3346 }
 0x35e   : > { %v6393_v52 = vpop.permute.xlu1 %3356  ;;  %v3359_v14 = vsel %vm2538_vm13, %v3345_v22, %v3347_v62  ;;  %v3360_v4 = vsel %vm2538_vm13, %v3347_v62, %v3349_v61  ;;  %v3244_v62 = vadd.f32 %v3229_v45, %v3198_v11  ;;  %v3500_v11 = vld [vmem:[#allocation2 + $0x28] sm:$0xff] }
 0x35f   : > { %v3375_v39 = vadd.f32 %v3360_v4, %v3309_v3  ;;  %v4189_v3 = vmov (!%p3787_p6), 0  }
 0x360   : > { %4039 = vset.pattern.permute.xlu0 (!%p3787_p6), %v4189_v3 }
 0x361   : > { %v3397_v53 = vpop.permute.xlu0 %3396 }
 0x362   : > { %v3395_v46 = vpop.permute.xlu1 %3394  ;;  %v3408_v28 = vsel %vm3404_vm2, %v3397_v53, %v6391_v0  ;;  %v3423_v12 = vadd.f32 %v3397_v53, %v3376_v29  ;;  %v3374_v53 = vadd.f32 %v3359_v14, %v3308_v49  ;;  %v3561_v49 = vld [vmem:[%s6566_s2 + $0x8] sm:$0xff] (!%p3787_p6) }
 0x363   : > { %v3424_v48 = vadd.f32 %v3408_v28, %v3377_v27 }
 0x365   : > { %v6395_v24 = vpop.permute.xlu0 %3354 }
 0x366   : > { %v6397_v23 = vpop.permute.xlu1 %3402  ;;  %v3362_v43 = vsel %vm2538_vm13, %v6387_v13, %v6395_v24  ;;  %v3363_v7 = vsel %vm2538_vm13, %v6395_v24, %v6393_v52 }
 0x369   : > { %v3393_v26 = vpop.permute.xlu0 %3392 }
 0x36a   : > { %v6409_v18 = vpop.permute.xlu1 %3458  ;;  %v3406_v25 = vsel %vm3404_vm2, %v6389_v50, %v3393_v26  ;;  %v3407_v32 = vsel %vm3404_vm2, %v3393_v26, %v3395_v46  ;;  %v3313_v50 = vadd.f32 %v6383_v16, %v3245_v31  ;;  %v3312_v46 = vadd.f32 %v3297_v5, %v3244_v62 }
 0x36b   : > { %v3421_v26 = vadd.f32 %v3406_v25, %v3374_v53  ;;  %v3422_v35 = vadd.f32 %v3407_v32, %v3375_v39 }
 0x36c   : > { %v3378_v24 = vadd.f32 %v3362_v43, %v3312_v46  ;;  %v3379_v10 = vadd.f32 %v3363_v7, %v3313_v50 }
 0x36d   : > { %v3401_v47 = vpop.permute.xlu0 %3400 }
 0x36e   : > { %v3467_v56 = vpop.permute.xlu1 %3466  ;;  %v3409_v15 = vsel %vm3404_vm2, %v6391_v0, %v3401_v47  ;;  %v3410_v13 = vsel %vm3404_vm2, %v3401_v47, %v6397_v23 }
 0x36f   : > { %v3425_v63 = vadd.f32 %v3409_v15, %v3378_v24  ;;  %v3426_v2 = vadd.f32 %v3410_v13, %v3379_v10 }
 0x371   : > { %v3457_v33 = vpop.permute.xlu0 %3456 }
 0x372   : > { %v3473_v58 = vsel %vm3472_vm4, %v3457_v33, %v6409_v18  ;;  %v3487_v41 = vadd.f32 %v3457_v33, %v3419_v57  ;;  %v3463_v42 = vpop.permute.xlu1 %3462 }
 0x373   : > { %v3488_v6 = vadd.f32 %v3473_v58, %v3420_v37 }
 0x374   : > { %3509 = vrot.lane.b32.xlu0 %v3487_v41, %s4188_s29  ;;  %v3499_v41 = vld [vmem:[#allocation2 + $0x20] sm:$0xff] }
 0x375   : > { %v3465_v8 = vpop.permute.xlu0 %3464  ;;  %3511 = vrot.lane.b32.xlu1 %v3488_v6, %s4188_s29 }
 0x376   : > { %v3476_v22 = vsel %vm3472_vm4, %v3465_v8, %v3467_v56  ;;  %v3491_v61 = vadd.f32 %v3465_v8, %v3423_v12  ;;  %v3471_v59 = vpop.permute.xlu1 %3470  ;;  %v3560_v12 = vld [vmem:[%s6566_s2] sm:$0xff] (!%p3787_p6) }
 0x377   : > { %v3492_v38 = vadd.f32 %v3476_v22, %v3424_v48 }
 0x378   : > { %3517 = vrot.lane.b32.xlu0 %v3491_v61, %s4188_s29 }
 0x379   : > { %v3461_v17 = vpop.permute.xlu0 %3460  ;;  %3519 = vrot.lane.b32.xlu1 %v3492_v38, %s4188_s29 }
 0x37a   : > { %v3474_v34 = vsel %vm3472_vm4, %v6409_v18, %v3461_v17  ;;  %v3475_v52 = vsel %vm3472_vm4, %v3461_v17, %v3463_v42 }
 0x37b   : > { %v3489_v16 = vadd.f32 %v3474_v34, %v3421_v26  ;;  %v3490_v36 = vadd.f32 %v3475_v52, %v3422_v35 }
 0x37d   : > { %3513 = vrot.lane.b32.xlu0 %v3489_v16, %s4188_s29  ;;  %v3469_v9 = vpop.permute.xlu0 %3468  ;;  %3515 = vrot.lane.b32.xlu1 %v3490_v36, %s4188_s29 }
 0x37e   : > { %v3477_v0 = vsel %vm3472_vm4, %v3467_v56, %v3469_v9  ;;  %v3478_v23 = vsel %vm3472_vm4, %v3469_v9, %v3471_v59 }
 0x37f   : > { %v3493_v47 = vadd.f32 %v3477_v0, %v3425_v63  ;;  %v3494_v18 = vadd.f32 %v3478_v23, %v3426_v2 }
 0x381   : > { %3521 = vrot.lane.b32.xlu0 %v3493_v47, %s4188_s29  ;;  %3523 = vrot.lane.b32.xlu1 %v3494_v18, %s4188_s29 }
 0x385   : > { %3564 = vperm.xlu0 (!%p3787_p6), %4039, %v3560_v12  }
 0x389   : > { %3569 = vperm.xlu0 (!%p3787_p6), %4039, %v3561_v49  }
 0x3e6   : > { %v3510_v19 = vpop.permute.xlu0 %3509 }
 0x3e7   : > { %v3512_v30 = vpop.permute.xlu1 %3511 }
 0x3e8   : > { %v3526_v44 = vsel %vm3525_vm0, %v3510_v19, %v3512_v30 }
 0x3e9   : > { %v3538_v55 = vadd.f32 %v3526_v44, %v3495_v21 }
 0x3ea   : > { %v3518_v60 = vpop.permute.xlu0 %3517 }
 0x3eb   : > { %3544 = vst [vmem:[#allocation2] sm:$0xff] %v3538_v55  ;;  %v3520_v54 = vpop.permute.xlu1 %3519 }
 0x3ec   : > { %v3529_v57 = vsel %vm3525_vm0, %v3518_v60, %v3520_v54 }
 0x3ed   : > { %v3541_v31 = vadd.f32 %v3529_v57, %v3498_v1 }
 0x3ef   : > { %3547 = vst [vmem:[#allocation2 + $0x18] sm:$0xff] %v3541_v31  ;;  %v3514_v37 = vpop.permute.xlu0 %3513  ;;  %v3516_v56 = vpop.permute.xlu1 %3515 }
 0x3f0   : > { %v3527_v33 = vsel %vm3525_vm0, %v3512_v30, %v3514_v37  ;;  %v3528_v29 = vsel %vm3525_vm0, %v3514_v37, %v3516_v56 }
 0x3f1   : > { %v3539_v28 = vadd.f32 %v3527_v33, %v3496_v40  ;;  %v3540_v58 = vadd.f32 %v3528_v29, %v3497_v20  ;;  %3553 = sbr.rel (%p3787_p6) target bundleno = 1037 (0x40d), region = 85 }
 0x3f2   : > { %v3554_v5 = vld [vmem:[#allocation2] sm:$0xff] (!%p3787_p6) }
 0x3f3   : > { %3545 = vst [vmem:[#allocation2 + $0x8] sm:$0xff] %v3539_v28  ;;  %3546 = vst [vmem:[#allocation2 + $0x10] sm:$0xff] %v3540_v58  ;;  %v3522_v51 = vpop.permute.xlu0 %3521  ;;  %v3524_v27 = vpop.permute.xlu1 %3523 }
 0x3f4   : > { %v3530_v6 = vsel %vm3525_vm0, %v3520_v54, %v3522_v51  ;;  %v3531_v45 = vsel %vm3525_vm0, %v3522_v51, %v3524_v27 }
 0x3f5   : > { %v3542_v14 = vadd.f32 %v3530_v6, %v3499_v41  ;;  %v3543_v4 = vadd.f32 %v3531_v45, %v3500_v11 }
 0x3f6   : > { %v3557_v62 = vld [vmem:[#allocation2 + $0x18] sm:$0xff] (!%p3787_p6) }
 0x3f7   : > { %3548 = vst [vmem:[#allocation2 + $0x20] sm:$0xff] %v3542_v14  ;;  %3549 = vst [vmem:[#allocation2 + $0x28] sm:$0xff] %v3543_v4 }
 0x3fa   : > { %v3555_v48 = vld [vmem:[#allocation2 + $0x8] sm:$0xff]  ;;  %v3556_v8 = vld [vmem:[#allocation2 + $0x10] sm:$0xff] }
 0x3fe   : > { %v3558_v53 = vld [vmem:[#allocation2 + $0x20] sm:$0xff]  ;;  %v3559_v39 = vld [vmem:[#allocation2 + $0x28] sm:$0xff] }
 0x404   : > { %v3565_v25 = vpop.permute.xlu0 %3564 }
 0x405   : > { %v3572_v32 = vadd.f32 %v3565_v25, %v3554_v5  ;;  %v3573_v22 = vadd.f32 %v3565_v25, %v3555_v48  ;;  %v3574_v61 = vadd.f32 %v3565_v25, %v3556_v8 }
 0x407   : > { %3578 = vst [vmem:[%s4444_s18] sm:$0xff] %v3572_v32  ;;  %3579 = vst [vmem:[%s4444_s18 + $0x8] sm:$0xff] %v3573_v22 }
 0x408   : > { %3580 = vst [vmem:[%s4444_s18 + $0x10] sm:$0xff] %v3574_v61  ;;  %v3570_v42 = vpop.permute.xlu0 %3569 }
 0x409   : > { %v3575_v38 = vadd.f32 %v3570_v42, %v3557_v62  ;;  %v3576_v43 = vadd.f32 %v3570_v42, %v3558_v53  ;;  %v3577_v7 = vadd.f32 %v3570_v42, %v3559_v39 }
 0x40b   : > { %3581 = vst [vmem:[%s4444_s18 + $0x18] sm:$0xff] %v3575_v38  ;;  %3582 = vst [vmem:[%s4444_s18 + $0x20] sm:$0xff] %v3576_v43 }
 0x40c   : > { %3583 = vst [vmem:[%s4444_s18 + $0x28] sm:$0xff] %v3577_v7 }
 0x40d PF: > { %s3812_s20 = smul.u32 768, %s4138_s21  ;;  %s3598_s14 = sshll.u32 %s4444_s18, 4  ;;  %s6502_s14 = int_to_ptr.vmem [resolvable:$true] %s3598_s14 }
 0x40e   : > { %s6936_s28 = sand.u32 1, %s4118_s16   ;;  %s4040_s23 = scalar_lea.vmem %s6502_s14, 768 }
 0x40f   : > { %s6500_s27 = scalar_lea.hbm %s6568_s4, %s3812_s20  ;;  %s6506_s5 = scalar_lea.sflag [#allocation5], %s6936_s28 }
 0x410   : > { %p4041_p7 = scmp.ne.s32.totalorder %s6502_s14, %s4040_s23  ;;  %s4190_s21 = smov [#allocation4]  }
 0x411   : > { %s4044_s18 = sshll.u32 %s4190_s21, 4  ;;  %s4045_s18 = int_to_ptr.vmem [resolvable:$false] %s4044_s18 }
 0x412   : > { %p4042_p8 = pnand %p4041_p7, %p4297_p10  ;;  %s4046_s8 = scalar_lea.vmem %s4045_s18, 1536 }
 0x413   : > { %p4047_p11 = scmp.lt.s32.totalorder %s6502_s14, %s4045_s18  ;;  %p4048_p13 = scmp.lt.s32.totalorder %s4046_s8, %s4040_s23 }
 0x414   : > { %p4043_p9 = pneg %p4042_p8 }
 0x415   : > { %p4049_p0 = por %p4048_p13, %p4047_p11 }
 0x417   : > { %p4050_p1 = pnand %p4049_p0, %p4043_p9 }
 0x419   : > { %4053 = shalt.err (!%p4050_p1)
}
 0x41a   : > { %s4054_s25 = scalar_lea.hbm %s6500_s27, 768  ;;  %s4058_s30 = scalar_lea.hbm %s6568_s4, 1536 }
 0x41b   : > { %p4055_p2 = scmp.ne.s32.totalorder %s6500_s27, %s4054_s25  ;;  %p4059_p5 = scmp.lt.u32.totalorder %s6500_s27, %s6568_s4 }
 0x41c   : > { %p4060_p6 = scmp.lt.u32.totalorder %s4058_s30, %s4054_s25  ;;  %p4062_p8 = scmp.lt.u32.totalorder %s4054_s25, %s6500_s27 }
 0x41d   : > { %p4056_p3 = pnand %p4055_p2, %p4297_p10 }
 0x41e   : > { %p4061_p7 = por %p4060_p6, %p4059_p5 }
 0x41f   : > { %p4057_p4 = pneg %p4056_p3 }
 0x420   : > { %p4063_p9 = por %p4062_p8, %p4061_p7 }
 0x422   : > { %p4064_p11 = pnand %p4063_p9, %p4057_p4 }
 0x424   : > { %4067 = shalt.err (!%p4064_p11)
}
 0x425   : > { %s4191_s20 = smov 384   ;;  %s4192_s6 = smov 24  }
 0x426   : > { %3813 = dma.vmem_to_hbm [thread:$0]  (%p4297_p10), %s6502_s14, 768, %s6500_s27, %s6506_s5, %s4191_s20, %s4191_s20, %s4192_s6  }
 0x427 PF: > { %p3819_p13 = scmp.ge.s32.totalorder %s4150_s24, 2  ;;  %s3613_s12 = sand.u32 1, %s4114_s15  }
 0x428   : > { %s3614_s28 = scalar_lea.sflag [#allocation5], %s3613_s12 }
 0x429   : > { %p3816_p0 = pnand %p3819_p13, %p4304_p12 }
 0x42b   : > { %4109 = dma.done.wait (!%p3816_p0), %s3614_s28, 768  }
 0x42c   : > { %4111 = vsyncadd (!%p3816_p0), %s3614_s28, 4294966528  ;;  %s17_s24 = sadd.s32 1, %s4150_s24   ;;  %s6937_s21 = sld [smem:[#allocation7_spill]] }
 0x42d   : > { %p14_p1 = scmp.ge.s32.totalorder %s17_s24, 8   ;;  %s6938_s9 = sld [smem:[#allocation8_spill]] }
 0x42e   : > { %s6939_s23 = sld [smem:[#allocation9_spill]]  ;;  %s6940_s15 = smov %s4118_s16 }
 0x42f   : > { %s6941_s16 = smov %s4122_s17  ;;  %s6942_s17 = smov %s4302_s10 }
 0x430   : > { %s6943_s18 = smov %s4130_s19  ;;  %s6944_s19 = smov %s4291_s7 }
 0x431   : > { %s6945_s20 = smov %s4142_s22  ;;  %16 = sbr.rel (!%p14_p1) target bundleno = 8 (0x8), region = 133 }
 0x433   : > { %s6946_s22 = smov %s6938_s9 }
 0x438   :  { %3619 = vsyncpa [#allocation5], 1 }
 0x439   :  { %3621 = vsyncpa [#allocation5 + $0x1], 1 }

</bundles_post_ra>
